<compile_context>
chip_gen: v5e
topology: v5e:2x2
jax: 0.10.0
libtpu: 0.0.40
codegen_flags: <defaults>
</compile_context>

<pallas_src>
import functools
import math

import jax
import jax.numpy as jnp
from jax.experimental import pallas as pl
from jax.experimental.pallas import tpu as pltpu

# Per-token projections / output heads: full-f32 MXU passes (tracks reference).
# Attention score / apply matmuls: native single-pass bf16 MXU (perf lever).
IO_PRECISION = jax.lax.Precision.HIGHEST
ATTN_PRECISION = jax.lax.Precision.DEFAULT


def _erf(z):
    # Abramowitz & Stegun 7.1.26 polynomial erf, |abs err| < 1.5e-7 at f32.
    a1, a2, a3, a4, a5 = (0.254829592, -0.284496736, 1.421413741,
                          -1.453152027, 1.061405429)
    p = 0.3275911
    s = jnp.where(z >= 0.0, 1.0, -1.0)
    az = jnp.abs(z)
    t = pl.reciprocal(1.0 + p * az, approx=True)       # EUP, frees VALU slots
    poly = ((((a5 * t + a4) * t + a3) * t + a2) * t + a1) * t
    return s * (1.0 - poly * jnp.exp(-az * az))


def _gelu(v):
    # exact (erf-based) GELU, matching torch.nn.GELU() default
    return 0.5 * v * (1.0 + _erf(v * (1.0 / math.sqrt(2.0))))


def _softmax_last(s):
    m = jnp.max(s, axis=-1, keepdims=True)
    e = jnp.exp(s - m)
    return e * pl.reciprocal(jnp.sum(e, axis=-1, keepdims=True), approx=True)


def _attention_kernel(
        x_ref, p1_ref, p2_ref, prior_ref,
        w_qkv_ref, b_qkv_ref, w_out_ref, b_out_ref, ln2_ref,
        out_ref, p1_out_ref, p2_out_ref,
        *, num_heads, head_size):
    bb, T, D = x_ref.shape
    P1 = p1_ref.shape[1]
    P2 = p2_ref.shape[1]
    H, hd = num_heads, head_size
    Z = bb * H

    ln_g = ln2_ref[0:1, :]            # (1, D)
    ln_b = ln2_ref[1:2, :]            # (1, D)

    def layer_norm(v2d, eps=1e-6):    # module uses nn.LayerNorm(dim, eps=1e-6)
        mu = jnp.mean(v2d, axis=-1, keepdims=True)
        var = jnp.mean(jnp.square(v2d - mu), axis=-1, keepdims=True)
        return (v2d - mu) * jax.lax.rsqrt(var + eps) * ln_g + ln_b

    def out_head(v2d, idx):           # 1x1 Conv1D == per-token linear
        w = w_out_ref[:, idx * D:(idx + 1) * D]
        b = b_out_ref[:, idx * D:(idx + 1) * D]
        return jnp.dot(v2d, w, precision=IO_PRECISION,
                       preferred_element_type=jnp.float32) + b

    def heads_major(t):               # (bb, S, H, hd) -> (Z, S, hd)
        S = t.shape[1]
        return t.transpose(0, 2, 1, 3).reshape(Z, S, hd)

    def token_major_2d(t, S):         # (Z, S, hd) -> (bb*S, D)
        return t.reshape(bb, H, S, hd).transpose(0, 2, 1, 3).reshape(bb * S, D)

    x2d = x_ref[...].reshape(bb * T, D)
    p1_full = p1_ref[...]             # (bb, P1, D)
    p2_full = p2_ref[...]             # (bb, P2, D)
    prior = prior_ref[...]            # (bb, 2, T)
    pr1 = prior[:, 0:1, :].reshape(bb, 1, 1, T)
    pr2 = prior[:, 1:2, :].reshape(bb, 1, 1, T)

    # ---- fused Q/K/V projection: one (bb*T, D) x (D, 3D) MXU pass -----------
    # 1/sqrt(hd) is pre-folded into the q columns of w_qkv / b_qkv on the host.
    qkv = jnp.dot(x2d, w_qkv_ref[...], precision=IO_PRECISION,
                  preferred_element_type=jnp.float32) + b_qkv_ref[...]
    q_z = heads_major(qkv[:, 0 * D:1 * D].reshape(bb, T, H, hd))   # scaled
    k_z = heads_major(qkv[:, 1 * D:2 * D].reshape(bb, T, H, hd))
    v_z = heads_major(qkv[:, 2 * D:3 * D].reshape(bb, T, H, hd))
    p1_z = heads_major(p1_full.reshape(bb, P1, H, hd))             # prompts raw
    p2_z = heads_major(p2_full.reshape(bb, P2, H, hd))

    # ---- attention: single-batch-dim (Z = bb*H) einsums ----------------------
    word = jnp.einsum('zqd,zkd->zqk', q_z, k_z, precision=ATTN_PRECISION,
                      preferred_element_type=jnp.float32)          # (Z, T, T)
    p1s = jnp.einsum('zpd,ztd->zpt', p1_z, q_z, precision=ATTN_PRECISION,
                     preferred_element_type=jnp.float32)           # (Z, P1, T)
    p2s = jnp.einsum('zpd,ztd->zpt', p2_z, q_z, precision=ATTN_PRECISION,
                     preferred_element_type=jnp.float32)           # (Z, P2, T)

    # TODO(synk): mask / mask_logits path not implemented (mask=None only;
    # mask_logits is not defined in the reference source).
    word_attn = _softmax_last(word)
    p1_attn = _softmax_last(
        _softmax_last(p1s.reshape(bb, H, P1, T)) * pr1).reshape(Z, P1, T)
    p2_attn = _softmax_last(
        _softmax_last(p2s.reshape(bb, H, P2, T)) * pr2).reshape(Z, P2, T)

    new_v = jnp.einsum('zqk,zkd->zqd', word_attn, v_z,
                       precision=ATTN_PRECISION,
                       preferred_element_type=jnp.float32)         # (Z, T, hd)
    p1_v = jnp.einsum('zpt,ztd->zpd', p1_attn, new_v,
                      precision=ATTN_PRECISION,
                      preferred_element_type=jnp.float32)          # (Z, P1, hd)
    p2_v = jnp.einsum('zpt,ztd->zpd', p2_attn, new_v,
                      precision=ATTN_PRECISION,
                      preferred_element_type=jnp.float32)          # (Z, P2, hd)

    value2d = token_major_2d(new_v, T)                             # (bb*T, D)
    p1c2d = token_major_2d(p1_v, P1)                               # (bb*P1, D)
    p2c2d = token_major_2d(p2_v, P2)                               # (bb*P2, D)

    # ---- word output branch (dropout == identity, eval mode) ----------------
    residual = x2d + value2d
    h = _gelu(out_head(layer_norm(residual), 0))       # out_layer1 + GELU
    out2d = out_head(h, 1) + residual                  # out_layer2 + residual
    out_ref[...] = out2d.reshape(bb, T, D)

    # ---- prompt output branches ---------------------------------------------
    p1r = p1c2d + p1_full.reshape(bb * P1, D)
    p1_out_ref[...] = _gelu(out_head(layer_norm(p1r), 2)).reshape(bb, P1, D)

    p2r = p2c2d + p2_full.reshape(bb * P2, D)
    p2_out_ref[...] = _gelu(out_head(layer_norm(p2r), 3)).reshape(bb, P2, D)


def prior_guided_prompt_attention(x, p1, p2, prior_1, prior_2, params, num_heads):
    B, T, D = x.shape
    P1 = p1.shape[1]
    P2 = p2.shape[1]
    assert D % num_heads == 0
    hd = D // num_heads
    scale = 1.0 / math.sqrt(hd)

    # Host-side weight packing: fold 1/sqrt(head_size) into the query weights,
    # fuse q/k/v into one (D, 3D) slab, pack the 4 output heads into (D, 4D),
    # layernorm2 gamma/beta into one (2, D), and the two priors into (B, 2, T)
    # (18 kernel inputs -> 9).
    w_qkv = jnp.concatenate(
        [params['q_w'] * scale, params['k_w'], params['v_w']], axis=1)
    b_qkv = jnp.concatenate(
        [params['q_b'] * scale, params['k_b'], params['v_b']], axis=1)
    w_out = jnp.concatenate(
        [params['o1_w'], params['o2_w'], params['p1o_w'], params['p2o_w']], axis=1)
    b_out = jnp.concatenate(
        [params['o1_b'], params['o2_b'], params['p1o_b'], params['p2o_b']], axis=1)
    ln2 = jnp.concatenate([params['ln2_g'], params['ln2_b']], axis=0)
    prior = jnp.stack([prior_1.reshape(B, T), prior_2.reshape(B, T)], axis=1)

    # Several batch elements per grid step (denser blocks, amortized per-step
    # overhead).  bb always divides B.
    bb = math.gcd(B, 8)
    grid = (B // bb,)

    def full_spec(arr):
        nd = arr.ndim
        return pl.BlockSpec(arr.shape, lambda i, _nd=nd: (0,) * _nd)

    in_specs = [
        pl.BlockSpec((bb, T, D), lambda i: (i, 0, 0)),
        pl.BlockSpec((bb, P1, D), lambda i: (i, 0, 0)),
        pl.BlockSpec((bb, P2, D), lambda i: (i, 0, 0)),
        pl.BlockSpec((bb, 2, T), lambda i: (i, 0, 0)),
        full_spec(w_qkv), full_spec(b_qkv),
        full_spec(w_out), full_spec(b_out), full_spec(ln2),
    ]
    out_shape = (
        jax.ShapeDtypeStruct((B, T, D), jnp.float32),
        jax.ShapeDtypeStruct((B, P1, D), jnp.float32),
        jax.ShapeDtypeStruct((B, P2, D), jnp.float32),
    )
    out_specs = (
        pl.BlockSpec((bb, T, D), lambda i: (i, 0, 0)),
        pl.BlockSpec((bb, P1, D), lambda i: (i, 0, 0)),
        pl.BlockSpec((bb, P2, D), lambda i: (i, 0, 0)),
    )

    kernel = functools.partial(_attention_kernel, num_heads=num_heads,
                               head_size=hd)

    # TODO(synk): for long sequences add query-tile / head grid axes with an
    # online-softmax accumulator (bounds the (Z,T,T) score tensor in VMEM and
    # gives the v7x megacore a second parallel axis). Unnecessary at these sizes.
    return pl.pallas_call(
        kernel,
        grid=grid,
        in_specs=in_specs,
        out_specs=out_specs,
        out_shape=out_shape,
        compiler_params=pltpu.CompilerParams(
            dimension_semantics=("parallel",),
            vmem_limit_bytes=32 * 1024 * 1024),
    )(x, p1, p2, prior, w_qkv, b_qkv, w_out, b_out, ln2)


# ------------------------- pure-JAX reference (for check) -------------------
def _reference(x, p1, p2, prior_1, prior_2, params, num_heads):
    B, T, D = x.shape
    P1, P2 = p1.shape[1], p2.shape[1]
    hd = D // num_heads
    P = P1 + P2
    PREC = jax.lax.Precision.HIGHEST

    def lin(v, w, b):
        return jnp.einsum('bsd,de->bse', v, w, precision=PREC) + b

    def ln(v, g, b, eps=1e-6):
        mu = jnp.mean(v, axis=-1, keepdims=True)
        var = jnp.mean(jnp.square(v - mu), axis=-1, keepdims=True)
        return (v - mu) / jnp.sqrt(var + eps) * g + b

    def t4s(y):  # transpose_for_scores
        Bv, S, _ = y.shape
        return y.reshape(Bv, S, num_heads, hd).transpose(0, 2, 1, 3)

    q = t4s(jnp.concatenate([lin(x, params['q_w'], params['q_b']), p1, p2], axis=1))
    k = t4s(jnp.concatenate([lin(x, params['k_w'], params['k_b']), p1, p2], axis=1))
    v = t4s(lin(x, params['v_w'], params['v_b']))

    scores = jnp.einsum('bhqd,bhkd->bhqk', q, k, precision=PREC) / math.sqrt(hd)
    p1s = scores[:, :, :-P, -P:-P2].transpose(0, 1, 3, 2)
    p2s = scores[:, :, :-P, -P2:].transpose(0, 1, 3, 2)
    word = scores[:, :, :-P, :-P]

    p1a = jax.nn.softmax(jax.nn.softmax(p1s, axis=-1) * prior_1[:, None, None, :], axis=-1)
    p2a = jax.nn.softmax(jax.nn.softmax(p2s, axis=-1) * prior_2[:, None, None, :], axis=-1)
    worda = jax.nn.softmax(word, axis=-1)

    val = jnp.einsum('bhts,bhsd->bhtd', worda, v, precision=PREC)
    p1v = jnp.einsum('bhpt,bhtd->bhpd', p1a, val, precision=PREC)
    p2v = jnp.einsum('bhpt,bhtd->bhpd', p2a, val, precision=PREC)

    val = val.transpose(0, 2, 1, 3).reshape(B, T, D)
    p1v = p1v.transpose(0, 2, 1, 3).reshape(B, P1, D)
    p2v = p2v.transpose(0, 2, 1, 3).reshape(B, P2, D)

    gelu = lambda z: jax.nn.gelu(z, approximate=False)

    residual = x + val
    out = ln(residual, params['ln2_g'], params['ln2_b'])
    out = gelu(lin(out, params['o1_w'], params['o1_b']))
    out = lin(out, params['o2_w'], params['o2_b']) + residual

    p1o = gelu(lin(ln(p1v + p1, params['ln2_g'], params['ln2_b']),
                   params['p1o_w'], params['p1o_b']))
    p2o = gelu(lin(ln(p2v + p2, params['ln2_g'], params['ln2_b']),
                   params['p2o_w'], params['p2o_b']))
    return out, p1o, p2o


def _init_params(key, dim):
    ks = jax.random.split(key, 16)
    def lin_init(kw, kb):
        w = jax.random.normal(kw, (dim, dim), jnp.float32) * 0.05
        b = jax.random.normal(kb, (1, dim), jnp.float32) * 0.05
        return w, b
    q_w, q_b = lin_init(ks[0], ks[1])
    k_w, k_b = lin_init(ks[2], ks[3])
    v_w, v_b = lin_init(ks[4], ks[5])
    o1_w, o1_b = lin_init(ks[6], ks[7])
    o2_w, o2_b = lin_init(ks[8], ks[9])
    p1o_w, p1o_b = lin_init(ks[10], ks[11])
    p2o_w, p2o_b = lin_init(ks[12], ks[13])
    ln2_g = 1.0 + 0.1 * jax.random.normal(ks[14], (1, dim), jnp.float32)
    ln2_b = 0.1 * jax.random.normal(ks[15], (1, dim), jnp.float32)
    # layer_norm1 params exist in the module but its output is dead code.
    return dict(q_w=q_w, q_b=q_b, k_w=k_w, k_b=k_b, v_w=v_w, v_b=v_b,
                ln2_g=ln2_g, ln2_b=ln2_b,
                o1_w=o1_w, o1_b=o1_b, o2_w=o2_w, o2_b=o2_b,
                p1o_w=p1o_w, p1o_b=p1o_b, p2o_w=p2o_w, p2o_b=p2o_b)


if __name__ == "__main__":
    B, T, D, H = 2, 16, 32, 4
    P1, P2 = 4, 4

    root = jax.random.PRNGKey(0)
    kx, kp1, kp2, kpr1, kpr2, kpar = jax.random.split(root, 6)

    x = jax.random.normal(kx, (B, T, D), jnp.float32)
    p1 = jax.random.normal(kp1, (B, P1, D), jnp.float32)
    p2 = jax.random.normal(kp2, (B, P2, D), jnp.float32)
    prior_1 = jax.random.uniform(kpr1, (B, T), jnp.float32, 0.5, 1.5)
    prior_2 = jax.random.uniform(kpr2, (B, T), jnp.float32, 0.5, 1.5)
    params = _init_params(kpar, D)

    out, p1_out, p2_out = prior_guided_prompt_attention(
        x, p1, p2, prior_1, prior_2, params, num_heads=H)
    jax.block_until_ready((out, p1_out, p2_out))

    ref_out, ref_p1, ref_p2 = _reference(x, p1, p2, prior_1, prior_2, params, H)
    # Tolerance accounts for the native-bf16 MXU path on the attention matmuls
    # (Precision.DEFAULT) and the approximate EUP reciprocal used in softmax /
    # GELU, compared against a full-f32 (HIGHEST) XLA reference.
    tol = 5e-3
    for a, b in ((out, ref_out), (p1_out, ref_p1), (p2_out, ref_p2)):
        assert a.shape == b.shape
        err = float(jnp.max(jnp.abs(a - b)))
        assert err < tol, err

    print("KERNEL_OK")
</pallas_src>

<mosaic_0001>
module attributes {stable_mosaic.version = 11 : i64} {
  func.func @_attention_kernel(%arg0: i32, %arg1: memref<2x16x32xf32, #tpu.memory_space<vmem>>, %arg2: memref<2x4x32xf32, #tpu.memory_space<vmem>>, %arg3: memref<2x4x32xf32, #tpu.memory_space<vmem>>, %arg4: memref<2x2x16xf32, #tpu.memory_space<vmem>>, %arg5: memref<32x96xf32, #tpu.memory_space<vmem>>, %arg6: memref<1x96xf32, #tpu.memory_space<vmem>>, %arg7: memref<32x128xf32, #tpu.memory_space<vmem>>, %arg8: memref<1x128xf32, #tpu.memory_space<vmem>>, %arg9: memref<2x32xf32, #tpu.memory_space<vmem>>, %arg10: memref<2x16x32xf32, #tpu.memory_space<vmem>>, %arg11: memref<2x4x32xf32, #tpu.memory_space<vmem>>, %arg12: memref<2x4x32xf32, #tpu.memory_space<vmem>>) attributes {dimension_semantics = [#tpu.dimension_semantics<parallel>], iteration_bounds = array<i64: 1>, scalar_prefetch = 0 : i64, scratch_operands = 0 : i64, tpu.core_type = #tpu.core_type<tc>, window_params = [{transform_indices = @transform_0, window_bounds = array<i64: 2, 16, 32>}, {transform_indices = @transform_1, window_bounds = array<i64: 2, 4, 32>}, {transform_indices = @transform_2, window_bounds = array<i64: 2, 4, 32>}, {transform_indices = @transform_3, window_bounds = array<i64: 2, 2, 16>}, {pipeline_mode = #tpu.pipeline_mode<synchronous>, transform_indices = @transform_4, window_bounds = array<i64: 32, 96>}, {pipeline_mode = #tpu.pipeline_mode<synchronous>, transform_indices = @transform_5, window_bounds = array<i64: 1, 96>}, {pipeline_mode = #tpu.pipeline_mode<synchronous>, transform_indices = @transform_6, window_bounds = array<i64: 32, 128>}, {pipeline_mode = #tpu.pipeline_mode<synchronous>, transform_indices = @transform_7, window_bounds = array<i64: 1, 128>}, {pipeline_mode = #tpu.pipeline_mode<synchronous>, transform_indices = @transform_8, window_bounds = array<i64: 2, 32>}, {transform_indices = @transform_9, window_bounds = array<i64: 2, 16, 32>}, {transform_indices = @transform_10, window_bounds = array<i64: 2, 4, 32>}, {transform_indices = @transform_11, window_bounds = array<i64: 2, 4, 32>}]} {
    %c0 = arith.constant 0 : index
    %c0_0 = arith.constant 0 : index
    %0 = vector.load %arg9[%c0, %c0_0] : memref<2x32xf32, #tpu.memory_space<vmem>>, vector<1x32xf32>
    %c1 = arith.constant 1 : index
    %c0_1 = arith.constant 0 : index
    %1 = vector.load %arg9[%c1, %c0_1] : memref<2x32xf32, #tpu.memory_space<vmem>>, vector<1x32xf32>
    %c0_2 = arith.constant 0 : index
    %c0_3 = arith.constant 0 : index
    %c0_4 = arith.constant 0 : index
    %2 = vector.load %arg1[%c0_2, %c0_3, %c0_4] : memref<2x16x32xf32, #tpu.memory_space<vmem>>, vector<2x16x32xf32>
    %3 = vector.shape_cast %2 : vector<2x16x32xf32> to vector<32x32xf32>
    %c0_5 = arith.constant 0 : index
    %c0_6 = arith.constant 0 : index
    %c0_7 = arith.constant 0 : index
    %4 = vector.load %arg2[%c0_5, %c0_6, %c0_7] : memref<2x4x32xf32, #tpu.memory_space<vmem>>, vector<2x4x32xf32>
    %c0_8 = arith.constant 0 : index
    %c0_9 = arith.constant 0 : index
    %c0_10 = arith.constant 0 : index
    %5 = vector.load %arg3[%c0_8, %c0_9, %c0_10] : memref<2x4x32xf32, #tpu.memory_space<vmem>>, vector<2x4x32xf32>
    %c0_11 = arith.constant 0 : index
    %c0_12 = arith.constant 0 : index
    %c0_13 = arith.constant 0 : index
    %6 = vector.load %arg4[%c0_11, %c0_12, %c0_13] : memref<2x2x16xf32, #tpu.memory_space<vmem>>, vector<2x2x16xf32>
    %7 = vector.extract_strided_slice %6 {offsets = [0, 0, 0], sizes = [2, 1, 16], strides = [1, 1, 1]} : vector<2x2x16xf32> to vector<2x1x16xf32>
    %8 = vector.shape_cast %7 : vector<2x1x16xf32> to vector<2x1x1x16xf32>
    %9 = vector.extract_strided_slice %6 {offsets = [0, 1, 0], sizes = [2, 1, 16], strides = [1, 1, 1]} : vector<2x2x16xf32> to vector<2x1x16xf32>
    %10 = vector.shape_cast %9 : vector<2x1x16xf32> to vector<2x1x1x16xf32>
    %c0_14 = arith.constant 0 : index
    %c0_15 = arith.constant 0 : index
    %11 = vector.load %arg5[%c0_14, %c0_15] : memref<32x96xf32, #tpu.memory_space<vmem>>, vector<32x96xf32>
    %cst = arith.constant dense<0.000000e+00> : vector<32x96xf32>
    %12 = tpu.matmul %3, %11, %cst {dimension_numbers = #tpu.dot_dimension_numbers<[1], [0], [0], [1], [0, 0, 1, 1], [], []>, precision = #tpu.contract_precision<fp32>} : vector<32x32xf32>, vector<32x96xf32>, vector<32x96xf32> -> vector<32x96xf32>
    %c0_16 = arith.constant 0 : index
    %c0_17 = arith.constant 0 : index
    %13 = vector.load %arg6[%c0_16, %c0_17] : memref<1x96xf32, #tpu.memory_space<vmem>>, vector<1x96xf32>
    %14 = vector.broadcast %13 : vector<1x96xf32> to vector<32x96xf32>
    %15 = arith.addf %12, %14 : vector<32x96xf32>
    %16 = vector.extract_strided_slice %15 {offsets = [0, 0], sizes = [32, 32], strides = [1, 1]} : vector<32x96xf32> to vector<32x32xf32>
    %17 = vector.shape_cast %16 : vector<32x32xf32> to vector<2x16x4x8xf32>
    %18 = tpu.transpose %17, [0, 2, 1, 3] : vector<2x16x4x8xf32> -> vector<2x4x16x8xf32>
    %19 = vector.shape_cast %18 : vector<2x4x16x8xf32> to vector<8x16x8xf32>
    %20 = vector.extract_strided_slice %15 {offsets = [0, 32], sizes = [32, 32], strides = [1, 1]} : vector<32x96xf32> to vector<32x32xf32>
    %21 = vector.shape_cast %20 : vector<32x32xf32> to vector<2x16x4x8xf32>
    %22 = tpu.transpose %21, [0, 2, 1, 3] : vector<2x16x4x8xf32> -> vector<2x4x16x8xf32>
    %23 = vector.shape_cast %22 : vector<2x4x16x8xf32> to vector<8x16x8xf32>
    %24 = vector.extract_strided_slice %15 {offsets = [0, 64], sizes = [32, 32], strides = [1, 1]} : vector<32x96xf32> to vector<32x32xf32>
    %25 = vector.shape_cast %24 : vector<32x32xf32> to vector<2x16x4x8xf32>
    %26 = tpu.transpose %25, [0, 2, 1, 3] : vector<2x16x4x8xf32> -> vector<2x4x16x8xf32>
    %27 = vector.shape_cast %26 : vector<2x4x16x8xf32> to vector<8x16x8xf32>
    %28 = vector.shape_cast %4 : vector<2x4x32xf32> to vector<2x4x4x8xf32>
    %29 = tpu.transpose %28, [0, 2, 1, 3] : vector<2x4x4x8xf32> -> vector<2x4x4x8xf32>
    %30 = vector.shape_cast %29 : vector<2x4x4x8xf32> to vector<8x4x8xf32>
    %31 = vector.shape_cast %5 : vector<2x4x32xf32> to vector<2x4x4x8xf32>
    %32 = tpu.transpose %31, [0, 2, 1, 3] : vector<2x4x4x8xf32> -> vector<2x4x4x8xf32>
    %33 = vector.shape_cast %32 : vector<2x4x4x8xf32> to vector<8x4x8xf32>
    "tpu.trace_start"() <{level = 10 : i32, message = "zqd,zkd->zqk"}> : () -> ()
    %cst_18 = arith.constant dense<0.000000e+00> : vector<8x16x16xf32>
    %34 = tpu.matmul %19, %23, %cst_18 {dimension_numbers = #tpu.dot_dimension_numbers<[2], [2], [1], [1], [0, 0, 0, 1, 1, 1], [0], [0]>} : vector<8x16x8xf32>, vector<8x16x8xf32>, vector<8x16x16xf32> -> vector<8x16x16xf32>
    "tpu.trace_stop"() : () -> ()
    "tpu.trace_start"() <{level = 10 : i32, message = "zpd,ztd->zpt"}> : () -> ()
    %cst_19 = arith.constant dense<0.000000e+00> : vector<8x4x16xf32>
    %35 = tpu.matmul %30, %19, %cst_19 {dimension_numbers = #tpu.dot_dimension_numbers<[2], [2], [1], [1], [0, 0, 0, 1, 1, 1], [0], [0]>} : vector<8x4x8xf32>, vector<8x16x8xf32>, vector<8x4x16xf32> -> vector<8x4x16xf32>
    %cst_20 = arith.constant dense<0.000000e+00> : vector<8x4x16xf32>
    %36 = tpu.matmul %33, %19, %cst_20 {dimension_numbers = #tpu.dot_dimension_numbers<[2], [2], [1], [1], [0, 0, 0, 1, 1, 1], [0], [0]>} : vector<8x4x8xf32>, vector<8x16x8xf32>, vector<8x4x16xf32> -> vector<8x4x16xf32>
    "tpu.trace_stop"() : () -> ()
    %cst_21 = arith.constant dense<0xFF800000> : vector<8x16xf32>
    %37 = vector.multi_reduction <maximumf>, %34, %cst_21 [2] : vector<8x16x16xf32> to vector<8x16xf32>
    %38 = vector.shape_cast %37 : vector<8x16xf32> to vector<8x16x1xf32>
    %39 = vector.broadcast %38 : vector<8x16x1xf32> to vector<8x16x16xf32>
    %40 = arith.subf %34, %39 : vector<8x16x16xf32>
    %41 = math.exp %40 : vector<8x16x16xf32>
    %cst_22 = arith.constant dense<0.000000e+00> : vector<8x16xf32>
    %42 = vector.multi_reduction <add>, %41, %cst_22 [2] : vector<8x16x16xf32> to vector<8x16xf32>
    %43 = vector.shape_cast %42 : vector<8x16xf32> to vector<8x16x1xf32>
    %44 = tpu.reciprocal %43 {approx = true} : vector<8x16x1xf32> -> vector<8x16x1xf32>
    %45 = vector.broadcast %44 : vector<8x16x1xf32> to vector<8x16x16xf32>
    %46 = arith.mulf %41, %45 : vector<8x16x16xf32>
    %47 = vector.shape_cast %35 : vector<8x4x16xf32> to vector<2x4x4x16xf32>
    %cst_23 = arith.constant dense<0xFF800000> : vector<2x4x4xf32>
    %48 = vector.multi_reduction <maximumf>, %47, %cst_23 [3] : vector<2x4x4x16xf32> to vector<2x4x4xf32>
    %49 = vector.shape_cast %48 : vector<2x4x4xf32> to vector<2x4x4x1xf32>
    %50 = vector.broadcast %49 : vector<2x4x4x1xf32> to vector<2x4x4x16xf32>
    %51 = arith.subf %47, %50 : vector<2x4x4x16xf32>
    %52 = math.exp %51 : vector<2x4x4x16xf32>
    %cst_24 = arith.constant dense<0.000000e+00> : vector<2x4x4xf32>
    %53 = vector.multi_reduction <add>, %52, %cst_24 [3] : vector<2x4x4x16xf32> to vector<2x4x4xf32>
    %54 = vector.shape_cast %53 : vector<2x4x4xf32> to vector<2x4x4x1xf32>
    %55 = tpu.reciprocal %54 {approx = true} : vector<2x4x4x1xf32> -> vector<2x4x4x1xf32>
    %56 = vector.broadcast %55 : vector<2x4x4x1xf32> to vector<2x4x4x16xf32>
    %57 = arith.mulf %52, %56 : vector<2x4x4x16xf32>
    %58 = vector.broadcast %8 : vector<2x1x1x16xf32> to vector<2x4x4x16xf32>
    %59 = arith.mulf %57, %58 : vector<2x4x4x16xf32>
    %cst_25 = arith.constant dense<0xFF800000> : vector<2x4x4xf32>
    %60 = vector.multi_reduction <maximumf>, %59, %cst_25 [3] : vector<2x4x4x16xf32> to vector<2x4x4xf32>
    %61 = vector.shape_cast %60 : vector<2x4x4xf32> to vector<2x4x4x1xf32>
    %62 = vector.broadcast %61 : vector<2x4x4x1xf32> to vector<2x4x4x16xf32>
    %63 = arith.subf %59, %62 : vector<2x4x4x16xf32>
    %64 = math.exp %63 : vector<2x4x4x16xf32>
    %cst_26 = arith.constant dense<0.000000e+00> : vector<2x4x4xf32>
    %65 = vector.multi_reduction <add>, %64, %cst_26 [3] : vector<2x4x4x16xf32> to vector<2x4x4xf32>
    %66 = vector.shape_cast %65 : vector<2x4x4xf32> to vector<2x4x4x1xf32>
    %67 = tpu.reciprocal %66 {approx = true} : vector<2x4x4x1xf32> -> vector<2x4x4x1xf32>
    %68 = vector.broadcast %67 : vector<2x4x4x1xf32> to vector<2x4x4x16xf32>
    %69 = arith.mulf %64, %68 : vector<2x4x4x16xf32>
    %70 = vector.shape_cast %69 : vector<2x4x4x16xf32> to vector<8x4x16xf32>
    %71 = vector.shape_cast %36 : vector<8x4x16xf32> to vector<2x4x4x16xf32>
    %cst_27 = arith.constant dense<0xFF800000> : vector<2x4x4xf32>
    %72 = vector.multi_reduction <maximumf>, %71, %cst_27 [3] : vector<2x4x4x16xf32> to vector<2x4x4xf32>
    %73 = vector.shape_cast %72 : vector<2x4x4xf32> to vector<2x4x4x1xf32>
    %74 = vector.broadcast %73 : vector<2x4x4x1xf32> to vector<2x4x4x16xf32>
    %75 = arith.subf %71, %74 : vector<2x4x4x16xf32>
    %76 = math.exp %75 : vector<2x4x4x16xf32>
    %cst_28 = arith.constant dense<0.000000e+00> : vector<2x4x4xf32>
    %77 = vector.multi_reduction <add>, %76, %cst_28 [3] : vector<2x4x4x16xf32> to vector<2x4x4xf32>
    %78 = vector.shape_cast %77 : vector<2x4x4xf32> to vector<2x4x4x1xf32>
    %79 = tpu.reciprocal %78 {approx = true} : vector<2x4x4x1xf32> -> vector<2x4x4x1xf32>
    %80 = vector.broadcast %79 : vector<2x4x4x1xf32> to vector<2x4x4x16xf32>
    %81 = arith.mulf %76, %80 : vector<2x4x4x16xf32>
    %82 = vector.broadcast %10 : vector<2x1x1x16xf32> to vector<2x4x4x16xf32>
    %83 = arith.mulf %81, %82 : vector<2x4x4x16xf32>
    %cst_29 = arith.constant dense<0xFF800000> : vector<2x4x4xf32>
    %84 = vector.multi_reduction <maximumf>, %83, %cst_29 [3] : vector<2x4x4x16xf32> to vector<2x4x4xf32>
    %85 = vector.shape_cast %84 : vector<2x4x4xf32> to vector<2x4x4x1xf32>
    %86 = vector.broadcast %85 : vector<2x4x4x1xf32> to vector<2x4x4x16xf32>
    %87 = arith.subf %83, %86 : vector<2x4x4x16xf32>
    %88 = math.exp %87 : vector<2x4x4x16xf32>
    %cst_30 = arith.constant dense<0.000000e+00> : vector<2x4x4xf32>
    %89 = vector.multi_reduction <add>, %88, %cst_30 [3] : vector<2x4x4x16xf32> to vector<2x4x4xf32>
    %90 = vector.shape_cast %89 : vector<2x4x4xf32> to vector<2x4x4x1xf32>
    %91 = tpu.reciprocal %90 {approx = true} : vector<2x4x4x1xf32> -> vector<2x4x4x1xf32>
    %92 = vector.broadcast %91 : vector<2x4x4x1xf32> to vector<2x4x4x16xf32>
    %93 = arith.mulf %88, %92 : vector<2x4x4x16xf32>
    %94 = vector.shape_cast %93 : vector<2x4x4x16xf32> to vector<8x4x16xf32>
    "tpu.trace_start"() <{level = 10 : i32, message = "zqk,zkd->zqd"}> : () -> ()
    %cst_31 = arith.constant dense<0.000000e+00> : vector<8x16x8xf32>
    %95 = tpu.matmul %46, %27, %cst_31 {dimension_numbers = #tpu.dot_dimension_numbers<[2], [1], [1], [2], [0, 0, 0, 1, 1, 2], [0], [0]>} : vector<8x16x16xf32>, vector<8x16x8xf32>, vector<8x16x8xf32> -> vector<8x16x8xf32>
    "tpu.trace_stop"() : () -> ()
    "tpu.trace_start"() <{level = 10 : i32, message = "zpt,ztd->zpd"}> : () -> ()
    %cst_32 = arith.constant dense<0.000000e+00> : vector<8x4x8xf32>
    %96 = tpu.matmul %70, %95, %cst_32 {dimension_numbers = #tpu.dot_dimension_numbers<[2], [1], [1], [2], [0, 0, 0, 1, 1, 2], [0], [0]>} : vector<8x4x16xf32>, vector<8x16x8xf32>, vector<8x4x8xf32> -> vector<8x4x8xf32>
    %cst_33 = arith.constant dense<0.000000e+00> : vector<8x4x8xf32>
    %97 = tpu.matmul %94, %95, %cst_33 {dimension_numbers = #tpu.dot_dimension_numbers<[2], [1], [1], [2], [0, 0, 0, 1, 1, 2], [0], [0]>} : vector<8x4x16xf32>, vector<8x16x8xf32>, vector<8x4x8xf32> -> vector<8x4x8xf32>
    "tpu.trace_stop"() : () -> ()
    %98 = vector.shape_cast %95 : vector<8x16x8xf32> to vector<2x4x16x8xf32>
    %99 = tpu.transpose %98, [0, 2, 1, 3] : vector<2x4x16x8xf32> -> vector<2x16x4x8xf32>
    %100 = vector.shape_cast %99 : vector<2x16x4x8xf32> to vector<32x32xf32>
    %101 = vector.shape_cast %96 : vector<8x4x8xf32> to vector<2x4x4x8xf32>
    %102 = tpu.transpose %101, [0, 2, 1, 3] : vector<2x4x4x8xf32> -> vector<2x4x4x8xf32>
    %103 = vector.shape_cast %102 : vector<2x4x4x8xf32> to vector<8x32xf32>
    %104 = vector.shape_cast %97 : vector<8x4x8xf32> to vector<2x4x4x8xf32>
    %105 = tpu.transpose %104, [0, 2, 1, 3] : vector<2x4x4x8xf32> -> vector<2x4x4x8xf32>
    %106 = vector.shape_cast %105 : vector<2x4x4x8xf32> to vector<8x32xf32>
    %107 = arith.addf %3, %100 : vector<32x32xf32>
    %cst_34 = arith.constant dense<0.000000e+00> : vector<32xf32>
    %108 = vector.multi_reduction <add>, %107, %cst_34 [1] : vector<32x32xf32> to vector<32xf32>
    %109 = vector.shape_cast %108 : vector<32xf32> to vector<32x1xf32>
    %cst_35 = arith.constant 3.200000e+01 : f32
    %110 = vector.broadcast %cst_35 : f32 to vector<32x1xf32>
    %111 = arith.divf %109, %110 : vector<32x1xf32>
    %112 = vector.broadcast %111 : vector<32x1xf32> to vector<32x32xf32>
    %113 = arith.subf %107, %112 : vector<32x32xf32>
    %114 = arith.mulf %113, %113 : vector<32x32xf32>
    %cst_36 = arith.constant dense<0.000000e+00> : vector<32xf32>
    %115 = vector.multi_reduction <add>, %114, %cst_36 [1] : vector<32x32xf32> to vector<32xf32>
    %116 = vector.shape_cast %115 : vector<32xf32> to vector<32x1xf32>
    %cst_37 = arith.constant 3.200000e+01 : f32
    %117 = vector.broadcast %cst_37 : f32 to vector<32x1xf32>
    %118 = arith.divf %116, %117 : vector<32x1xf32>
    %119 = vector.broadcast %111 : vector<32x1xf32> to vector<32x32xf32>
    %120 = arith.subf %107, %119 : vector<32x32xf32>
    %cst_38 = arith.constant 9.99999997E-7 : f32
    %121 = vector.broadcast %cst_38 : f32 to vector<32x1xf32>
    %122 = arith.addf %118, %121 : vector<32x1xf32>
    %123 = math.rsqrt %122 : vector<32x1xf32>
    %124 = vector.broadcast %123 : vector<32x1xf32> to vector<32x32xf32>
    %125 = arith.mulf %120, %124 : vector<32x32xf32>
    %126 = vector.broadcast %0 : vector<1x32xf32> to vector<32x32xf32>
    %127 = arith.mulf %125, %126 : vector<32x32xf32>
    %128 = vector.broadcast %1 : vector<1x32xf32> to vector<32x32xf32>
    %129 = arith.addf %127, %128 : vector<32x32xf32>
    %c0_39 = arith.constant 0 : index
    %c0_40 = arith.constant 0 : index
    %130 = vector.load %arg7[%c0_39, %c0_40] : memref<32x128xf32, #tpu.memory_space<vmem>>, vector<32x32xf32>
    %c0_41 = arith.constant 0 : index
    %c0_42 = arith.constant 0 : index
    %131 = vector.load %arg8[%c0_41, %c0_42] : memref<1x128xf32, #tpu.memory_space<vmem>>, vector<1x32xf32>
    %cst_43 = arith.constant dense<0.000000e+00> : vector<32x32xf32>
    %132 = tpu.matmul %129, %130, %cst_43 {dimension_numbers = #tpu.dot_dimension_numbers<[1], [0], [0], [1], [0, 0, 1, 1], [], []>, precision = #tpu.contract_precision<fp32>} : vector<32x32xf32>, vector<32x32xf32>, vector<32x32xf32> -> vector<32x32xf32>
    %133 = vector.broadcast %131 : vector<1x32xf32> to vector<32x32xf32>
    %134 = arith.addf %132, %133 : vector<32x32xf32>
    %cst_44 = arith.constant 5.000000e-01 : f32
    %135 = vector.broadcast %cst_44 : f32 to vector<32x32xf32>
    %136 = arith.mulf %135, %134 : vector<32x32xf32>
    %cst_45 = arith.constant 0.707106769 : f32
    %137 = vector.broadcast %cst_45 : f32 to vector<32x32xf32>
    %138 = arith.mulf %134, %137 : vector<32x32xf32>
    %cst_46 = arith.constant 0.000000e+00 : f32
    %139 = vector.broadcast %cst_46 : f32 to vector<32x32xf32>
    %140 = arith.cmpf oge, %138, %139 : vector<32x32xf32>
    %cst_47 = arith.constant 1.000000e+00 : f32
    %cst_48 = arith.constant -1.000000e+00 : f32
    %141 = vector.broadcast %cst_47 : f32 to vector<32x32xf32>
    %142 = vector.broadcast %cst_48 : f32 to vector<32x32xf32>
    %143 = arith.select %140, %141, %142 : vector<32x32xi1>, vector<32x32xf32>
    %144 = math.absf %138 : vector<32x32xf32>
    %cst_49 = arith.constant 0.327591091 : f32
    %145 = vector.broadcast %cst_49 : f32 to vector<32x32xf32>
    %146 = arith.mulf %145, %144 : vector<32x32xf32>
    %cst_50 = arith.constant 1.000000e+00 : f32
    %147 = vector.broadcast %cst_50 : f32 to vector<32x32xf32>
    %148 = arith.addf %147, %146 : vector<32x32xf32>
    %149 = tpu.reciprocal %148 {approx = true} : vector<32x32xf32> -> vector<32x32xf32>
    %cst_51 = arith.constant 1.06140542 : f32
    %150 = vector.broadcast %cst_51 : f32 to vector<32x32xf32>
    %151 = arith.mulf %150, %149 : vector<32x32xf32>
    %cst_52 = arith.constant -1.45315206 : f32
    %152 = vector.broadcast %cst_52 : f32 to vector<32x32xf32>
    %153 = arith.addf %151, %152 : vector<32x32xf32>
    %154 = arith.mulf %153, %149 : vector<32x32xf32>
    %cst_53 = arith.constant 1.42141378 : f32
    %155 = vector.broadcast %cst_53 : f32 to vector<32x32xf32>
    %156 = arith.addf %154, %155 : vector<32x32xf32>
    %157 = arith.mulf %156, %149 : vector<32x32xf32>
    %cst_54 = arith.constant -0.284496725 : f32
    %158 = vector.broadcast %cst_54 : f32 to vector<32x32xf32>
    %159 = arith.addf %157, %158 : vector<32x32xf32>
    %160 = arith.mulf %159, %149 : vector<32x32xf32>
    %cst_55 = arith.constant 0.254829586 : f32
    %161 = vector.broadcast %cst_55 : f32 to vector<32x32xf32>
    %162 = arith.addf %160, %161 : vector<32x32xf32>
    %163 = arith.mulf %162, %149 : vector<32x32xf32>
    %cst_56 = arith.constant 0.000000e+00 : f32
    %164 = vector.broadcast %cst_56 : f32 to vector<32x32xf32>
    %165 = arith.subf %164, %144 : vector<32x32xf32>
    %166 = arith.mulf %165, %144 : vector<32x32xf32>
    %167 = math.exp %166 : vector<32x32xf32>
    %168 = arith.mulf %163, %167 : vector<32x32xf32>
    %cst_57 = arith.constant 1.000000e+00 : f32
    %169 = vector.broadcast %cst_57 : f32 to vector<32x32xf32>
    %170 = arith.subf %169, %168 : vector<32x32xf32>
    %171 = arith.mulf %143, %170 : vector<32x32xf32>
    %cst_58 = arith.constant 1.000000e+00 : f32
    %172 = vector.broadcast %cst_58 : f32 to vector<32x32xf32>
    %173 = arith.addf %172, %171 : vector<32x32xf32>
    %174 = arith.mulf %136, %173 : vector<32x32xf32>
    %c0_59 = arith.constant 0 : index
    %c32 = arith.constant 32 : index
    %175 = vector.load %arg7[%c0_59, %c32] : memref<32x128xf32, #tpu.memory_space<vmem>>, vector<32x32xf32>
    %c0_60 = arith.constant 0 : index
    %c32_61 = arith.constant 32 : index
    %176 = vector.load %arg8[%c0_60, %c32_61] : memref<1x128xf32, #tpu.memory_space<vmem>>, vector<1x32xf32>
    %cst_62 = arith.constant dense<0.000000e+00> : vector<32x32xf32>
    %177 = tpu.matmul %174, %175, %cst_62 {dimension_numbers = #tpu.dot_dimension_numbers<[1], [0], [0], [1], [0, 0, 1, 1], [], []>, precision = #tpu.contract_precision<fp32>} : vector<32x32xf32>, vector<32x32xf32>, vector<32x32xf32> -> vector<32x32xf32>
    %178 = vector.broadcast %176 : vector<1x32xf32> to vector<32x32xf32>
    %179 = arith.addf %177, %178 : vector<32x32xf32>
    %180 = arith.addf %179, %107 : vector<32x32xf32>
    %181 = vector.shape_cast %180 : vector<32x32xf32> to vector<2x16x32xf32>
    %c0_63 = arith.constant 0 : index
    %c0_64 = arith.constant 0 : index
    %c0_65 = arith.constant 0 : index
    %182 = vector.load %arg10[%c0_63, %c0_64, %c0_65] : memref<2x16x32xf32, #tpu.memory_space<vmem>>, vector<2x16x32xf32>
    tpu.vector_store %arg10[%c0_63, %c0_64, %c0_65], %181 {strides = array<i32>} : memref<2x16x32xf32, #tpu.memory_space<vmem>>, vector<2x16x32xf32>,
    %183 = vector.shape_cast %4 : vector<2x4x32xf32> to vector<8x32xf32>
    %184 = arith.addf %103, %183 : vector<8x32xf32>
    %cst_66 = arith.constant dense<0.000000e+00> : vector<8xf32>
    %185 = vector.multi_reduction <add>, %184, %cst_66 [1] : vector<8x32xf32> to vector<8xf32>
    %186 = vector.shape_cast %185 : vector<8xf32> to vector<8x1xf32>
    %cst_67 = arith.constant 3.200000e+01 : f32
    %187 = vector.broadcast %cst_67 : f32 to vector<8x1xf32>
    %188 = arith.divf %186, %187 : vector<8x1xf32>
    %189 = vector.broadcast %188 : vector<8x1xf32> to vector<8x32xf32>
    %190 = arith.subf %184, %189 : vector<8x32xf32>
    %191 = arith.mulf %190, %190 : vector<8x32xf32>
    %cst_68 = arith.constant dense<0.000000e+00> : vector<8xf32>
    %192 = vector.multi_reduction <add>, %191, %cst_68 [1] : vector<8x32xf32> to vector<8xf32>
    %193 = vector.shape_cast %192 : vector<8xf32> to vector<8x1xf32>
    %cst_69 = arith.constant 3.200000e+01 : f32
    %194 = vector.broadcast %cst_69 : f32 to vector<8x1xf32>
    %195 = arith.divf %193, %194 : vector<8x1xf32>
    %196 = vector.broadcast %188 : vector<8x1xf32> to vector<8x32xf32>
    %197 = arith.subf %184, %196 : vector<8x32xf32>
    %cst_70 = arith.constant 9.99999997E-7 : f32
    %198 = vector.broadcast %cst_70 : f32 to vector<8x1xf32>
    %199 = arith.addf %195, %198 : vector<8x1xf32>
    %200 = math.rsqrt %199 : vector<8x1xf32>
    %201 = vector.broadcast %200 : vector<8x1xf32> to vector<8x32xf32>
    %202 = arith.mulf %197, %201 : vector<8x32xf32>
    %203 = vector.broadcast %0 : vector<1x32xf32> to vector<8x32xf32>
    %204 = arith.mulf %202, %203 : vector<8x32xf32>
    %205 = vector.broadcast %1 : vector<1x32xf32> to vector<8x32xf32>
    %206 = arith.addf %204, %205 : vector<8x32xf32>
    %c0_71 = arith.constant 0 : index
    %c64 = arith.constant 64 : index
    %207 = vector.load %arg7[%c0_71, %c64] : memref<32x128xf32, #tpu.memory_space<vmem>>, vector<32x32xf32>
    %c0_72 = arith.constant 0 : index
    %c64_73 = arith.constant 64 : index
    %208 = vector.load %arg8[%c0_72, %c64_73] : memref<1x128xf32, #tpu.memory_space<vmem>>, vector<1x32xf32>
    %cst_74 = arith.constant dense<0.000000e+00> : vector<8x32xf32>
    %209 = tpu.matmul %206, %207, %cst_74 {dimension_numbers = #tpu.dot_dimension_numbers<[1], [0], [0], [1], [0, 0, 1, 1], [], []>, precision = #tpu.contract_precision<fp32>} : vector<8x32xf32>, vector<32x32xf32>, vector<8x32xf32> -> vector<8x32xf32>
    %210 = vector.broadcast %208 : vector<1x32xf32> to vector<8x32xf32>
    %211 = arith.addf %209, %210 : vector<8x32xf32>
    %cst_75 = arith.constant 5.000000e-01 : f32
    %212 = vector.broadcast %cst_75 : f32 to vector<8x32xf32>
    %213 = arith.mulf %212, %211 : vector<8x32xf32>
    %cst_76 = arith.constant 0.707106769 : f32
    %214 = vector.broadcast %cst_76 : f32 to vector<8x32xf32>
    %215 = arith.mulf %211, %214 : vector<8x32xf32>
    %cst_77 = arith.constant 0.000000e+00 : f32
    %216 = vector.broadcast %cst_77 : f32 to vector<8x32xf32>
    %217 = arith.cmpf oge, %215, %216 : vector<8x32xf32>
    %cst_78 = arith.constant 1.000000e+00 : f32
    %cst_79 = arith.constant -1.000000e+00 : f32
    %218 = vector.broadcast %cst_78 : f32 to vector<8x32xf32>
    %219 = vector.broadcast %cst_79 : f32 to vector<8x32xf32>
    %220 = arith.select %217, %218, %219 : vector<8x32xi1>, vector<8x32xf32>
    %221 = math.absf %215 : vector<8x32xf32>
    %cst_80 = arith.constant 0.327591091 : f32
    %222 = vector.broadcast %cst_80 : f32 to vector<8x32xf32>
    %223 = arith.mulf %222, %221 : vector<8x32xf32>
    %cst_81 = arith.constant 1.000000e+00 : f32
    %224 = vector.broadcast %cst_81 : f32 to vector<8x32xf32>
    %225 = arith.addf %224, %223 : vector<8x32xf32>
    %226 = tpu.reciprocal %225 {approx = true} : vector<8x32xf32> -> vector<8x32xf32>
    %cst_82 = arith.constant 1.06140542 : f32
    %227 = vector.broadcast %cst_82 : f32 to vector<8x32xf32>
    %228 = arith.mulf %227, %226 : vector<8x32xf32>
    %cst_83 = arith.constant -1.45315206 : f32
    %229 = vector.broadcast %cst_83 : f32 to vector<8x32xf32>
    %230 = arith.addf %228, %229 : vector<8x32xf32>
    %231 = arith.mulf %230, %226 : vector<8x32xf32>
    %cst_84 = arith.constant 1.42141378 : f32
    %232 = vector.broadcast %cst_84 : f32 to vector<8x32xf32>
    %233 = arith.addf %231, %232 : vector<8x32xf32>
    %234 = arith.mulf %233, %226 : vector<8x32xf32>
    %cst_85 = arith.constant -0.284496725 : f32
    %235 = vector.broadcast %cst_85 : f32 to vector<8x32xf32>
    %236 = arith.addf %234, %235 : vector<8x32xf32>
    %237 = arith.mulf %236, %226 : vector<8x32xf32>
    %cst_86 = arith.constant 0.254829586 : f32
    %238 = vector.broadcast %cst_86 : f32 to vector<8x32xf32>
    %239 = arith.addf %237, %238 : vector<8x32xf32>
    %240 = arith.mulf %239, %226 : vector<8x32xf32>
    %cst_87 = arith.constant 0.000000e+00 : f32
    %241 = vector.broadcast %cst_87 : f32 to vector<8x32xf32>
    %242 = arith.subf %241, %221 : vector<8x32xf32>
    %243 = arith.mulf %242, %221 : vector<8x32xf32>
    %244 = math.exp %243 : vector<8x32xf32>
    %245 = arith.mulf %240, %244 : vector<8x32xf32>
    %cst_88 = arith.constant 1.000000e+00 : f32
    %246 = vector.broadcast %cst_88 : f32 to vector<8x32xf32>
    %247 = arith.subf %246, %245 : vector<8x32xf32>
    %248 = arith.mulf %220, %247 : vector<8x32xf32>
    %cst_89 = arith.constant 1.000000e+00 : f32
    %249 = vector.broadcast %cst_89 : f32 to vector<8x32xf32>
    %250 = arith.addf %249, %248 : vector<8x32xf32>
    %251 = arith.mulf %213, %250 : vector<8x32xf32>
    %252 = vector.shape_cast %251 : vector<8x32xf32> to vector<2x4x32xf32>
    %c0_90 = arith.constant 0 : index
    %c0_91 = arith.constant 0 : index
    %c0_92 = arith.constant 0 : index
    %253 = vector.load %arg11[%c0_90, %c0_91, %c0_92] : memref<2x4x32xf32, #tpu.memory_space<vmem>>, vector<2x4x32xf32>
    tpu.vector_store %arg11[%c0_90, %c0_91, %c0_92], %252 {strides = array<i32>} : memref<2x4x32xf32, #tpu.memory_space<vmem>>, vector<2x4x32xf32>,
    %254 = vector.shape_cast %5 : vector<2x4x32xf32> to vector<8x32xf32>
    %255 = arith.addf %106, %254 : vector<8x32xf32>
    %cst_93 = arith.constant dense<0.000000e+00> : vector<8xf32>
    %256 = vector.multi_reduction <add>, %255, %cst_93 [1] : vector<8x32xf32> to vector<8xf32>
    %257 = vector.shape_cast %256 : vector<8xf32> to vector<8x1xf32>
    %cst_94 = arith.constant 3.200000e+01 : f32
    %258 = vector.broadcast %cst_94 : f32 to vector<8x1xf32>
    %259 = arith.divf %257, %258 : vector<8x1xf32>
    %260 = vector.broadcast %259 : vector<8x1xf32> to vector<8x32xf32>
    %261 = arith.subf %255, %260 : vector<8x32xf32>
    %262 = arith.mulf %261, %261 : vector<8x32xf32>
    %cst_95 = arith.constant dense<0.000000e+00> : vector<8xf32>
    %263 = vector.multi_reduction <add>, %262, %cst_95 [1] : vector<8x32xf32> to vector<8xf32>
    %264 = vector.shape_cast %263 : vector<8xf32> to vector<8x1xf32>
    %cst_96 = arith.constant 3.200000e+01 : f32
    %265 = vector.broadcast %cst_96 : f32 to vector<8x1xf32>
    %266 = arith.divf %264, %265 : vector<8x1xf32>
    %267 = vector.broadcast %259 : vector<8x1xf32> to vector<8x32xf32>
    %268 = arith.subf %255, %267 : vector<8x32xf32>
    %cst_97 = arith.constant 9.99999997E-7 : f32
    %269 = vector.broadcast %cst_97 : f32 to vector<8x1xf32>
    %270 = arith.addf %266, %269 : vector<8x1xf32>
    %271 = math.rsqrt %270 : vector<8x1xf32>
    %272 = vector.broadcast %271 : vector<8x1xf32> to vector<8x32xf32>
    %273 = arith.mulf %268, %272 : vector<8x32xf32>
    %274 = vector.broadcast %0 : vector<1x32xf32> to vector<8x32xf32>
    %275 = arith.mulf %273, %274 : vector<8x32xf32>
    %276 = vector.broadcast %1 : vector<1x32xf32> to vector<8x32xf32>
    %277 = arith.addf %275, %276 : vector<8x32xf32>
    %c0_98 = arith.constant 0 : index
    %c96 = arith.constant 96 : index
    %278 = vector.load %arg7[%c0_98, %c96] : memref<32x128xf32, #tpu.memory_space<vmem>>, vector<32x32xf32>
    %c0_99 = arith.constant 0 : index
    %c96_100 = arith.constant 96 : index
    %279 = vector.load %arg8[%c0_99, %c96_100] : memref<1x128xf32, #tpu.memory_space<vmem>>, vector<1x32xf32>
    %cst_101 = arith.constant dense<0.000000e+00> : vector<8x32xf32>
    %280 = tpu.matmul %277, %278, %cst_101 {dimension_numbers = #tpu.dot_dimension_numbers<[1], [0], [0], [1], [0, 0, 1, 1], [], []>, precision = #tpu.contract_precision<fp32>} : vector<8x32xf32>, vector<32x32xf32>, vector<8x32xf32> -> vector<8x32xf32>
    %281 = vector.broadcast %279 : vector<1x32xf32> to vector<8x32xf32>
    %282 = arith.addf %280, %281 : vector<8x32xf32>
    %cst_102 = arith.constant 5.000000e-01 : f32
    %283 = vector.broadcast %cst_102 : f32 to vector<8x32xf32>
    %284 = arith.mulf %283, %282 : vector<8x32xf32>
    %cst_103 = arith.constant 0.707106769 : f32
    %285 = vector.broadcast %cst_103 : f32 to vector<8x32xf32>
    %286 = arith.mulf %282, %285 : vector<8x32xf32>
    %cst_104 = arith.constant 0.000000e+00 : f32
    %287 = vector.broadcast %cst_104 : f32 to vector<8x32xf32>
    %288 = arith.cmpf oge, %286, %287 : vector<8x32xf32>
    %cst_105 = arith.constant 1.000000e+00 : f32
    %cst_106 = arith.constant -1.000000e+00 : f32
    %289 = vector.broadcast %cst_105 : f32 to vector<8x32xf32>
    %290 = vector.broadcast %cst_106 : f32 to vector<8x32xf32>
    %291 = arith.select %288, %289, %290 : vector<8x32xi1>, vector<8x32xf32>
    %292 = math.absf %286 : vector<8x32xf32>
    %cst_107 = arith.constant 0.327591091 : f32
    %293 = vector.broadcast %cst_107 : f32 to vector<8x32xf32>
    %294 = arith.mulf %293, %292 : vector<8x32xf32>
    %cst_108 = arith.constant 1.000000e+00 : f32
    %295 = vector.broadcast %cst_108 : f32 to vector<8x32xf32>
    %296 = arith.addf %295, %294 : vector<8x32xf32>
    %297 = tpu.reciprocal %296 {approx = true} : vector<8x32xf32> -> vector<8x32xf32>
    %cst_109 = arith.constant 1.06140542 : f32
    %298 = vector.broadcast %cst_109 : f32 to vector<8x32xf32>
    %299 = arith.mulf %298, %297 : vector<8x32xf32>
    %cst_110 = arith.constant -1.45315206 : f32
    %300 = vector.broadcast %cst_110 : f32 to vector<8x32xf32>
    %301 = arith.addf %299, %300 : vector<8x32xf32>
    %302 = arith.mulf %301, %297 : vector<8x32xf32>
    %cst_111 = arith.constant 1.42141378 : f32
    %303 = vector.broadcast %cst_111 : f32 to vector<8x32xf32>
    %304 = arith.addf %302, %303 : vector<8x32xf32>
    %305 = arith.mulf %304, %297 : vector<8x32xf32>
    %cst_112 = arith.constant -0.284496725 : f32
    %306 = vector.broadcast %cst_112 : f32 to vector<8x32xf32>
    %307 = arith.addf %305, %306 : vector<8x32xf32>
    %308 = arith.mulf %307, %297 : vector<8x32xf32>
    %cst_113 = arith.constant 0.254829586 : f32
    %309 = vector.broadcast %cst_113 : f32 to vector<8x32xf32>
    %310 = arith.addf %308, %309 : vector<8x32xf32>
    %311 = arith.mulf %310, %297 : vector<8x32xf32>
    %cst_114 = arith.constant 0.000000e+00 : f32
    %312 = vector.broadcast %cst_114 : f32 to vector<8x32xf32>
    %313 = arith.subf %312, %292 : vector<8x32xf32>
    %314 = arith.mulf %313, %292 : vector<8x32xf32>
    %315 = math.exp %314 : vector<8x32xf32>
    %316 = arith.mulf %311, %315 : vector<8x32xf32>
    %cst_115 = arith.constant 1.000000e+00 : f32
    %317 = vector.broadcast %cst_115 : f32 to vector<8x32xf32>
    %318 = arith.subf %317, %316 : vector<8x32xf32>
    %319 = arith.mulf %291, %318 : vector<8x32xf32>
    %cst_116 = arith.constant 1.000000e+00 : f32
    %320 = vector.broadcast %cst_116 : f32 to vector<8x32xf32>
    %321 = arith.addf %320, %319 : vector<8x32xf32>
    %322 = arith.mulf %284, %321 : vector<8x32xf32>
    %323 = vector.shape_cast %322 : vector<8x32xf32> to vector<2x4x32xf32>
    %c0_117 = arith.constant 0 : index
    %c0_118 = arith.constant 0 : index
    %c0_119 = arith.constant 0 : index
    %324 = vector.load %arg12[%c0_117, %c0_118, %c0_119] : memref<2x4x32xf32, #tpu.memory_space<vmem>>, vector<2x4x32xf32>
    tpu.vector_store %arg12[%c0_117, %c0_118, %c0_119], %323 {strides = array<i32>} : memref<2x4x32xf32, #tpu.memory_space<vmem>>, vector<2x4x32xf32>,
    return
  }
  func.func @transform_0(%arg0: i32) -> (i32, i32, i32) {
    %c0_i32 = arith.constant 0 : i32
    %c0_i32_0 = arith.constant 0 : i32
    %c0_i32_1 = arith.constant 0 : i32
    return %arg0, %c0_i32, %c0_i32_0 : i32, i32, i32
  }
  func.func @transform_1(%arg0: i32) -> (i32, i32, i32) {
    %c0_i32 = arith.constant 0 : i32
    %c0_i32_0 = arith.constant 0 : i32
    %c0_i32_1 = arith.constant 0 : i32
    return %arg0, %c0_i32, %c0_i32_0 : i32, i32, i32
  }
  func.func @transform_2(%arg0: i32) -> (i32, i32, i32) {
    %c0_i32 = arith.constant 0 : i32
    %c0_i32_0 = arith.constant 0 : i32
    %c0_i32_1 = arith.constant 0 : i32
    return %arg0, %c0_i32, %c0_i32_0 : i32, i32, i32
  }
  func.func @transform_3(%arg0: i32) -> (i32, i32, i32) {
    %c0_i32 = arith.constant 0 : i32
    %c0_i32_0 = arith.constant 0 : i32
    %c0_i32_1 = arith.constant 0 : i32
    return %arg0, %c0_i32, %c0_i32_0 : i32, i32, i32
  }
  func.func @transform_4(%arg0: i32) -> (i32, i32) {
    %c0_i32 = arith.constant 0 : i32
    %c0_i32_0 = arith.constant 0 : i32
    %c0_i32_1 = arith.constant 0 : i32
    return %c0_i32, %c0_i32_0 : i32, i32
  }
  func.func @transform_5(%arg0: i32) -> (i32, i32) {
    %c0_i32 = arith.constant 0 : i32
    %c0_i32_0 = arith.constant 0 : i32
    %c0_i32_1 = arith.constant 0 : i32
    return %c0_i32, %c0_i32_0 : i32, i32
  }
  func.func @transform_6(%arg0: i32) -> (i32, i32) {
    %c0_i32 = arith.constant 0 : i32
    %c0_i32_0 = arith.constant 0 : i32
    %c0_i32_1 = arith.constant 0 : i32
    return %c0_i32, %c0_i32_0 : i32, i32
  }
  func.func @transform_7(%arg0: i32) -> (i32, i32) {
    %c0_i32 = arith.constant 0 : i32
    %c0_i32_0 = arith.constant 0 : i32
    %c0_i32_1 = arith.constant 0 : i32
    return %c0_i32, %c0_i32_0 : i32, i32
  }
  func.func @transform_8(%arg0: i32) -> (i32, i32) {
    %c0_i32 = arith.constant 0 : i32
    %c0_i32_0 = arith.constant 0 : i32
    %c0_i32_1 = arith.constant 0 : i32
    return %c0_i32, %c0_i32_0 : i32, i32
  }
  func.func @transform_9(%arg0: i32) -> (i32, i32, i32) {
    %c0_i32 = arith.constant 0 : i32
    %c0_i32_0 = arith.constant 0 : i32
    %c0_i32_1 = arith.constant 0 : i32
    return %arg0, %c0_i32, %c0_i32_0 : i32, i32, i32
  }
  func.func @transform_10(%arg0: i32) -> (i32, i32, i32) {
    %c0_i32 = arith.constant 0 : i32
    %c0_i32_0 = arith.constant 0 : i32
    %c0_i32_1 = arith.constant 0 : i32
    return %arg0, %c0_i32, %c0_i32_0 : i32, i32, i32
  }
  func.func @transform_11(%arg0: i32) -> (i32, i32, i32) {
    %c0_i32 = arith.constant 0 : i32
    %c0_i32_0 = arith.constant 0 : i32
    %c0_i32_1 = arith.constant 0 : i32
    return %arg0, %c0_i32, %c0_i32_0 : i32, i32, i32
  }
}

</mosaic_0001>

<bundles_post_ra>
// kernel: tpu_custom_call.1
= control target key start
LH: loop header
LB: loop body
LE: loop exit
PB: predicated region body
PF: predicated region fallthrough
CT: control target
= control target key end

     0   :  { %17 = vsyncpa [#allocation3], 0  ;;  %s9578_s0 = inlined_call_operand.hbm [shape: f32[2,16,32], index: 0, kind: input, shape index: {}]   ;;  %s9579_s1 = inlined_call_operand.hbm [shape: f32[2,4,32], index: 1, kind: input, shape index: {}]   ;;  %s9580_s2 = inlined_call_operand.hbm [shape: f32[2,4,32], index: 2, kind: input, shape index: {}]   ;;  %s9581_s3 = inlined_call_operand.hbm [shape: f32[2,2,16], index: 3, kind: input, shape index: {}]   ;;  %s9582_s4 = inlined_call_operand.hbm [shape: f32[32,96], index: 4, kind: input, shape index: {}]   ;;  %s9583_s5 = inlined_call_operand.vmem [shape: f32[1,96], index: 5, kind: input, shape index: {}]   ;;  %s9584_s6 = inlined_call_operand.hbm [shape: f32[32,128], index: 6, kind: input, shape index: {}]   ;;  %s9585_s7 = inlined_call_operand.vmem [shape: f32[1,128], index: 7, kind: input, shape index: {}]   ;;  %s9586_s8 = inlined_call_operand.vmem [shape: f32[2,32], index: 8, kind: input, shape index: {}]   ;;  %s9587_s9 = inlined_call_operand.hbm [shape: f32[2,16,32], index: 9, kind: output, shape index: {0}]   ;;  %s9588_s10 = inlined_call_operand.hbm [shape: f32[2,4,32], index: 10, kind: output, shape index: {1}]   ;;  %s9589_s11 = inlined_call_operand.hbm [shape: f32[2,4,32], index: 11, kind: output, shape index: {2}]  }
   0x1   :  { %18 = vsyncpa [#allocation6], 0 }
   0x2   :  { %19 = vsyncpa [#allocation9], 0 }
   0x3   :  { %20 = vsyncpa [#allocation12], 0 }
   0x4   :  { %21 = vsyncpa [#allocation4], 0  ;;  %s40_s19 = sshll.u32 %s9579_s1, 4  ;;  %s41_s19 = int_to_ptr.hbm [resolvable:$true] %s40_s19 }
   0x5   :  { %22 = vsyncpa [#allocation15], 0  ;;  %s6794_s20 = smov [#allocation5]   ;;  %s66_s24 = sshll.u32 %s9581_s3, 4  ;;  %s67_s24 = int_to_ptr.hbm [resolvable:$true] %s66_s24 }
   0x6   :  { %s42_s21 = sshll.u32 %s6794_s20, 4  ;;  %s6795_s25 = smov 64   ;;  %s43_s21 = int_to_ptr.vmem [resolvable:$true] %s42_s21 }
   0x7   :  { %s6796_s26 = smov 4   ;;  %s6797_s27 = smov [#allocation8]  }
   0x8   :  { %48 = dma.hbm_to_vmem [thread:$0]  %s41_s19, 128, %s43_s21, [#allocation6], %s6795_s25, %s6795_s25, %s6796_s26  }
   0x9   :  { %s68_s28 = sshll.u32 %s6797_s27, 4  ;;  %s6798_s1 = smov 32   ;;  %s69_s28 = int_to_ptr.vmem [resolvable:$true] %s68_s28 }
   0xa   :  { %s6799_s29 = smov 2   ;;  %s27_s13 = sshll.u32 %s9578_s0, 4  ;;  %s28_s13 = int_to_ptr.hbm [resolvable:$true] %s27_s13 }
   0xb   :  { %74 = dma.hbm_to_vmem [thread:$0]  %s67_s24, 64, %s69_s28, [#allocation9], %s6798_s1, %s6798_s1, %s6799_s29  }
   0xc   :  { %s6800_s3 = smov [#allocation2]   ;;  %s53_s17 = sshll.u32 %s9580_s2, 4  ;;  %s54_s17 = int_to_ptr.hbm [resolvable:$true] %s53_s17 }
   0xd   :  { %s29_s14 = sshll.u32 %s6800_s3, 4  ;;  %s6801_s18 = smov 128   ;;  %s30_s14 = int_to_ptr.vmem [resolvable:$true] %s29_s14 }
   0xe   :  { %s6802_s19 = smov 8   ;;  %s6803_s20 = smov [#allocation7]  }
   0xf   :  { %35 = dma.hbm_to_vmem [thread:$0]  %s28_s13, 512, %s30_s14, [#allocation3], %s6801_s18, %s6801_s18, %s6802_s19  }
  0x10   :  { %s55_s21 = sshll.u32 %s6803_s20, 4  ;;  %s79_s0 = sshll.u32 %s9582_s4, 4  ;;  %s56_s21 = int_to_ptr.vmem [resolvable:$true] %s55_s21  ;;  %s80_s0 = int_to_ptr.hbm [resolvable:$true] %s79_s0 }
  0x11   :  { %61 = dma.hbm_to_vmem [thread:$0]  %s54_s17, 128, %s56_s21, [#allocation6], %s6795_s25, %s6795_s25, %s6796_s26  }
  0x12   :  { %s94_s27 = sshll.u32 %s9584_s6, 4  ;;  %s6804_s28 = smov [#allocation10]   ;;  %s95_s27 = int_to_ptr.hbm [resolvable:$true] %s94_s27 }
  0x13   :  { %s81_s29 = sshll.u32 %s6804_s28, 4  ;;  %s6805_s30 = smov [#allocation11]   ;;  %s82_s29 = int_to_ptr.vmem [resolvable:$true] %s81_s29 }
  0x14   :  { %87 = dma.hbm_to_vmem [thread:$0]  %s80_s0, 512, %s82_s29, [#allocation9], %s6801_s18, %s6801_s18, %s6802_s19  }
  0x15   :  { %s96_s4 = sshll.u32 %s6805_s30, 4  ;;  %s97_s4 = int_to_ptr.vmem [resolvable:$true] %s96_s4 }
  0x16   :  { %102 = dma.hbm_to_vmem [thread:$0]  %s95_s27, 512, %s97_s4, [#allocation12], %s6801_s18, %s6801_s18, %s6802_s19  }
  0x17   :  { %6782 = dma.done.wait [#allocation3], 512  }
  0x18   :  { %6783 = vsyncadd [#allocation3], 4294966784 }
  0x19   :  { %6784 = dma.done.wait [#allocation6], 256  }
  0x1a   :  { %6785 = vsyncadd [#allocation6], 4294967040 }
  0x1b   :  { %6786 = dma.done.wait [#allocation9], 576  }
  0x1c   :  { %6787 = vsyncadd [#allocation9], 4294966720 }
  0x1d   :  { %6788 = dma.done.wait [#allocation12], 512  }
  0x1e   :  { %6789 = vsyncadd [#allocation12], 4294966784  ;;  %vm151_vm0 = vcmask 261120   ;;  %v146_v0 = vld [vmem:[#allocation10 + $0x18] sm:$0xff]  ;;  %v145_v1 = vld [vmem:[#allocation10 + $0x10] sm:$0xff]  ;;  %s6807_s13 = smov 104  }
  0x1f   :  { %v144_v2 = vld [vmem:[#allocation10 + $0x8] sm:$0xff]  ;;  %v6914_v3 = vand.u32 4294901760, %v146_v0  ;;  %v6916_v4 = vand.u32 4294901760, %v145_v1  ;;  %v143_v6 = vld [vmem:[#allocation10] sm:$0xff]  ;;  %v134_v8 = vld [vmem:[#allocation2 + $0x8] sm:$0xff]  ;;  %s6808_s3 = smov 120  }
  0x20   :  { %v6918_v5 = vand.u32 4294901760, %v144_v2  ;;  %v133_v7 = vld [vmem:[#allocation2] sm:$0xff]  ;;  %v6920_v9 = vand.u32 4294901760, %v143_v6  ;;  %v156_v11 = vsel %vm151_vm0, %v134_v8, 0  ;;  %v135_v12 = vld [vmem:[#allocation2 + $0x10] sm:$0xff]  ;;  %v136_v38 = vld [vmem:[#allocation2 + $0x18] sm:$0xff] }
  0x21   :  { %v153_v10 = vsel %vm151_vm0, %v133_v7, 0  ;;  %177 = vmatpush.msra.mxu0 %v6914_v3  ;;  %v230_v13 = vsub.f32 %v146_v0, %v6914_v3  ;;  %v236_v14 = vsub.f32 %v145_v1, %v6916_v4  ;;  %328 = vmatpush.msra.mxu3 %v6914_v3  ;;  %v6932_v18 = vand.u32 4294901760, %v156_v11  ;;  %v6322_v57 = vld [vmem:[%s9583_s5] ss:$0 sm:$0xff]  ;;  %s6806_s5 = smov 112   ;;  %s6809_s14 = smov 96  }
  0x22   :  { %v242_v15 = vsub.f32 %v144_v2, %v6918_v5  ;;  %v6929_v16 = vand.u32 4294901760, %v153_v10  ;;  %v248_v17 = vsub.f32 %v143_v6, %v6920_v9  ;;  %v159_v19 = vsel %vm151_vm0, %v135_v12, 0  ;;  %s6812_s15 = smov 24   ;;  %s6813_s16 = smov 16  }
  0x23   :  { %179 = vmatpush.msra.mxu0 %v6916_v4  ;;  %284 = vmatpush.msra.mxu2 %v230_v13  ;;  %v231_v20 = vand.u32 4294901760, %v230_v13  ;;  %v237_v22 = vand.u32 4294901760, %v236_v14  ;;  %v193_v25 = vsub.f32 %v156_v11, %v6932_v18  ;;  %v200_v31 = vand.u32 4294901760, %v159_v19  ;;  %s6120_s17 = sshll.u32 %s9589_s11, 4  ;;  %s6121_s17 = int_to_ptr.hbm [resolvable:$true] %s6120_s17 }
  0x24   :  { %v185_v21 = vsub.f32 %v153_v10, %v6929_v16  ;;  %v243_v23 = vand.u32 4294901760, %v242_v15  ;;  %330 = vmatpush.msra.mxu3 %v6916_v4  ;;  %v249_v24 = vand.u32 4294901760, %v248_v17  ;;  %v162_v42 = vsel %vm151_vm0, %v136_v38, 0 }
  0x25   :  { %181 = vmatpush.msra.mxu0 %v6918_v5  ;;  %287 = vmatpush.msra.mxu2 %v236_v14  ;;  %v232_v26 = vsub.f32 %v230_v13, %v231_v20  ;;  %v238_v28 = vsub.f32 %v236_v14, %v237_v22  ;;  %v194_v35 = vand.u32 4294901760, %v193_v25  ;;  %v201_v41 = vsub.f32 %v159_v19, %v200_v31 }
  0x26   :  { %v186_v27 = vand.u32 4294901760, %v185_v21  ;;  %v244_v29 = vsub.f32 %v242_v15, %v243_v23  ;;  %332 = vmatpush.msra.mxu3 %v6918_v5  ;;  %v250_v30 = vsub.f32 %v248_v17, %v249_v24  ;;  %v208_v45 = vand.u32 4294901760, %v162_v42 }
  0x27   :  { %183 = vmatpush.msra.mxu0 %v6920_v9  ;;  %v233_v32 = vand.u32 4294901760, %v232_v26  ;;  %290 = vmatpush.msra.mxu2 %v242_v15  ;;  %v239_v34 = vand.u32 4294901760, %v238_v28  ;;  %v195_v40 = vsub.f32 %v193_v25, %v194_v35  ;;  %v202_v44 = vand.u32 4294901760, %v201_v41 }
  0x28   :  { %v187_v33 = vsub.f32 %v185_v21, %v186_v27  ;;  %334 = vmatpush.msra.mxu3 %v6920_v9  ;;  %v245_v37 = vand.u32 4294901760, %v244_v29  ;;  %v251_v39 = vand.u32 4294901760, %v250_v30  ;;  %v209_v47 = vsub.f32 %v162_v42, %v208_v45  ;;  %v7009_v42 = vld [vmem:[#allocation5] sm:$0xf] }
  0x29   :  { %375 = vmatpush.msrb.mxu0 %v231_v20  ;;  %234 = vmatpush.msra.mxu1 %v233_v32  ;;  %v196_v43 = vand.u32 4294901760, %v195_v40  ;;  %v203_v46 = vsub.f32 %v201_v41, %v202_v44  ;;  %5537 = vst [vmem:[#allocation1] ss:$2 sm:$0xff] %v7009_v42  ;;  %vm483_vm1 = vcmask 1047556   ;;  %vm2159_vm2 = vcmask 64512  }
  0x2a   :  { %v188_v36 = vand.u32 4294901760, %v187_v33  ;;  %293 = vmatpush.msra.mxu2 %v248_v17  ;;  %338 = vmatmul.f32.vlgmr.msra.gmra.mxu3 %v186_v27  ;;  %v210_v49 = vand.u32 4294901760, %v209_v47  ;;  %vm2808_vm3 = vcmask 130048   ;;  %vm2985_vm4 = vcmask 125952  }
  0x2b   :  { %296 = vmatmul.f32.vlgmr.msra.gmra.mxu2 %v185_v21  ;;  %240 = vmatpush.msra.mxu1 %v239_v34  ;;  %v204_v48 = vand.u32 4294901760, %v203_v46  ;;  %vm4454_vm5 = vcmask 195584  }
  0x2c   :  { %189 = vmatmul.f32.vlgmr.msra.gmra.mxu0 %v188_v36  ;;  %v211_v50 = vsub.f32 %v209_v47, %v210_v49 }
  0x2d   :  { %379 = vmatpush.msrb.mxu0 %v237_v22  ;;  %246 = vmatpush.msra.mxu1 %v245_v37 }
  0x2e   :  { %v212_v51 = vand.u32 4294901760, %v211_v50 }
  0x2f   :  { %383 = vmatpush.msrb.mxu0 %v243_v23  ;;  %252 = vmatpush.msra.mxu1 %v251_v39 }
  0x30   :  { %254 = vmatmul.f32.vlgmr.msra.gmra.mxu1 %v6929_v16 }
  0x31   :  { %387 = vmatpush.msrb.mxu0 %v249_v24  ;;  %418 = vmatpush.msrb.mxu1 %v6914_v3 }
  0x32   :  { %344 = vmatmul.f32.gmra.mxu3 %v194_v35 }
  0x33   :  { %301 = vmatmul.f32.gmra.mxu2 %v193_v25  ;;  %420 = vmatpush.msrb.mxu1 %v6916_v4 }
  0x34   :  { %197 = vmatmul.f32.gmra.mxu0 %v196_v43 }
  0x35   :  { %422 = vmatpush.msrb.mxu1 %v6918_v5 }
  0x37   :  { %424 = vmatpush.msrb.mxu1 %v6920_v9 }
  0x38   :  { %258 = vmatmul.f32.gmra.mxu1 %v6932_v18 }
  0x3a   :  { %350 = vmatmul.f32.gmra.mxu3 %v202_v44 }
  0x3b   :  { %306 = vmatmul.f32.gmra.mxu2 %v201_v41 }
  0x3c   :  { %205 = vmatmul.f32.gmra.mxu0 %v204_v48 }
  0x40   :  { %262 = vmatmul.f32.gmra.mxu1 %v200_v31 }
  0x42   :  { %356 = vmatmul.f32.gmra.mxu3 %v210_v49 }
  0x43   :  { %311 = vmatmul.f32.gmra.mxu2 %v209_v47 }
  0x44   :  { %213 = vmatmul.f32.gmra.mxu0 %v212_v51 }
  0x48   :  { %266 = vmatmul.f32.gmra.mxu1 %v208_v45 }
  0x4c   :  { %389 = vmatmul.f32.vlgmr.msrb.gmra.mxu0 %v6929_v16 }
  0x50   :  { %426 = vmatmul.f32.vlgmr.msrb.gmra.mxu1 %v6929_v16 }
  0x54   :  { %393 = vmatmul.f32.gmra.mxu0 %v6932_v18 }
  0x58   :  { %430 = vmatmul.f32.gmra.mxu1 %v6932_v18 }
  0x5c   :  { %397 = vmatmul.f32.gmra.mxu0 %v200_v31 }
  0x60   :  { %434 = vmatmul.f32.gmra.mxu1 %v200_v31 }
  0x64   :  { %401 = vmatmul.f32.gmra.mxu0 %v208_v45 }
  0x68   :  { %438 = vmatmul.f32.gmra.mxu1 %v208_v45  ;;  %v7020_v45 = vld [vmem:[#allocation5 + $0x4] sm:$0xf] }
  0x69   :  { %5539 = vst [vmem:[#allocation1 + $0x1] ss:$2 sm:$0xff] %v7020_v45 }
  0xa9   :  { %v190_v52 = vpop.f32.mrf.mxu0 }
  0xaa   :  { %v191_v59 = vadd.f32 %v6322_v57, %v190_v52 }
  0xad   :  { %v255_v53 = vpop.f32.mrf.mxu1  ;;  %v339_v63 = vpop.f32.mrf.mxu3 }
  0xae   :  { %v297_v60 = vpop.f32.mrf.mxu2  ;;  %v256_v62 = vadd.f32 %v255_v53, %v191_v59  ;;  %v139_v53 = vld [vmem:[#allocation7] sm:$0xf] }
  0xb0   :  { %v298_v2 = vadd.f32 %v297_v60, %v256_v62 }
  0xb1   :  { %v198_v54 = vpop.f32.mrf.mxu0 }
  0xb2   :  { %v199_v1 = vadd.f32 %v6322_v57, %v198_v54  ;;  %v340_v5 = vadd.f32 %v339_v63, %v298_v2  ;;  %v6810_v54 = vmov 1983009808  }
  0xb5   :  { %v259_v55 = vpop.f32.mrf.mxu1  ;;  %v345_v8 = vpop.f32.mrf.mxu3 }
  0xb6   :  { %v302_v4 = vpop.f32.mrf.mxu2  ;;  %v260_v6 = vadd.f32 %v259_v55, %v199_v1  ;;  %v488_v55 = vunpack.c.l.s4 %v6810_v54 }
  0xb8   :  { %v303_v11 = vadd.f32 %v302_v4, %v260_v6  ;;  %v7071_v59 = vunpack.c.0.s8 %v488_v55  ;;  %v6811_v6 = vmov 1934713408  }
  0xb9   :  { %v206_v56 = vpop.f32.mrf.mxu0 }
  0xba   :  { %v207_v10 = vadd.f32 %v6322_v57, %v206_v56  ;;  %v346_v14 = vadd.f32 %v345_v8, %v303_v11  ;;  %v140_v56 = vld [vmem:[#allocation7 + $0x4] sm:$0xf] }
  0xbd   :  { %v263_v58 = vpop.f32.mrf.mxu1  ;;  %v351_v21 = vpop.f32.mrf.mxu3 }
  0xbe   :  { %v264_v15 = vadd.f32 %v263_v58, %v207_v10  ;;  %v307_v16 = vpop.f32.mrf.mxu2 }
  0xc0   :  { %v308_v19 = vadd.f32 %v307_v16, %v264_v15 }
  0xc1   :  { %v214_v61 = vpop.f32.mrf.mxu0 }
  0xc2   :  { %v352_v23 = vadd.f32 %v351_v21, %v308_v19  ;;  %v215_v26 = vadd.f32 %v6322_v57, %v214_v61 }
  0xc5   :  { %v267_v0 = vpop.f32.mrf.mxu1  ;;  %v357_v31 = vpop.f32.mrf.mxu3 }
  0xc6   :  { %v268_v28 = vadd.f32 %v267_v0, %v215_v26  ;;  %v312_v29 = vpop.f32.mrf.mxu2 }
  0xc8   :  { %v313_v30 = vadd.f32 %v312_v29, %v268_v28 }
  0xc9   :  { %v390_v3 = vpop.f32.mrf.mxu0 }
  0xca   :  { %v391_v7 = vadd.f32 %v390_v3, %v340_v5  ;;  %v358_v33 = vadd.f32 %v357_v31, %v313_v30 }
  0xcd   :  { %v427_v9 = vpop.f32.mrf.mxu1 }
  0xce   :  { %v6957_v12 = vadd.f32 %v427_v9, %v391_v7  ;;  %v512_v7 = vunpack.c.l.s4 %v6811_v6 }
  0xd0   :  { %458 = vrot.lane.b32.xlu2 %v6957_v12, %s6806_s5  ;;  %v485_v58 = vrot.slane %v6957_v12, 4 }
  0xd1   :  { %v394_v13 = vpop.f32.mrf.mxu0 }
  0xd2   :  { %v395_v17 = vadd.f32 %v394_v13, %v346_v14 }
  0xd5   :  { %v431_v18 = vpop.f32.mrf.mxu1 }
  0xd6   :  { %v6961_v20 = vadd.f32 %v431_v18, %v395_v17 }
  0xd8   :  { %472 = vrot.lane.b32.xlu1 %v6961_v20, %s6807_s13  ;;  %448 = vrot.lane.b32.xlu0 %v6961_v20, %s6808_s3  ;;  %v541_v0 = vrot.slane %v6961_v20, 4  ;;  %v6282_v28 = vpack.i.bf16 %v6957_v12, %v6961_v20 }
  0xd9   :  { %v398_v22 = vpop.f32.mrf.mxu0  ;;  %470 = vrot.lane.b32.xlu2 %v6957_v12, %s6807_s13 }
  0xda   :  { %v399_v24 = vadd.f32 %v398_v22, %v352_v23  ;;  %v7104_v22 = vunpack.c.0.s8 %v512_v7 }
  0xdd   :  { %v435_v25 = vpop.f32.mrf.mxu1 }
  0xde   :  { %v6969_v27 = vadd.f32 %v435_v25, %v399_v24 }
  0xe0   :  { %460 = vrot.lane.b32.xlu0 %v6961_v20, %s6806_s5  ;;  %446 = vrot.lane.b32.xlu1 %v6957_v12, %s6808_s3  ;;  %v597_v10 = vrot.slane %v6969_v27, 4 }
  0xe1   :  { %462 = vrot.lane.b32.xlu2 %v6969_v27, %s6806_s5  ;;  %v402_v32 = vpop.f32.mrf.mxu0 }
  0xe2   :  { %v403_v35 = vadd.f32 %v402_v32, %v358_v33 }
  0xe5   :  { %v439_v34 = vpop.f32.mrf.mxu1 }
  0xe6   :  { %v6983_v36 = vadd.f32 %v439_v34, %v403_v35 }
  0xe8   :  { %923 = vrot.lane.b32.xlu0 %v6957_v12, %s6809_s14  ;;  %450 = vrot.lane.b32.xlu1 %v6969_v27, %s6808_s3 }
  0xe9   :  { %474 = vrot.lane.b32.xlu2 %v6969_v27, %s6807_s13 }
  0xf0   :  { %925 = vrot.lane.b32.xlu0 %v6961_v20, %s6809_s14  ;;  %464 = vrot.lane.b32.xlu1 %v6983_v36, %s6806_s5 }
  0xf1   :  { %476 = vrot.lane.b32.xlu2 %v6983_v36, %s6807_s13 }
  0xf8   :  { %452 = vrot.lane.b32.xlu0 %v6983_v36, %s6808_s3 }
 0x12a   :  { %v6993_v37 = vpop.permute.xlu2 %458 }
 0x12b   :  { %v482_v57 = vrot.slane %v6993_v37, 4  ;;  %v486_v61 = vsel %vm483_vm1, %v6993_v37, %v485_v58 }
 0x12c   :  { %v494_v2 = vperm.slane %v486_v61, %v7071_v59 }
 0x12d   :  { %v484_v63 = vsel %vm483_vm1, %v482_v57, %v6957_v12 }
 0x12e   :  { %v490_v4 = vperm.slane %v484_v63, %v7071_v59  ;;  %v521_v14 = vrot.slane %v494_v2, 4 }
 0x130   :  { %v509_v17 = vrot.slane %v490_v4, 4 }
 0x133   :  { %v7011_v43 = vpop.permute.xlu2 %470 }
 0x134   :  { %v495_v62 = vrot.slane %v7011_v43, 4 }
 0x13b   :  { %v7025_v46 = vpop.permute.xlu2 %462 }
 0x13c   :  { %9607 = vst [vmem:[#allocation23_spill] sm:$0xff] %v7025_v46  ;;  %v595_v18 = vrot.slane %v7025_v46, 4  ;;  %v598_v19 = vsel %vm483_vm1, %v7025_v46, %v597_v10 }
 0x13d   :  { %v7113_v29 = vperm.slane %v598_v19, %v7071_v59 }
 0x13e   :  { %v596_v33 = vsel %vm483_vm1, %v595_v18, %v6969_v27 }
 0x13f   :  { %v602_v57 = vperm.slane %v596_v33, %v7071_v59 }
 0x143   :  { %v7035_v49 = vpop.permute.xlu2 %474 }
 0x144   :  { %9608 = vst [vmem:[#allocation24_spill] sm:$0xff] %v7035_v49  ;;  %v607_v34 = vrot.slane %v7035_v49, 4 }
 0x14a   :  { %v6995_v38 = vpop.permute.xlu1 %472  ;;  %v6997_v39 = vpop.permute.xlu0 %448 }
 0x14b   :  { %933 = vrot.lane.b32.xlu0 %v6997_v39, %s6809_s14  ;;  %v7047_v52 = vpop.permute.xlu2 %476  ;;  %v553_v11 = vrot.slane %v6997_v39, 4  ;;  %v551_v21 = vrot.slane %v6995_v38, 4 }
 0x14c   :  { %9609 = vst [vmem:[#allocation25_spill] sm:$0xff] %v7047_v52 }
 0x14d   :  { %v554_v24 = vsel %vm483_vm1, %v6995_v38, %v553_v11  ;;  %v552_v35 = vsel %vm483_vm1, %v551_v21, %v6997_v39  ;;  %v6297_v11 = vpack.i.bf16 %v7011_v43, %v6995_v38 }
 0x14e   :  { %v562_v12 = vperm.slane %v554_v24, %v7071_v59  ;;  %v558_v61 = vperm.slane %v552_v35, %v7071_v59 }
 0x152   :  { %v7001_v40 = vpop.permute.xlu0 %460  ;;  %v7003_v41 = vpop.permute.xlu1 %446 }
 0x153   :  { %939 = vrot.lane.b32.xlu0 %v6993_v37, %s6809_s14  ;;  %941 = vrot.lane.b32.xlu1 %v7001_v40, %s6809_s14  ;;  %v497_v60 = vrot.slane %v7003_v41, 4  ;;  %v496_v1 = vsel %vm483_vm1, %v495_v62, %v7003_v41  ;;  %v542_v5 = vsel %vm483_vm1, %v7001_v40, %v541_v0  ;;  %v6287_v9 = vpack.i.bf16 %v7001_v40, %v6997_v39 }
 0x154   :  { %931 = vrot.lane.b32.xlu2 %v7003_v41, %s6809_s14  ;;  %v502_v8 = vperm.slane %v496_v1, %v7071_v59  ;;  %v539_v15 = vrot.slane %v7001_v40, 4  ;;  %v550_v16 = vperm.slane %v542_v5, %v7071_v59  ;;  %v633_v0 = vrot.slane %v7113_v29, 4 }
 0x155   :  { %v498_v3 = vsel %vm483_vm1, %v7011_v43, %v497_v60 }
 0x156   :  { %v506_v13 = vperm.slane %v498_v3, %v7071_v59  ;;  %v507_v23 = vrot.slane %v502_v8, 4  ;;  %v510_v25 = vsel %vm483_vm1, %v502_v8, %v509_v17  ;;  %v540_v30 = vsel %vm483_vm1, %v539_v15, %v6961_v20 }
 0x157   :  { %v577_v31 = vrot.slane %v550_v16, 4  ;;  %v518_v54 = vperm.slane %v510_v25, %v7104_v22  ;;  %v546_v55 = vperm.slane %v540_v30, %v7071_v59  ;;  %v621_v8 = vrot.slane %v602_v57, 4 }
 0x158   :  { %v522_v26 = vsel %vm483_vm1, %v506_v13, %v521_v14  ;;  %v519_v32 = vrot.slane %v506_v13, 4  ;;  %v563_v13 = vrot.slane %v558_v61, 4  ;;  %v663_v14 = vrot.slane %v7047_v52, 4 }
 0x159   :  { %v530_v20 = vperm.slane %v522_v26, %v7104_v22  ;;  %v578_v39 = vsel %vm483_vm1, %v562_v12, %v577_v31  ;;  %v533_v1 = vrot.slane %v518_v54, 4  ;;  %v6292_v17 = vpack.i.bf16 %v6993_v37, %v7003_v41 }
 0x15a   :  { %v7016_v44 = vpop.permute.xlu0 %923  ;;  %v7027_v47 = vpop.permute.xlu1 %450  ;;  %v520_v58 = vsel %vm483_vm1, %v519_v32, %v494_v2  ;;  %v565_v2 = vrot.slane %v546_v55, 4  ;;  %v586_v5 = vperm.slane %v578_v39, %v7104_v22 }
 0x15b   :  { %949 = vrot.lane.b32.xlu1 %v6995_v38, %s6809_s14  ;;  %v609_v40 = vrot.slane %v7027_v47, 4  ;;  %v608_v60 = vsel %vm483_vm1, %v607_v34, %v7027_v47  ;;  %v7141_v3 = vrot.slane %v530_v20, 4  ;;  %v7147_v7 = vperm.slane %v520_v58, %v7104_v22 }
 0x15c   :  { %929 = vrot.lane.b32.xlu2 %v6983_v36, %s6809_s14  ;;  %v614_v6 = vperm.slane %v608_v60, %v7071_v59  ;;  %v534_v19 = vsel %vm483_vm1, 0.0, %v533_v1  ;;  %v7161_v24 = vrot.slane %v586_v5, 4  ;;  %v566_v41 = vsel %vm483_vm1, %v558_v61, %v565_v2 }
 0x15d   :  { %v610_v63 = vsel %vm483_vm1, %v7035_v49, %v609_v40  ;;  %v538_v21 = vsel %vm483_vm1, 0.0, %v7141_v3  ;;  %v535_v37 = vrot.slane %v7147_v7, 4  ;;  %v574_v40 = vperm.slane %v566_v41, %v7104_v22 }
 0x15e   :  { %v618_v10 = vperm.slane %v610_v63, %v7071_v59  ;;  %v622_v38 = vsel %vm483_vm1, %v614_v6, %v621_v8  ;;  %v723_v30 = vrot.slane %v538_v21, 4  ;;  %v594_v39 = vsel %vm483_vm1, 0.0, %v7161_v24 }
 0x15f   :  { %v630_v33 = vperm.slane %v622_v38, %v7104_v22  ;;  %v536_v20 = vsel %vm483_vm1, 0.0, %v535_v37 }
 0x160   :  { %v631_v34 = vrot.slane %v618_v10, 4 }
 0x161   :  { %v7193_v5 = vrot.slane %v630_v33, 4 }
 0x162   :  { %v7029_v48 = vpop.permute.xlu0 %925  ;;  %v7037_v50 = vpop.permute.xlu1 %464  ;;  %v632_v2 = vsel %vm483_vm1, %v631_v34, %v7113_v29 }
 0x163   :  { %947 = vrot.lane.b32.xlu1 %v7011_v43, %s6809_s14  ;;  %v619_v43 = vrot.slane %v614_v6, 4  ;;  %v724_v6 = vsel %vm483_vm1, %v723_v30, %v536_v20 }
 0x164   :  { %927 = vrot.lane.b32.xlu2 %v6969_v27, %s6809_s14 }
 0x165   :  { %v620_v58 = vsel %vm483_vm1, %v619_v43, %v602_v57  ;;  %v589_v57 = vrot.slane %v574_v40, 4 }
 0x166   :  { %v7205_v29 = vperm.slane %v620_v58, %v7104_v22 }
 0x168   :  { %v643_v30 = vrot.slane %v7205_v29, 4 }
 0x16a   :  { %v7039_v51 = vpop.permute.xlu0 %452 }
 0x16b   :  { %937 = vrot.lane.b32.xlu0 %v7039_v51, %s6809_s14  ;;  %945 = vrot.lane.b32.xlu1 %v7037_v50, %s6809_s14  ;;  %v664_v25 = vsel %vm483_vm1, %v663_v14, %v7039_v51  ;;  %v665_v26 = vrot.slane %v7039_v51, 4 }
 0x16c   :  { %943 = vrot.lane.b32.xlu2 %v7025_v46, %s6809_s14  ;;  %v670_v54 = vperm.slane %v664_v25, %v7071_v59 }
 0x16d   :  { %v666_v60 = vsel %vm483_vm1, %v7047_v52, %v665_v26 }
 0x173   :  { %953 = vrot.lane.b32.xlu0 %v7047_v52, %s6809_s14  ;;  %935 = vrot.lane.b32.xlu1 %v7027_v47, %s6809_s14 }
 0x174   :  { %1913 = vrot.lane.b32.xlu2 %v7009_v42, %s6807_s13 }
 0x17b   :  { %951 = vrot.lane.b32.xlu0 %v7035_v49, %s6809_s14  ;;  %1907 = vrot.lane.b32.xlu1 %v7009_v42, %s6806_s5 }
 0x17c   :  { %1915 = vrot.lane.b32.xlu2 %v7020_v45, %s6807_s13 }
 0x183   :  { %1901 = vrot.lane.b32.xlu0 %v7009_v42, %s6808_s3  ;;  %1909 = vrot.lane.b32.xlu1 %v7020_v45, %s6806_s5 }
 0x184   :  { %2043 = vrot.lane.b32.xlu2 %v139_v53, %s6807_s13 }
 0x18b   :  { %1903 = vrot.lane.b32.xlu0 %v7020_v45, %s6808_s3  ;;  %2037 = vrot.lane.b32.xlu1 %v139_v53, %s6806_s5 }
 0x18c   :  { %2045 = vrot.lane.b32.xlu2 %v140_v56, %s6807_s13 }
 0x193   :  { %2031 = vrot.lane.b32.xlu0 %v139_v53, %s6808_s3  ;;  %2039 = vrot.lane.b32.xlu1 %v140_v56, %s6806_s5  ;;  %v508_v53 = vsel %vm483_vm1, %v507_v23, %v490_v4  ;;  %v651_v4 = vrot.slane %v7037_v50, 4  ;;  %s6094_s5 = sshll.u32 %s9587_s9, 4  ;;  %s6817_s9 = smov [#allocation14]   ;;  %s6095_s5 = int_to_ptr.hbm [resolvable:$true] %s6094_s5 }
 0x194   :  { %6288 = vrot.lane.b32.xlu2 %v6287_v9, %s6795_s25  ;;  %v514_v62 = vperm.slane %v508_v53, %v7104_v22  ;;  %v575_v9 = vrot.slane %v562_v12, 4 }
 0x195   :  { %v652_v23 = vsel %vm483_vm1, %v651_v4, %v6983_v36  ;;  %v564_v4 = vsel %vm483_vm1, %v563_v13, %v546_v55 }
 0x196   :  { %v531_v15 = vrot.slane %v514_v62, 4  ;;  %v576_v18 = vsel %vm483_vm1, %v575_v9, %v550_v16  ;;  %v634_v16 = vsel %vm483_vm1, %v618_v10, %v633_v0  ;;  %v658_v31 = vperm.slane %v652_v23, %v7071_v59 }
 0x197   :  { %v582_v12 = vperm.slane %v576_v18, %v7104_v22  ;;  %v642_v53 = vperm.slane %v634_v16, %v7104_v22  ;;  %v707_v61 = vsel %vm483_vm1, %v533_v1, %v514_v62  ;;  %v674_v9 = vperm.slane %v666_v60, %v7071_v59 }
 0x198   :  { %v532_v32 = vsel %vm483_vm1, 0.0, %v531_v15  ;;  %v675_v62 = vrot.slane %v670_v54, 4  ;;  %v570_v55 = vperm.slane %v564_v4, %v7104_v22  ;;  %v7208_v15 = vperm.slane %v707_v61, %v7071_v59 }
 0x199   :  { %v7196_v8 = vrot.slane %v642_v53, 4  ;;  %v591_v10 = vrot.slane %v582_v12, 4  ;;  %v7212_v18 = vperm.slane %v632_v2, %v7104_v22  ;;  %v590_v23 = vsel %vm483_vm1, 0.0, %v589_v57 }
 0x19a   :  { %v676_v37 = vsel %vm483_vm1, %v675_v62, %v658_v31  ;;  %v687_v41 = vrot.slane %v674_v9, 4  ;;  %v718_v16 = vsel %vm483_vm1, %v7141_v3, %v7147_v7  ;;  %v587_v26 = vrot.slane %v570_v55, 4 }
 0x19b   :  { %2033 = vrot.lane.b32.xlu0 %v140_v56, %s6808_s3  ;;  %6283 = vrot.lane.b32.xlu1 %v6282_v28, %s6795_s25  ;;  %v653_v56 = vrot.slane %v6983_v36, 4  ;;  %v712_v28 = vrot.slane %v534_v19, 4  ;;  %v646_v19 = vsel %vm483_vm1, 0.0, %v7193_v5  ;;  %v650_v38 = vsel %vm483_vm1, 0.0, %v7196_v8  ;;  %s6107_s3 = sshll.u32 %s9588_s10, 4  ;;  %s6818_s10 = smov [#allocation16]   ;;  %s6108_s3 = int_to_ptr.hbm [resolvable:$true] %s6107_s3 }
 0x19c   :  { %v766_v33 = vrot.slane %v590_v23, 4  ;;  %v831_v3 = vrot.slane %v650_v38, 4  ;;  %v722_v20 = vperm.slane %v718_v16, %v7071_v59  ;;  %v588_v58 = vsel %vm483_vm1, 0.0, %v587_v26 }
 0x19d   :  { %v654_v35 = vsel %vm483_vm1, %v7037_v50, %v653_v56  ;;  %v677_v56 = vrot.slane %v658_v31, 4  ;;  %v713_v0 = vsel %vm483_vm1, %v712_v28, %v532_v32  ;;  %v592_v28 = vsel %vm483_vm1, 0.0, %v591_v10 }
 0x19e   :  { %v662_v63 = vperm.slane %v654_v35, %v7071_v59  ;;  %v7201_v14 = vperm.slane %v713_v0, %v7071_v59  ;;  %v647_v31 = vrot.slane %v7212_v18, 4  ;;  %v682_v35 = vperm.slane %v676_v37, %v7104_v22 }
 0x19f   :  { %v678_v1 = vsel %vm483_vm1, %v670_v54, %v677_v56  ;;  %v820_v54 = vrot.slane %v646_v19, 4  ;;  %v772_v60 = vsel %vm483_vm1, %v7161_v24, %v582_v12  ;;  %v761_v0 = vsel %vm483_vm1, %v589_v57, %v570_v55 }
 0x1a0   :  { %v689_v13 = vrot.slane %v662_v63, 4  ;;  %v686_v21 = vperm.slane %v678_v1, %v7104_v22  ;;  %v729_v25 = vrot.slane %v7201_v14, 4  ;;  %v688_v7 = vsel %vm483_vm1, %v687_v41, %v662_v63 }
 0x1a1   :  { %v767_v4 = vsel %vm483_vm1, %v766_v33, %v588_v58  ;;  %v644_v63 = vsel %vm483_vm1, 0.0, %v643_v30  ;;  %v7245_v2 = vperm.slane %v688_v7, %v7104_v22  ;;  %v743_v12 = vrot.slane %v722_v20, 4 }
 0x1a2   :  { %v690_v43 = vsel %vm483_vm1, %v674_v9, %v689_v13  ;;  %v701_v53 = vrot.slane %v686_v21, 4  ;;  %v776_v1 = vperm.slane %v772_v60, %v7071_v59  ;;  %v648_v10 = vsel %vm483_vm1, 0.0, %v647_v31 }
 0x1a3   :  { %6293 = vrot.lane.b32.xlu0 %v6292_v17, %s6795_s25  ;;  %6298 = vrot.lane.b32.xlu1 %v6297_v11, %s6795_s25  ;;  %v777_v11 = vrot.slane %v594_v39, 4  ;;  %v728_v17 = vperm.slane %v724_v6, %v7071_v59  ;;  %v698_v40 = vperm.slane %v690_v43, %v7104_v22  ;;  %v730_v39 = vsel %vm483_vm1, %v729_v25, %v7208_v15 }
 0x1a4   :  { %v699_v6 = vrot.slane %v682_v35, 4  ;;  %v702_v9 = vsel %vm483_vm1, 0.0, %v701_v53  ;;  %v736_v24 = vperm.slane %v730_v39, %v7104_v22  ;;  %v765_v57 = vperm.slane %v761_v0, %v7071_v59 }
 0x1a5   :  { %v741_v32 = vrot.slane %v728_v17, 4  ;;  %v778_v34 = vsel %vm483_vm1, %v777_v11, %v592_v28  ;;  %v7248_v62 = vrot.slane %v698_v40, 4  ;;  %v771_v11 = vperm.slane %v767_v4, %v7071_v59 }
 0x1a6   :  { %v782_v61 = vperm.slane %v778_v34, %v7071_v59  ;;  %v821_v13 = vsel %vm483_vm1, %v820_v54, %v644_v63  ;;  %v973_v19 = vrot.slane %v7016_v44, 4  ;;  %v874_v21 = vrot.slane %v702_v9, 4 }
 0x1a7   :  { %v742_v56 = vsel %vm483_vm1, %v741_v32, %v722_v20  ;;  %v731_v23 = vrot.slane %v7208_v15, 4  ;;  %v703_v37 = vrot.slane %v7245_v2, 4  ;;  %v706_v41 = vsel %vm483_vm1, 0.0, %v7248_v62 }
 0x1a8   :  { %v795_v55 = vrot.slane %v782_v61, 4  ;;  %v748_v38 = vperm.slane %v742_v56, %v7104_v22  ;;  %v832_v43 = vsel %vm483_vm1, %v831_v3, %v648_v10  ;;  %v700_v16 = vsel %vm483_vm1, 0.0, %v699_v6 }
 0x1a9   :  { %v1029_v25 = vrot.slane %v7029_v48, 4  ;;  %v755_v26 = vrot.slane %v736_v24, 4  ;;  %v744_v28 = vsel %vm483_vm1, %v728_v17, %v743_v12  ;;  %v825_v30 = vperm.slane %v821_v13, %v7071_v59 }
 0x1aa   :  { %v783_v32 = vrot.slane %v771_v11, 4  ;;  %v785_v15 = vrot.slane %v765_v57, 4  ;;  %v796_v33 = vsel %vm483_vm1, %v795_v55, %v776_v1  ;;  %v797_v34 = vrot.slane %v776_v1, 4 }
 0x1ab   :  { %v885_v31 = vrot.slane %v706_v41, 4  ;;  %v753_v40 = vrot.slane %v748_v38, 4  ;;  %v836_v54 = vperm.slane %v832_v43, %v7071_v59  ;;  %v875_v3 = vsel %vm483_vm1, %v874_v21, %v700_v16 }
 0x1ac   :  { %v732_v20 = vsel %vm483_vm1, %v7201_v14, %v731_v23  ;;  %v752_v17 = vperm.slane %v744_v28, %v7104_v22  ;;  %v815_v39 = vsel %vm483_vm1, %v7193_v5, %v7205_v29  ;;  %v704_v58 = vsel %vm483_vm1, 0.0, %v703_v37 }
 0x1ad   :  { %v802_v60 = vperm.slane %v796_v33, %v7104_v22  ;;  %v826_v56 = vsel %vm483_vm1, %v7196_v8, %v7212_v18  ;;  %v837_v0 = vrot.slane %v825_v30, 4  ;;  %v869_v4 = vsel %vm483_vm1, %v701_v53, %v682_v35 }
 0x1ae   :  { %v7270_v7 = vpop.permute.xlu2 %931  ;;  %v784_v63 = vsel %vm483_vm1, %v783_v32, %v765_v57  ;;  %v786_v14 = vsel %vm483_vm1, %v771_v11, %v785_v15  ;;  %v798_v6 = vsel %vm483_vm1, %v782_v61, %v797_v34  ;;  %v879_v9 = vperm.slane %v875_v3, %v7071_v59 }
 0x1af   :  { %v740_v29 = vperm.slane %v732_v20, %v7104_v22  ;;  %v819_v12 = vperm.slane %v815_v39, %v7071_v59  ;;  %v849_v1 = vrot.slane %v836_v54, 4  ;;  %v886_v8 = vsel %vm483_vm1, %v885_v31, %v704_v58 }
 0x1b0   :  { %v7294_v18 = vsel %vm483_vm1, %v748_v38, %v755_v26  ;;  %v757_v35 = vrot.slane %v752_v17, 4  ;;  %v830_v53 = vperm.slane %v826_v56, %v7071_v59  ;;  %v873_v10 = vperm.slane %v869_v4, %v7071_v59 }
 0x1b1   :  { %v790_v61 = vperm.slane %v784_v63, %v7104_v22  ;;  %v794_v57 = vperm.slane %v786_v14, %v7104_v22  ;;  %v806_v11 = vperm.slane %v798_v6, %v7104_v22  ;;  %v838_v55 = vsel %vm483_vm1, %v837_v0, %v819_v12 }
 0x1b2   :  { %v7303_v13 = vsel %vm483_vm1, %v753_v40, %v736_v24  ;;  %v807_v21 = vrot.slane %v802_v60, 4  ;;  %v7306_v23 = vperm.slane %v886_v8, %v7071_v59  ;;  %v891_v38 = vrot.slane %v879_v9, 4 }
 0x1b3   :  { %v759_v41 = vrot.slane %v740_v29, 4  ;;  %v850_v43 = vsel %vm483_vm1, %v849_v1, %v830_v53  ;;  %v880_v16 = vsel %vm483_vm1, %v7248_v62, %v7245_v2  ;;  %v839_v26 = vrot.slane %v819_v12, 4 }
 0x1b4   :  { %v844_v32 = vperm.slane %v838_v55, %v7104_v22  ;;  %v851_v15 = vrot.slane %v830_v53, 4  ;;  %v893_v24 = vrot.slane %v873_v10, 4  ;;  %v809_v33 = vrot.slane %v790_v61, 4 }
 0x1b5   :  { %v7314_v34 = vsel %vm483_vm1, %v757_v35, %v740_v29  ;;  %v811_v31 = vrot.slane %v806_v11, 4  ;;  %v813_v40 = vrot.slane %v794_v57, 4  ;;  %v856_v39 = vperm.slane %v850_v43, %v7104_v22 }
 0x1b6   :  { %v7316_v3 = vpop.permute.xlu2 %929  ;;  %v892_v2 = vsel %vm483_vm1, %v891_v38, %v873_v10  ;;  %v903_v62 = vrot.slane %v7306_v23, 4  ;;  %v7323_v58 = vsel %vm483_vm1, %v807_v21, %v790_v61  ;;  %v7326_v56 = vsel %vm483_vm1, %v752_v17, %v759_v41 }
 0x1b7   :  { %v884_v0 = vperm.slane %v880_v16, %v7071_v59  ;;  %v840_v4 = vsel %vm483_vm1, %v825_v30, %v839_v26  ;;  %v852_v14 = vsel %vm483_vm1, %v836_v54, %v851_v15  ;;  %v894_v6 = vsel %vm483_vm1, %v879_v9, %v893_v24 }
 0x1b8   :  { %v7336_v1 = vsel %vm483_vm1, %v802_v60, %v809_v33  ;;  %v7339_v17 = vsel %vm483_vm1, %v811_v31, %v794_v57  ;;  %v7342_v8 = vperm.slane %v892_v2, %v7104_v22  ;;  %v861_v54 = vrot.slane %v856_v39, 4 }
 0x1b9   :  { %v904_v9 = vsel %vm483_vm1, %v903_v62, %v884_v0  ;;  %v7351_v60 = vperm.slane %v840_v4, %v7104_v22  ;;  %v7354_v10 = vperm.slane %v852_v14, %v7104_v22  ;;  %v7357_v61 = vperm.slane %v894_v6, %v7104_v22 }
 0x1ba   :  { %v7365_v41 = vperm.slane %v904_v9, %v7104_v22  ;;  %v917_v43 = vrot.slane %v7342_v8, 4  ;;  %v905_v15 = vrot.slane %v884_v0, 4  ;;  %v985_v6 = vrot.slane %v7270_v7, 4 }
 0x1bb   :  { %v865_v2 = vrot.slane %v7354_v10, 4 }
 0x1bd   :  { %v7288_v5 = vpop.permute.xlu0 %933 }
 0x1be   :  { %v1041_v30 = vrot.slane %v7288_v5, 4 }
 0x1c5   :  { %v942_v37 = vpop.permute.xlu1 %941  ;;  %v940_v29 = vpop.permute.xlu0 %939 }
 0x1c6   :  { %v1027_v28 = vrot.slane %v942_v37, 4  ;;  %v1030_v20 = vsel %vm483_vm1, %v942_v37, %v1029_v25  ;;  %v863_v25 = vrot.slane %v844_v32, 4  ;;  %v971_v57 = vrot.slane %v940_v29, 4 }
 0x1c7   :  { %v1038_v12 = vperm.slane %v1030_v20, %v7071_v59  ;;  %v974_v16 = vsel %vm483_vm1, %v940_v29, %v973_v19  ;;  %v7378_v20 = vpop.permute.xlu2 %927 }
 0x1c8   :  { %v1028_v63 = vsel %vm483_vm1, %v1027_v28, %v7029_v48  ;;  %v7346_v48 = vsel %vm483_vm1, %v806_v11, %v813_v40  ;;  %v7361_v21 = vsel %vm483_vm1, %v856_v39, %v863_v25  ;;  %v7374_v28 = vsel %vm483_vm1, %v861_v54, %v844_v32 }
 0x1c9   :  { %v1034_v35 = vperm.slane %v1028_v63, %v7071_v59  ;;  %v1065_v38 = vrot.slane %v1038_v12, 4  ;;  %v972_v39 = vsel %vm483_vm1, %v971_v57, %v7016_v44  ;;  %v982_v32 = vperm.slane %v974_v16, %v7071_v59 }
 0x1ca   :  { %v978_v29 = vperm.slane %v972_v39, %v7071_v59 }
 0x1cb   :  { %v1053_v24 = vrot.slane %v1034_v35, 4 }
 0x1cd   :  { %v950_v53 = vpop.permute.xlu1 %949 }
 0x1ce   :  { %v1039_v55 = vrot.slane %v950_v53, 4  ;;  %v1042_v11 = vsel %vm483_vm1, %v950_v53, %v1041_v30 }
 0x1cf   :  { %v1050_v37 = vperm.slane %v1042_v11, %v7071_v59  ;;  %v1009_v11 = vrot.slane %v982_v32, 4 }
 0x1d0   :  { %v1040_v26 = vsel %vm483_vm1, %v1039_v55, %v7288_v5  ;;  %v7402_v55 = vsel %vm483_vm1, %v7306_v23, %v905_v15  ;;  %v7412_v23 = vsel %vm483_vm1, %v865_v2, %v7351_v60 }
 0x1d1   :  { %v1046_v33 = vperm.slane %v1040_v26, %v7071_v59  ;;  %v1063_v31 = vrot.slane %v1050_v37, 4  ;;  %v1066_v40 = vsel %vm483_vm1, %v1050_v37, %v1065_v38 }
 0x1d2   :  { %v1074_v19 = vperm.slane %v1066_v40, %v7104_v22 }
 0x1d3   :  { %v1051_v62 = vrot.slane %v1046_v33, 4  ;;  %v1054_v0 = vsel %vm483_vm1, %v1046_v33, %v1053_v24  ;;  %v1064_v4 = vsel %vm483_vm1, %v1063_v31, %v1038_v12  ;;  %v7398_v12 = vsel %vm483_vm1, %v7365_v41, %v917_v43 }
 0x1d4   :  { %v1062_v63 = vperm.slane %v1054_v0, %v7104_v22  ;;  %v1070_v25 = vperm.slane %v1064_v4, %v7104_v22  ;;  %v1081_v14 = vrot.slane %v1074_v19, 4  ;;  %v997_v31 = vrot.slane %v978_v29, 4 }
 0x1d5   :  { %v1052_v30 = vsel %vm483_vm1, %v1051_v62, %v1034_v35  ;;  %v948_v54 = vpop.permute.xlu1 %947  ;;  %v1141_v0 = vrot.slane %v7316_v3, 4 }
 0x1d6   :  { %v1058_v53 = vperm.slane %v1052_v30, %v7104_v22  ;;  %v1077_v57 = vrot.slane %v1062_v63, 4  ;;  %v1079_v38 = vrot.slane %v1070_v25, 4  ;;  %v983_v37 = vrot.slane %v948_v54, 4  ;;  %v944_v30 = vpop.permute.xlu2 %943 }
 0x1d7   :  { %v986_v16 = vsel %vm483_vm1, %v948_v54, %v985_v6  ;;  %v1082_v24 = vsel %vm483_vm1, 0.0, %v1081_v14 }
 0x1d8   :  { %v1075_v35 = vrot.slane %v1058_v53, 4  ;;  %v1078_v26 = vsel %vm483_vm1, 0.0, %v1077_v57  ;;  %v994_v33 = vperm.slane %v986_v16, %v7071_v59  ;;  %v984_v43 = vsel %vm483_vm1, %v983_v37, %v7270_v7 }
 0x1d9   :  { %v1254_v40 = vrot.slane %v1078_v26, 4  ;;  %v990_v15 = vperm.slane %v984_v43, %v7071_v59  ;;  %v1265_v4 = vrot.slane %v1082_v24, 4  ;;  %v1080_v7 = vsel %vm483_vm1, 0.0, %v1079_v38 }
 0x1da   :  { %v1007_v39 = vrot.slane %v994_v33, 4  ;;  %v1010_v19 = vsel %vm483_vm1, %v994_v33, %v1009_v11  ;;  %v1076_v62 = vsel %vm483_vm1, 0.0, %v1075_v35  ;;  %v1249_v24 = vsel %vm483_vm1, %v1077_v57, %v1058_v53 }
 0x1db   :  { %v1018_v63 = vperm.slane %v1010_v19, %v7104_v22  ;;  %v1255_v6 = vsel %vm483_vm1, %v1254_v40, %v1076_v62  ;;  %v995_v54 = vrot.slane %v990_v15, 4  ;;  %v998_v2 = vsel %vm483_vm1, %v990_v15, %v997_v31 }
 0x1dc   :  { %v1008_v37 = vsel %vm483_vm1, %v1007_v39, %v982_v32  ;;  %v1006_v16 = vperm.slane %v998_v2, %v7104_v22  ;;  %v1085_v43 = vrot.slane %v7378_v20, 4  ;;  %v7429_v38 = vperm.slane %v1255_v6, %v7071_v59 }
 0x1dd   :  { %v1014_v11 = vperm.slane %v1008_v37, %v7104_v22  ;;  %v1025_v35 = vrot.slane %v1018_v63, 4  ;;  %v938_v26 = vpop.permute.xlu0 %937  ;;  %v946_v33 = vpop.permute.xlu1 %945  ;;  %v996_v40 = vsel %vm483_vm1, %v995_v54, %v978_v29  ;;  %v1260_v15 = vsel %vm483_vm1, %v1081_v14, %v1070_v25 }
 0x1de   :  { %v1139_v19 = vrot.slane %v946_v33, 4  ;;  %v1002_v31 = vperm.slane %v996_v40, %v7104_v22  ;;  %v1021_v32 = vrot.slane %v1006_v16, 4  ;;  %v1266_v39 = vsel %vm483_vm1, %v1265_v4, %v1080_v7 }
 0x1df   :  { %v1083_v62 = vrot.slane %v944_v30, 4  ;;  %v1026_v63 = vsel %vm483_vm1, 0.0, %v1025_v35  ;;  %v1142_v53 = vsel %vm483_vm1, %v946_v33, %v1141_v0  ;;  %v7437_v57 = vperm.slane %v1249_v24, %v7071_v59 }
 0x1e0   :  { %v1019_v29 = vrot.slane %v1002_v31, 4  ;;  %v1022_v54 = vsel %vm483_vm1, 0.0, %v1021_v32  ;;  %v1023_v6 = vrot.slane %v1014_v11, 4  ;;  %v1140_v2 = vsel %vm483_vm1, %v1139_v19, %v7316_v3 }
 0x1e1   :  { %v1200_v37 = vrot.slane %v1022_v54, 4  ;;  %v7443_v25 = vperm.slane %v1260_v15, %v7071_v59  ;;  %v7446_v14 = vperm.slane %v1266_v39, %v7071_v59  ;;  %v1271_v4 = vrot.slane %v7429_v38, 4 }
 0x1e2   :  { %v1211_v0 = vrot.slane %v1026_v63, 4  ;;  %v1153_v7 = vrot.slane %v938_v26, 4  ;;  %v1150_v16 = vperm.slane %v1142_v53, %v7071_v59  ;;  %v1020_v33 = vsel %vm483_vm1, 0.0, %v1019_v29 }
 0x1e3   :  { %v7452_v24 = vperm.slane %v1140_v2, %v7071_v59  ;;  %v1272_v3 = vsel %vm483_vm1, %v1271_v4, %v7437_v57  ;;  %v1283_v40 = vrot.slane %v7446_v14, 4  ;;  %v1201_v19 = vsel %vm483_vm1, %v1200_v37, %v1020_v33 }
 0x1e4   :  { %v1084_v15 = vsel %vm483_vm1, %v1083_v62, %v7378_v20  ;;  %v1086_v39 = vsel %vm483_vm1, %v944_v30, %v1085_v43  ;;  %v1024_v63 = vsel %vm483_vm1, 0.0, %v1023_v6  ;;  %v1278_v53 = vperm.slane %v1272_v3, %v7104_v22 }
 0x1e5   :  { %v954_v29 = vpop.permute.xlu0 %953  ;;  %v936_v54 = vpop.permute.xlu1 %935  ;;  %v1284_v2 = vsel %vm483_vm1, %v1283_v40, %v7443_v25  ;;  %v7467_v9 = vperm.slane %v1201_v19, %v7071_v59  ;;  %v1165_v43 = vrot.slane %v7452_v24, 4  ;;  %v1177_v62 = vrot.slane %v1150_v16, 4 }
 0x1e6   :  { %v1151_v44 = vrot.slane %v954_v29, 4  ;;  %v1154_v4 = vsel %vm483_vm1, %v954_v29, %v1153_v7  ;;  %v1290_v37 = vperm.slane %v1284_v2, %v7104_v22  ;;  %v1297_v30 = vrot.slane %v1278_v53, 4  ;;  %v7476_v29 = vpop.permute.xlu2 %1913 }
 0x1e7   :  { %v1162_v20 = vperm.slane %v1154_v4, %v7071_v59  ;;  %v1212_v33 = vsel %vm483_vm1, %v1211_v0, %v1024_v63  ;;  %v1195_v19 = vsel %vm483_vm1, %v1021_v32, %v1002_v31  ;;  %v1206_v4 = vsel %vm483_vm1, %v1025_v35, %v1014_v11 }
 0x1e8   :  { %v1152_v6 = vsel %vm483_vm1, %v1151_v44, %v938_v26  ;;  %v1295_v3 = vrot.slane %v1290_v37, 4  ;;  %v1298_v2 = vsel %vm483_vm1, %v1290_v37, %v1297_v30  ;;  %v7481_v5 = vperm.slane %v1212_v33, %v7071_v59 }
 0x1e9   :  { %v1158_v40 = vperm.slane %v1152_v6, %v7071_v59  ;;  %v1175_v7 = vrot.slane %v1162_v20, 4  ;;  %v1217_v49 = vrot.slane %v7467_v9, 4  ;;  %v7485_v44 = vperm.slane %v1086_v39, %v7071_v59  ;;  %6149 = vmatpush.xpose.msk.msrb.mxu3 %vm2159_vm2, %v1298_v2 }
 0x1ea   :  { %v1296_v26 = vsel %vm483_vm1, %v1295_v3, %v1278_v53  ;;  %v1178_v0 = vsel %vm483_vm1, %v1162_v20, %v1177_v62  ;;  %v7492_v31 = vperm.slane %v7402_v55, %v7104_v22  ;;  %v7495_v11 = vperm.slane %v1084_v15, %v7071_v59 }
 0x1eb   :  { %v1285_v35 = vrot.slane %v7443_v25, 4  ;;  %6145 = vmatpush.xpose.msk.msrb.mxu2 %vm2159_vm2, %v1296_v26  ;;  %v1166_v32 = vsel %vm483_vm1, %v1158_v40, %v1165_v43  ;;  %v7501_v39 = vperm.slane %v1195_v19, %v7071_v59  ;;  %v1273_v63 = vrot.slane %v7437_v57, 4 }
 0x1ec   :  { %v1176_v53 = vsel %vm483_vm1, %v1175_v7, %v1150_v16  ;;  %v7506_v37 = vperm.slane %v1206_v4, %v7071_v59  ;;  %v1229_v55 = vrot.slane %v7481_v5, 4  ;;  %v1163_v20 = vrot.slane %v1158_v40, 4 }
 0x1ed   :  { %v952_v15 = vpop.permute.xlu0 %951  ;;  %v1186_v25 = vperm.slane %v1178_v0, %v7104_v22  ;;  %v1218_v30 = vsel %vm483_vm1, %v1217_v49, %v7501_v39  ;;  %v1908_v43 = vpop.permute.xlu1 %1907  ;;  %v9610_v62 = vrot.slane %v7351_v60, 4  ;;  %v1121_v16 = vrot.slane %v7485_v44, 4 }
 0x1ee   :  { %v1174_v6 = vperm.slane %v1166_v32, %v7104_v22  ;;  %v1230_v33 = vsel %vm483_vm1, %v1229_v55, %v7506_v37  ;;  %v1095_v3 = vrot.slane %v952_v15, 4  ;;  %v1109_v40 = vrot.slane %v7495_v11, 4 }
 0x1ef   :  { %v7516_v57 = vsel %vm483_vm1, %v7354_v10, %v9610_v62  ;;  %v1182_v7 = vperm.slane %v1176_v53, %v7104_v22  ;;  %v1097_v49 = vrot.slane %v936_v54, 4  ;;  %v1286_v60 = vsel %vm483_vm1, %v7446_v14, %v1285_v35 }
 0x1f0   :  { %v1224_v19 = vperm.slane %v1218_v30, %v7104_v22  ;;  %v1236_v10 = vperm.slane %v1230_v33, %v7104_v22  ;;  %v1096_v2 = vsel %vm483_vm1, %v1095_v3, %v936_v54  ;;  %v1274_v4 = vsel %vm483_vm1, %v7429_v38, %v1273_v63  ;;  %v7537_v30 = vpop.permute.xlu2 %1915 }
 0x1f1   :  { %v1164_v26 = vsel %vm483_vm1, %v1163_v20, %v7452_v24  ;;  %v1193_v0 = vrot.slane %v1186_v25, 4  ;;  %v1098_v32 = vsel %vm483_vm1, %v952_v15, %v1097_v49  ;;  %v1102_v53 = vperm.slane %v1096_v2, %v7071_v59 }
 0x1f2   :  { %v1189_v55 = vrot.slane %v1174_v6, 4  ;;  %v1241_v62 = vrot.slane %v1236_v10, 4  ;;  %v1106_v14 = vperm.slane %v1098_v32, %v7071_v59  ;;  %v1294_v35 = vperm.slane %v1286_v60, %v7104_v22 }
 0x1f3   :  { %v1282_v54 = vperm.slane %v1274_v4, %v7104_v22  ;;  %v9611_v38 = vrot.slane %v7365_v41, 4  ;;  %v9612_v15 = vrot.slane %v7357_v61, 4  ;;  %v1170_v25 = vperm.slane %v1164_v26, %v7104_v22 }
 0x1f4   :  { %v1242_v6 = vsel %vm483_vm1, %v1241_v62, %v1224_v19  ;;  %v1110_v33 = vsel %vm483_vm1, %v1102_v53, %v1109_v40  ;;  %v1122_v3 = vsel %vm483_vm1, %v1106_v14, %v1121_v16  ;;  %v1191_v49 = vrot.slane %v1182_v7, 4 }
 0x1f5   :  { %v7544_v24 = vsel %vm483_vm1, %v9611_v38, %v7342_v8  ;;  %v7551_v20 = vsel %vm483_vm1, %v7492_v31, %v9612_v15  ;;  %v1902_v41 = vpop.permute.xlu0 %1901  ;;  %v1194_v8 = vsel %vm483_vm1, 0.0, %v1193_v0  ;;  %6146 = vmatpush.xpose.msk.msrb.mxu2 %vm2159_vm2, %v1242_v6  ;;  %v1299_v60 = vrot.slane %v1294_v35, 4  ;;  %v1910_v63 = vpop.permute.xlu1 %1909 }
 0x1f6   :  { %v1919_v2 = vrot.slane %v1908_v43, 4  ;;  %v1190_v4 = vsel %vm483_vm1, 0.0, %v1189_v55  ;;  %v1107_v32 = vrot.slane %v1102_v53, 4  ;;  %v1119_v38 = vrot.slane %v1106_v14, 4 }
 0x1f7   :  { %v1243_v15 = vrot.slane %v1224_v19, 4  ;;  %v1368_v26 = vsel %vm483_vm1, %v1193_v0, %v1182_v7  ;;  %v1118_v62 = vperm.slane %v1110_v33, %v7104_v22  ;;  %v1130_v40 = vperm.slane %v1122_v3, %v7104_v22 }
 0x1f8   :  { %v1300_v16 = vsel %vm483_vm1, %v1299_v60, %v1282_v54  ;;  %v1925_v52 = vrot.slane %v7476_v29, 4  ;;  %v1953_v6 = vrot.slane %v7537_v30, 4  ;;  %v1187_v46 = vrot.slane %v1170_v25, 4  ;;  %6147 = vmatmul.msk.f32.vlgmr.msrb.gmra.mxu2 %vm2159_vm2, %v7303_v13 }
 0x1f9   :  { %6153 = vmatpush.xpose.msk.msra.mxu2 %vm2159_vm2, %v1300_v16  ;;  %v1244_v43 = vsel %vm483_vm1, %v1236_v10, %v1243_v15  ;;  %v1192_v19 = vsel %vm483_vm1, 0.0, %v1191_v49  ;;  %v1362_v53 = vrot.slane %v1190_v4, 4  ;;  %v1373_v7 = vrot.slane %v1194_v8, 4 }
 0x1fa   :  { %v1920_v0 = vsel %vm483_vm1, %v1919_v2, %v7009_v42  ;;  %6150 = vmatpush.xpose.msk.msrb.mxu3 %vm2159_vm2, %v1244_v43  ;;  %v7575_v29 = vperm.slane %v1368_v26, %v7071_v59  ;;  %v1108_v14 = vsel %vm483_vm1, %v1107_v32, %v7495_v11  ;;  %v1120_v10 = vsel %vm483_vm1, %v1119_v38, %v7485_v44 }
 0x1fb   :  { %v1301_v33 = vrot.slane %v1282_v54, 4  ;;  %v7581_v3 = vrot.slane %v1118_v62, 4  ;;  %v1137_v49 = vrot.slane %v1130_v40, 4  ;;  %v1219_v42 = vrot.slane %v7501_v39, 4  ;;  %v7592_v54 = vpop.permute.xlu2 %2043 }
 0x1fc   :  { %v1231_v8 = vrot.slane %v7506_v37, 4  ;;  %v7586_v60 = vperm.slane %v1920_v0, %v7071_v59  ;;  %v1947_v11 = vrot.slane %v1910_v63, 4  ;;  %v1188_v4 = vsel %vm483_vm1, 0.0, %v1187_v46 }
 0x1fd   :  { %v1302_v2 = vsel %vm483_vm1, %v1294_v35, %v1301_v33  ;;  %6151 = vmatmul.msk.f32.vlgmr.msrb.gmra.mxu3 %vm2159_vm2, %v7294_v18  ;;  %v1904_v44 = vpop.permute.xlu0 %1903  ;;  %v1220_v39 = vsel %vm483_vm1, %v7467_v9, %v1219_v42  ;;  %v1357_v32 = vsel %vm483_vm1, %v1189_v55, %v1170_v25  ;;  %v1363_v35 = vsel %vm483_vm1, %v1362_v53, %v1188_v4  ;;  %v2038_v53 = vpop.permute.xlu1 %2037 }
 0x1fe   :  { %6157 = vmatpush.xpose.msk.msra.mxu3 %vm2159_vm2, %v1302_v2  ;;  %v1232_v37 = vsel %vm483_vm1, %v7481_v5, %v1231_v8  ;;  %v1374_v38 = vsel %vm483_vm1, %v1373_v7, %v1192_v19  ;;  %v1114_v63 = vperm.slane %v1108_v14, %v7104_v22  ;;  %v1228_v46 = vperm.slane %v1220_v39, %v7104_v22 }
 0x1ff   :  { %v1240_v15 = vperm.slane %v1232_v37, %v7104_v22  ;;  %v1126_v26 = vperm.slane %v1120_v10, %v7104_v22  ;;  %v1926_v62 = vsel %vm483_vm1, %v1925_v52, %v1902_v41  ;;  %v1361_v9 = vperm.slane %v1357_v32, %v7071_v59 }
 0x200   :  { %v1367_v5 = vperm.slane %v1363_v35, %v7071_v59  ;;  %v1134_v55 = vsel %vm483_vm1, 0.0, %v7581_v3  ;;  %v1247_v40 = vrot.slane %v1228_v46, 4  ;;  %v1948_v16 = vsel %vm483_vm1, %v1947_v11, %v7020_v45  ;;  %6148 = vmatmul.msk.f32.gmra.mxu2 %vm2159_vm2, %v7323_v58 }
 0x201   :  { %v1245_v25 = vrot.slane %v1240_v15, 4  ;;  %v7614_v43 = vsel %vm483_vm1, 0.0, %v1137_v49  ;;  %v1933_v19 = vrot.slane %v7586_v60, 4  ;;  %v1378_v52 = vperm.slane %v1374_v38, %v7071_v59 }
 0x202   :  { %v1381_v41 = vrot.slane %v1361_v9, 4  ;;  %v1248_v0 = vsel %vm483_vm1, %v1240_v15, %v1247_v40  ;;  %v1930_v14 = vperm.slane %v1926_v62, %v7071_v59  ;;  %v1393_v45 = vrot.slane %v7575_v29, 4 }
 0x203   :  { %v1246_v7 = vsel %vm483_vm1, %v1245_v25, %v1228_v46  ;;  %v1131_v10 = vrot.slane %v1114_v63, 4  ;;  %v1135_v33 = vrot.slane %v1126_v26, 4  ;;  %6158 = vmatpush.xpose.msk.msra.mxu3 %vm2159_vm2, %v1248_v0  ;;  %v1952_v42 = vperm.slane %v1948_v16, %v7071_v59 }
 0x204   :  { %6154 = vmatpush.xpose.msk.msra.mxu2 %vm2159_vm2, %v1246_v7  ;;  %v1382_v8 = vsel %vm483_vm1, %v1367_v5, %v1381_v41  ;;  %v1308_v2 = vrot.slane %v1134_v55, 4  ;;  %v1314_v11 = vsel %vm483_vm1, %v1137_v49, %v1126_v26  ;;  %v1394_v39 = vsel %vm483_vm1, %v1378_v52, %v1393_v45  ;;  %v7641_v55 = vpop.permute.xlu2 %2045 }
 0x205   :  { %6152 = vmatmul.msk.f32.gmra.mxu3 %vm2159_vm2, %v7336_v1  ;;  %v1390_v4 = vperm.slane %v1382_v8, %v7104_v22  ;;  %v1319_v37 = vrot.slane %v7614_v43, 4  ;;  %v1402_v32 = vperm.slane %v1394_v39, %v7104_v22  ;;  %v1379_v35 = vrot.slane %v1367_v5, 4  ;;  %v7639_v26 = vpop.permute.xlu0 %2031  ;;  %v7660_v8 = vld [vmem:[#allocation7] sm:$0xf]  ;;  %v7666_v39 = vpop.permute.xlu1 %2039 }
 0x206   :  { %v1391_v38 = vrot.slane %v1378_v52, 4  ;;  %v1931_v46 = vrot.slane %v1930_v14, 4  ;;  %v1934_v15 = vsel %vm483_vm1, %v1930_v14, %v1933_v19  ;;  %v1954_v49 = vsel %vm483_vm1, %v1953_v6, %v1904_v44  ;;  %9613 = vst [vmem:[#allocation26_spill] sm:$0xff] %v7660_v8 }
 0x207   :  { %v1409_v62 = vrot.slane %v1390_v4, 4  ;;  %v1961_v25 = vrot.slane %v1952_v42, 4  ;;  %v1407_v40 = vrot.slane %v1402_v32, 4  ;;  %v1380_v16 = vsel %vm483_vm1, %v1379_v35, %v1361_v9 }
 0x208   :  { %v1392_v5 = vsel %vm483_vm1, %v1391_v38, %v7575_v29  ;;  %v1386_v43 = vperm.slane %v1380_v16, %v7104_v22  ;;  %v1958_v30 = vperm.slane %v1954_v49, %v7071_v59  ;;  %v2049_v44 = vrot.slane %v2038_v53, 4  ;;  %6155 = vmatmul.msk.f32.vlgmr.msra.gmra.mxu2 %vm2159_vm2, %v7314_v34 }
 0x209   :  { %v1398_v19 = vperm.slane %v1392_v5, %v7104_v22  ;;  %v1410_v52 = vsel %vm483_vm1, %v1402_v32, %v1409_v62  ;;  %v1408_v6 = vsel %vm483_vm1, %v1407_v40, %v1390_v4  ;;  %v1132_v9 = vsel %vm483_vm1, 0.0, %v1131_v10 }
 0x20a   :  { %6173 = vmatpush.xpose.msk.msrb.mxu3 %vm2159_vm2, %v1410_v52  ;;  %v1303_v29 = vsel %vm483_vm1, %v7581_v3, %v1114_v63  ;;  %v1136_v41 = vsel %vm483_vm1, 0.0, %v1135_v33  ;;  %v1318_v7 = vperm.slane %v1314_v11, %v7071_v59  ;;  %6169 = vmatpush.xpose.msk.msrb.mxu2 %vm2159_vm2, %v1408_v6  ;;  %v1405_v14 = vrot.slane %v1386_v43, 4 }
 0x20b   :  { %v1403_v0 = vrot.slane %v1398_v19, 4  ;;  %v1959_v45 = vrot.slane %v1958_v30, 4  ;;  %v2050_v53 = vsel %vm483_vm1, %v2049_v44, %v7660_v8  ;;  %v1307_v4 = vperm.slane %v1303_v29, %v7071_v59 }
 0x20c   :  { %v1309_v10 = vsel %vm483_vm1, %v1308_v2, %v1132_v9  ;;  %v1942_v3 = vperm.slane %v1934_v15, %v7104_v22  ;;  %v1962_v33 = vsel %vm483_vm1, %v1958_v30, %v1961_v25  ;;  %v1406_v11 = vsel %vm483_vm1, %v1398_v19, %v1405_v14 }
 0x20d   :  { %v1404_v63 = vsel %vm483_vm1, %v1403_v0, %v1386_v43  ;;  %6159 = vmatmul.msk.f32.vlgmr.msra.gmra.mxu3 %vm2159_vm2, %v7326_v56  ;;  %v1932_v32 = vsel %vm483_vm1, %v1931_v46, %v7586_v60  ;;  %6165 = vmatpush.xpose.msk.msra.mxu1 %vm2159_vm2, %v1406_v11  ;;  %v1313_v2 = vperm.slane %v1309_v10, %v7071_v59  ;;  %v1327_v62 = vrot.slane %v1307_v4, 4 }
 0x20e   :  { %6161 = vmatpush.xpose.msk.msra.mxu0 %vm2159_vm2, %v1404_v63  ;;  %v1320_v35 = vsel %vm483_vm1, %v1319_v37, %v1136_v41  ;;  %v2054_v38 = vperm.slane %v2050_v53, %v7071_v59  ;;  %v1339_v49 = vrot.slane %v1318_v7, 4  ;;  %v2055_v25 = vrot.slane %v7592_v54, 4  ;;  %v7688_v37 = vpop.permute.xlu0 %2033  ;;  %v7696_v54 = vpop.permute.xlu2 %6288 }
 0x20f   :  { %v1324_v15 = vperm.slane %v1320_v35, %v7071_v59  ;;  %v1960_v40 = vsel %vm483_vm1, %v1959_v45, %v1952_v42  ;;  %v1970_v60 = vperm.slane %v1962_v33, %v7104_v22  ;;  %v1325_v46 = vrot.slane %v1313_v2, 4 }
 0x210   :  { %v1938_v16 = vperm.slane %v1932_v32, %v7104_v22  ;;  %v1328_v5 = vsel %vm483_vm1, %v1313_v2, %v1327_v62  ;;  %v9614_v19 = vrot.slane %v7492_v31, 4  ;;  %v1945_v42 = vrot.slane %v1942_v3, 4  ;;  %6156 = vmatmul.msk.f32.gmra.mxu2 %vm2159_vm2, %v7339_v17  ;;  %v7715_v2 = vpop.permute.xlu1 %6283 }
 0x211   :  { %v1340_v43 = vsel %vm483_vm1, %v1324_v15, %v1339_v49  ;;  %v1336_v30 = vperm.slane %v1328_v5, %v7104_v22  ;;  %v1326_v44 = vsel %vm483_vm1, %v1325_v46, %v1307_v4  ;;  %v1966_v9 = vperm.slane %v1960_v40, %v7104_v22 }
 0x212   :  { %v7694_v52 = vsel %vm483_vm1, %v9614_v19, %v7357_v61  ;;  %v1348_v6 = vperm.slane %v1340_v43, %v7104_v22  ;;  %v2063_v29 = vrot.slane %v2054_v38, 4  ;;  %v1332_v31 = vperm.slane %v1326_v44, %v7104_v22 }
 0x213   :  { %v1337_v41 = vrot.slane %v1324_v15, 4  ;;  %v1973_v61 = vrot.slane %v1970_v60, 4  ;;  %v1355_v14 = vrot.slane %v1336_v30, 4  ;;  %v2056_v45 = vsel %vm483_vm1, %v2055_v25, %v7639_v26 }
 0x214   :  { %v1353_v0 = vrot.slane %v1348_v6, 4  ;;  %v6291_v53 = vunpack.i.h.bf16 %v7696_v54  ;;  %v2060_v4 = vperm.slane %v2056_v45, %v7071_v59  ;;  %v1351_v3 = vrot.slane %v1332_v31, 4 }
 0x215   :  { %v1338_v10 = vsel %vm483_vm1, %v1337_v41, %v1318_v7  ;;  %6160 = vmatmul.msk.f32.gmra.mxu3 %vm2159_vm2, %v7346_v48  ;;  %v1943_v63 = vrot.slane %v1938_v16, 4  ;;  %v1356_v32 = vsel %vm483_vm1, %v1348_v6, %v1355_v14  ;;  %v1946_v26 = vsel %vm483_vm1, 0.0, %v1945_v42 }
 0x216   :  { %v1354_v33 = vsel %vm483_vm1, %v1353_v0, %v1336_v30  ;;  %v1344_v11 = vperm.slane %v1338_v10, %v7104_v22  ;;  %v1971_v35 = vrot.slane %v1966_v9, 4  ;;  %6174 = vmatpush.xpose.msk.msrb.mxu3 %vm2159_vm2, %v1356_v32  ;;  %v2061_v7 = vrot.slane %v2060_v4, 4  ;;  %v7741_v41 = vpop.permute.xlu0 %6293 }
 0x217   :  { %6170 = vmatpush.xpose.msk.msrb.mxu2 %vm2159_vm2, %v1354_v33  ;;  %v2064_v15 = vsel %vm483_vm1, %v2060_v4, %v2063_v29  ;;  %v1974_v62 = vsel %vm483_vm1, 0.0, %v1973_v61  ;;  %v6290_v60 = vunpack.i.l.bf16 %v7696_v54  ;;  %v1975_v46 = vsel %vm483_vm1, %v1945_v42, %v1938_v16 }
 0x218   :  { %v1349_v49 = vrot.slane %v1344_v11, 4  ;;  %v2072_v25 = vperm.slane %v2064_v15, %v7104_v22  ;;  %v1352_v40 = vsel %vm483_vm1, %v1344_v11, %v1351_v3  ;;  %v2062_v5 = vsel %vm483_vm1, %v2061_v7, %v2054_v38 }
 0x219   :  { %6166 = vmatpush.xpose.msk.msra.mxu1 %vm2159_vm2, %v1352_v40  ;;  %v6285_v43 = vunpack.i.l.bf16 %v7715_v2  ;;  %v1980_v19 = vrot.slane %v1946_v26, 4  ;;  %v2068_v6 = vperm.slane %v2062_v5, %v7104_v22  ;;  %v1515_v29 = vrot.slane %v6291_v53, 4 }
 0x21a   :  { %6186 = vmatpush.xpose.msk.msra.mxu3 %vm2159_vm2, %v7346_v48  ;;  %v1350_v30 = vsel %vm483_vm1, %v1349_v49, %v1332_v31  ;;  %v2075_v44 = vrot.slane %v2072_v25, 4  ;;  %6171 = vmatmul.msk.f32.vlgmr.msrb.gmra.mxu2 %vm2159_vm2, %v7412_v23  ;;  %v1944_v16 = vsel %vm483_vm1, 0.0, %v1943_v63  ;;  %v2007_v38 = vrot.slane %v1974_v62, 4  ;;  %v6299_v49 = vpop.permute.xlu1 %6298 }
 0x21b   :  { %6183 = vmatpush.xpose.msk.msra.mxu2 %vm2159_vm2, %v7339_v17  ;;  %6162 = vmatpush.xpose.msk.msra.mxu0 %vm2159_vm2, %v1350_v30  ;;  %v1517_v42 = vrot.slane %v6285_v43, 4  ;;  %v1972_v31 = vsel %vm483_vm1, 0.0, %v1971_v35  ;;  %v2002_v0 = vsel %vm483_vm1, %v1973_v61, %v1966_v9  ;;  %v2073_v14 = vrot.slane %v2068_v6, 4 }
 0x21c   :  { %v2076_v45 = vsel %vm483_vm1, 0.0, %v2075_v44  ;;  %v1529_v10 = vrot.slane %v6290_v60, 4  ;;  %v7753_v4 = vperm.slane %v1975_v46, %v7071_v59  ;;  %6167 = vmatmul.msk.f32.vlgmr.msra.gmra.mxu1 %vm2159_vm2, %v7361_v21  ;;  %v6286_v9 = vunpack.i.h.bf16 %v7715_v2 }
 0x21d   :  { %6180 = vmatpush.xpose.msk.msrb.mxu1 %vm2159_vm2, %v7336_v1  ;;  %v1516_v61 = vsel %vm483_vm1, %v1515_v29, %v6285_v43  ;;  %v1981_v3 = vsel %vm483_vm1, %v1980_v19, %v1944_v16  ;;  %v2110_v63 = vrot.slane %v2076_v45, 4  ;;  %v1518_v33 = vsel %vm483_vm1, %v6291_v53, %v1517_v42  ;;  %6175 = vmatmul.msk.f32.vlgmr.msrb.gmra.mxu3 %vm2159_vm2, %v7516_v57 }
 0x21e   :  { %6187 = vmatpush.xpose.msk.msra.mxu3 %vm2159_vm2, %v7326_v56  ;;  %6163 = vmatmul.msk.f32.vlgmr.msra.gmra.mxu0 %vm2159_vm2, %v7374_v28  ;;  %v6296_v11 = vunpack.i.h.bf16 %v7741_v41  ;;  %v7769_v32 = vperm.slane %v2002_v0, %v7071_v59  ;;  %v2008_v2 = vsel %vm483_vm1, %v2007_v38, %v1972_v31  ;;  %v2074_v26 = vsel %vm483_vm1, 0.0, %v2073_v14 }
 0x21f   :  { %6177 = vmatpush.xpose.msk.msrb.mxu0 %vm2159_vm2, %v7323_v58  ;;  %6184 = vmatpush.xpose.msk.msra.mxu2 %vm2159_vm2, %v7314_v34  ;;  %v2105_v35 = vsel %vm483_vm1, %v2075_v44, %v2068_v6  ;;  %v1988_v7 = vrot.slane %v7753_v4, 4  ;;  %v7782_v53 = vperm.slane %v1516_v61, %v7071_v59  ;;  %v7785_v15 = vperm.slane %v1518_v33, %v7071_v59 }
 0x220   :  { %v1459_v62 = vrot.slane %v6296_v11, 4  ;;  %v7790_v25 = vperm.slane %v1981_v3, %v7071_v59  ;;  %v2015_v40 = vrot.slane %v7769_v32, 4  ;;  %v1461_v46 = vrot.slane %v6286_v9, 4 }
 0x221   :  { %6181 = vmatpush.xpose.msk.msrb.mxu1 %vm2159_vm2, %v7294_v18  ;;  %v6295_v5 = vunpack.i.l.bf16 %v7741_v41  ;;  %v7799_v43 = vperm.slane %v2008_v2, %v7071_v59  ;;  %v7802_v19 = vperm.slane %v2105_v35, %v7071_v59  ;;  %v2111_v30 = vsel %vm483_vm1, %v2110_v63, %v2074_v26 }
 0x222   :  { %6198 = vmatpush.xpose.msk.msrb.mxu3 %vm2159_vm2, %v7551_v20  ;;  %v1460_v6 = vsel %vm483_vm1, %v1459_v62, %v6286_v9  ;;  %6172 = vmatmul.msk.f32.gmra.mxu2 %vm2159_vm2, %v7694_v52  ;;  %v1462_v44 = vsel %vm483_vm1, %v6296_v11, %v1461_v46  ;;  %v6301_v38 = vunpack.i.h.bf16 %v6299_v49  ;;  %v1541_v42 = vrot.slane %v7782_v53, 4 }
 0x223   :  { %6195 = vmatpush.xpose.msk.msrb.mxu2 %vm2159_vm2, %v7694_v52  ;;  %6178 = vmatpush.xpose.msk.msrb.mxu0 %vm2159_vm2, %v7303_v13  ;;  %v1466_v29 = vperm.slane %v1460_v6, %v7071_v59  ;;  %v1473_v16 = vrot.slane %v6295_v5, 4  ;;  %v1553_v41 = vrot.slane %v7785_v15, 4  ;;  %v1470_v31 = vperm.slane %v1462_v44, %v7071_v59 }
 0x224   :  { %v6300_v0 = vunpack.i.l.bf16 %v6299_v49  ;;  %6168 = vmatmul.msk.f32.gmra.mxu1 %vm2159_vm2, %v7398_v12  ;;  %v1471_v45 = vrot.slane %v6301_v38, 4  ;;  %v1989_v61 = vsel %vm483_vm1, %v7790_v25, %v1988_v7  ;;  %v1986_v35 = vrot.slane %v7790_v25, 4 }
 0x225   :  { %6192 = vmatpush.xpose.msk.msra.mxu1 %vm2159_vm2, %v7398_v12  ;;  %v1485_v14 = vrot.slane %v1466_v29, 4  ;;  %v1474_v9 = vsel %vm483_vm1, %v6301_v38, %v1473_v16  ;;  %v1497_v3 = vrot.slane %v1470_v31, 4  ;;  %v1997_v7 = vperm.slane %v1989_v61, %v7104_v22  ;;  %6176 = vmatmul.msk.f32.gmra.mxu3 %vm2159_vm2, %v7551_v20 }
 0x226   :  { %6164 = vmatmul.msk.f32.gmra.mxu0 %vm2159_vm2, %v7544_v24  ;;  %v1482_v63 = vperm.slane %v1474_v9, %v7071_v59  ;;  %v1527_v33 = vrot.slane %v6300_v0, 4  ;;  %v1530_v11 = vsel %vm483_vm1, %v6300_v0, %v1529_v10  ;;  %6199 = vmatpush.xpose.msk.msrb.mxu3 %vm2159_vm2, %v7516_v57  ;;  %v1472_v2 = vsel %vm483_vm1, %v1471_v45, %v6295_v5 }
 0x227   :  { %6189 = vmatpush.xpose.msk.msra.mxu0 %vm2159_vm2, %v7544_v24  ;;  %6196 = vmatpush.xpose.msk.msrb.mxu2 %vm2159_vm2, %v7412_v23  ;;  %v1538_v26 = vperm.slane %v1530_v11, %v7071_v59  ;;  %v1478_v62 = vperm.slane %v1472_v2, %v7071_v59  ;;  %v1987_v2 = vsel %vm483_vm1, %v1986_v35, %v7753_v4 }
 0x228   :  { %v1495_v49 = vrot.slane %v1482_v63, 4  ;;  %v1498_v46 = vsel %vm483_vm1, %v1482_v63, %v1497_v3  ;;  %v1528_v10 = vsel %vm483_vm1, %v1527_v33, %v6290_v60  ;;  %v2118_v63 = vrot.slane %v7802_v19, 4 }
 0x229   :  { %6193 = vmatpush.xpose.msk.msra.mxu1 %vm2159_vm2, %v7361_v21  ;;  %v1506_v5 = vperm.slane %v1498_v46, %v7104_v22  ;;  %v1534_v6 = vperm.slane %v1528_v10, %v7071_v59  ;;  %v1551_v44 = vrot.slane %v1538_v26, 4  ;;  %v1554_v25 = vsel %vm483_vm1, %v1538_v26, %v1553_v41 }
 0x22a   :  { %v1483_v16 = vrot.slane %v1478_v62, 4  ;;  %v1486_v38 = vsel %vm483_vm1, %v1478_v62, %v1485_v14  ;;  %v1496_v0 = vsel %vm483_vm1, %v1495_v49, %v1470_v31  ;;  %v1562_v45 = vperm.slane %v1554_v25, %v7104_v22  ;;  %6185 = vmatmul.msk.f32.vlgmr.msra.gmra.mxu2 %vm2159_vm2, %v1997_v7 }
 0x22b   :  { %6190 = vmatpush.xpose.msk.msra.mxu0 %vm2159_vm2, %v7374_v28  ;;  %v1494_v54 = vperm.slane %v1486_v38, %v7104_v22  ;;  %v7850_v60 = vperm.slane %v1496_v0, %v7104_v22  ;;  %v7852_v9 = vrot.slane %v1506_v5, 4  ;;  %v1539_v61 = vrot.slane %v1534_v6, 4  ;;  %6207 = vmatpush.xpose.msk.msra.mxu2 %vm2159_vm2, %v7339_v17 }
 0x22c   :  { %v1484_v41 = vsel %vm483_vm1, %v1483_v16, %v1466_v29  ;;  %v1542_v14 = vsel %vm483_vm1, %v1534_v6, %v1541_v42  ;;  %v1552_v31 = vsel %vm483_vm1, %v1551_v44, %v7785_v15  ;;  %v1569_v3 = vrot.slane %v1562_v45, 4 }
 0x22d   :  { %v7862_v33 = vperm.slane %v1484_v41, %v7104_v22  ;;  %v7864_v11 = vrot.slane %v1494_v54, 4  ;;  %v1540_v17 = vsel %vm483_vm1, %v1539_v61, %v7782_v53  ;;  %v1550_v29 = vperm.slane %v1542_v14, %v7104_v22 }
 0x22e   :  { %v1558_v42 = vperm.slane %v1552_v31, %v7104_v22  ;;  %v1570_v15 = vsel %vm483_vm1, 0.0, %v1569_v3  ;;  %v2115_v26 = vperm.slane %v2111_v30, %v7071_v59  ;;  %v1511_v62 = vrot.slane %v7850_v60, 4 }
 0x22f   :  { %v7877_v49 = vsel %vm483_vm1, 0.0, %v7852_v9  ;;  %v1546_v46 = vperm.slane %v1540_v17, %v7104_v22  ;;  %6208 = vmatpush.xpose.msk.msra.mxu2 %vm2159_vm2, %v7314_v34  ;;  %v1507_v4 = vrot.slane %v7862_v33, 4  ;;  %v7885_v53 = vsel %vm483_vm1, 0.0, %v7864_v11 }
 0x230   :  { %v1565_v35 = vrot.slane %v1550_v29, 4  ;;  %v1567_v10 = vrot.slane %v1558_v42, 4  ;;  %v1753_v5 = vrot.slane %v1570_v15, 4  ;;  %v1993_v6 = vperm.slane %v1987_v2, %v7104_v22 }
 0x231   :  { %v1563_v30 = vrot.slane %v1546_v46, 4  ;;  %v2013_v44 = vrot.slane %v7799_v43, 4  ;;  %v2000_v38 = vrot.slane %v1997_v7, 4  ;;  %v2016_v34 = vsel %vm483_vm1, %v7799_v43, %v2015_v40 }
 0x232   :  { %v1566_v25 = vsel %vm483_vm1, 0.0, %v1565_v35  ;;  %v1568_v16 = vsel %vm483_vm1, 0.0, %v1567_v10  ;;  %6179 = vmatmul.msk.f32.vlgmr.msrb.gmra.mxu0 %vm2159_vm2, %v1993_v6  ;;  %v1998_v45 = vrot.slane %v1993_v6, 4  ;;  %v2024_v61 = vperm.slane %v2016_v34, %v7104_v22 }
 0x233   :  { %v1742_v0 = vrot.slane %v1566_v25, 4  ;;  %v2014_v54 = vsel %vm483_vm1, %v2013_v44, %v7769_v32  ;;  %6201 = vmatpush.xpose.msk.msrb.mxu0 %vm2159_vm2, %v7323_v58  ;;  %v2001_v7 = vsel %vm483_vm1, 0.0, %v2000_v38  ;;  %v2116_v14 = vrot.slane %v2115_v26, 4 }
 0x234   :  { %v2020_v41 = vperm.slane %v2014_v54, %v7104_v22  ;;  %v1564_v31 = vsel %vm483_vm1, 0.0, %v1563_v30  ;;  %v1999_v40 = vsel %vm483_vm1, 0.0, %v1998_v45  ;;  %6188 = vmatmul.msk.f32.vlgmr.msra.gmra.mxu3 %vm2159_vm2, %v2001_v7  ;;  %6197 = vmatmul.msk.f32.vlgmr.msrb.gmra.mxu2 %vm2159_vm2, %v2024_v61  ;;  %v2027_v43 = vrot.slane %v2024_v61, 4 }
 0x235   :  { %v1737_v32 = vsel %vm483_vm1, %v1565_v35, %v1546_v46  ;;  %v1743_v2 = vsel %vm483_vm1, %v1742_v0, %v1564_v31  ;;  %v1512_v58 = vsel %vm483_vm1, 0.0, %v1511_v62  ;;  %6182 = vmatmul.msk.f32.vlgmr.msrb.gmra.mxu1 %vm2159_vm2, %v1999_v40  ;;  %6210 = vmatpush.xpose.msk.msra.mxu3 %vm2159_vm2, %v7346_v48  ;;  %v2117_v17 = vsel %vm483_vm1, %v2116_v14, %v7802_v19 }
 0x236   :  { %v1741_v29 = vperm.slane %v1737_v32, %v7071_v59  ;;  %v1747_v15 = vperm.slane %v1743_v2, %v7071_v59  ;;  %v1688_v10 = vrot.slane %v7885_v53, 4  ;;  %6204 = vmatpush.xpose.msk.msrb.mxu1 %vm2159_vm2, %v7336_v1  ;;  %v2025_v46 = vrot.slane %v2020_v41, 4  ;;  %6219 = vmatpush.xpose.msk.msrb.mxu2 %vm2159_vm2, %v7694_v52 }
 0x237   :  { %v1748_v62 = vsel %vm483_vm1, %v1569_v3, %v1558_v42  ;;  %v1754_v48 = vsel %vm483_vm1, %v1753_v5, %v1568_v16  ;;  %6202 = vmatpush.xpose.msk.msrb.mxu0 %vm2159_vm2, %v7303_v13  ;;  %v2123_v19 = vperm.slane %v2117_v17, %v7104_v22  ;;  %v1699_v1 = vrot.slane %v7877_v49, 4 }
 0x238   :  { %v1752_v35 = vperm.slane %v1748_v62, %v7071_v59  ;;  %v1758_v53 = vperm.slane %v1754_v48, %v7071_v59  ;;  %v1759_v30 = vrot.slane %v1747_v15, 4  ;;  %v2028_v6 = vsel %vm483_vm1, 0.0, %v2027_v43 }
 0x239   :  { %v2119_v52 = vsel %vm483_vm1, %v2115_v26, %v2118_v63  ;;  %v1761_v44 = vrot.slane %v1741_v29, 4  ;;  %6211 = vmatpush.xpose.msk.msra.mxu3 %vm2159_vm2, %v7326_v56  ;;  %v2026_v49 = vsel %vm483_vm1, 0.0, %v2025_v46  ;;  %v1683_v56 = vsel %vm483_vm1, %v7864_v11, %v7862_v33 }
 0x23a   :  { %v1760_v3 = vsel %vm483_vm1, %v1759_v30, %v1741_v29  ;;  %v1771_v13 = vrot.slane %v1758_v53, 4  ;;  %v2127_v42 = vperm.slane %v2119_v52, %v7104_v22  ;;  %v1773_v5 = vrot.slane %v1752_v35, 4  ;;  %6205 = vmatpush.xpose.msk.msrb.mxu1 %vm2159_vm2, %v7294_v18  ;;  %6191 = vmatmul.msk.f32.vlgmr.msra.gmra.mxu0 %vm2159_vm2, %v2020_v41 }
 0x23b   :  { %v1766_v25 = vperm.slane %v1760_v3, %v7104_v22  ;;  %v1762_v63 = vsel %vm483_vm1, %v1747_v15, %v1761_v44  ;;  %6213 = vmatpush.xpose.msk.msra.mxu0 %vm2159_vm2, %v7544_v24  ;;  %6220 = vmatpush.xpose.msk.msrb.mxu2 %vm2159_vm2, %v7412_v23  ;;  %v2128_v38 = vrot.slane %v2123_v19, 4  ;;  %v1508_v24 = vsel %vm483_vm1, 0.0, %v1507_v4 }
 0x23c   :  { %v1772_v18 = vsel %vm483_vm1, %v1771_v13, %v1752_v35  ;;  %v1770_v26 = vperm.slane %v1762_v63, %v7104_v22  ;;  %v1774_v16 = vsel %vm483_vm1, %v1758_v53, %v1773_v5  ;;  %6200 = vmatmul.msk.f32.vlgmr.msrb.gmra.mxu3 %vm2159_vm2, %v2028_v6  ;;  %6209 = vmatmul.msk.f32.vlgmr.msra.gmra.mxu2 %vm2159_vm2, %v2127_v42  ;;  %v2130_v61 = vrot.slane %v2127_v42, 4 }
 0x23d   :  { %v1778_v34 = vperm.slane %v1772_v18, %v7104_v22  ;;  %v1782_v11 = vperm.slane %v1774_v16, %v7104_v22  ;;  %v1687_v23 = vperm.slane %v1683_v56, %v7071_v59  ;;  %6194 = vmatmul.msk.f32.vlgmr.msra.gmra.mxu1 %vm2159_vm2, %v2026_v49  ;;  %6222 = vmatpush.xpose.msk.msrb.mxu3 %vm2159_vm2, %v7551_v20  ;;  %v1785_v14 = vrot.slane %v1766_v25, 4  ;;  %v8018_v16 = vld [vmem:[#allocation7 + $0x4] sm:$0xf] }
 0x23e   :  { %v1689_v0 = vsel %vm483_vm1, %v1688_v10, %v1508_v24  ;;  %v1694_v45 = vsel %vm483_vm1, %v7852_v9, %v7850_v60  ;;  %v1700_v54 = vsel %vm483_vm1, %v1699_v1, %v1512_v58  ;;  %6216 = vmatpush.xpose.msk.msra.mxu1 %vm2159_vm2, %v7398_v12  ;;  %v1789_v60 = vrot.slane %v1770_v26, 4  ;;  %9615 = vst [vmem:[#allocation27_spill] sm:$0xff] %v8018_v16 }
 0x23f   :  { %v1783_v33 = vrot.slane %v1778_v34, 4  ;;  %v1787_v4 = vrot.slane %v1782_v11, 4  ;;  %v1693_v41 = vperm.slane %v1689_v0, %v7071_v59  ;;  %v1698_v7 = vperm.slane %v1694_v45, %v7071_v59  ;;  %6214 = vmatpush.xpose.msk.msra.mxu0 %vm2159_vm2, %v7374_v28 }
 0x240   :  { %v1704_v20 = vperm.slane %v1700_v54, %v7071_v59  ;;  %v1707_v31 = vrot.slane %v1687_v23, 4  ;;  %v2131_v2 = vsel %vm483_vm1, 0.0, %v2130_v61  ;;  %v2129_v58 = vsel %vm483_vm1, 0.0, %v2128_v38 }
 0x241   :  { %v1784_v9 = vsel %vm483_vm1, %v1783_v33, %v1766_v25  ;;  %v1788_v40 = vsel %vm483_vm1, %v1787_v4, %v1770_v26  ;;  %v1705_v43 = vrot.slane %v1693_v41, 4  ;;  %v1719_v12 = vrot.slane %v1698_v7, 4  ;;  %6223 = vmatpush.xpose.msk.msrb.mxu3 %vm2159_vm2, %v7516_v57 }
 0x242   :  { %3436 = vmatpush.msra.mxu2 %v1788_v40  ;;  %v1717_v32 = vrot.slane %v1704_v20, 4  ;;  %v1708_v28 = vsel %vm483_vm1, %v1693_v41, %v1707_v31  ;;  %6217 = vmatpush.xpose.msk.msra.mxu1 %vm2159_vm2, %v7361_v21  ;;  %v1786_v46 = vsel %vm483_vm1, %v1778_v34, %v1785_v14  ;;  %v1790_v48 = vsel %vm483_vm1, %v1782_v11, %v1789_v60 }
 0x243   :  { %6203 = vmatmul.msk.f32.vlgmr.msrb.gmra.mxu0 %vm2159_vm2, %v2123_v19  ;;  %v1706_v17 = vsel %vm483_vm1, %v1705_v43, %v1687_v23  ;;  %v1716_v29 = vperm.slane %v1708_v28, %v7104_v22  ;;  %v1720_v15 = vsel %vm483_vm1, %v1704_v20, %v1719_v12  ;;  %v2077_v18 = vrot.slane %v7666_v39, 4 }
 0x244   :  { %3378 = vmatpush.msrb.mxu0 %v1784_v9  ;;  %v1712_v57 = vperm.slane %v1706_v17, %v7104_v22  ;;  %v1718_v10 = vsel %vm483_vm1, %v1717_v32, %v1698_v7  ;;  %v1728_v62 = vperm.slane %v1720_v15, %v7104_v22  ;;  %6212 = vmatmul.msk.f32.vlgmr.msra.gmra.mxu3 %vm2159_vm2, %v2131_v2  ;;  %v2083_v26 = vrot.slane %v7641_v55, 4 }
 0x245   :  { %v1724_v21 = vperm.slane %v1718_v10, %v7104_v22  ;;  %v1735_v19 = vrot.slane %v1716_v29, 4  ;;  %6206 = vmatmul.msk.f32.vlgmr.msrb.gmra.mxu1 %vm2159_vm2, %v2129_v58  ;;  %3465 = vmatpush.msra.mxu3 %v1790_v48  ;;  %v2078_v38 = vsel %vm483_vm1, %v2077_v18, %v8018_v16 }
 0x246   :  { %v1733_v35 = vrot.slane %v1728_v62, 4  ;;  %v1731_v53 = vrot.slane %v1712_v57, 4  ;;  %3407 = vmatpush.msrb.mxu1 %v1786_v46  ;;  %v2082_v11 = vperm.slane %v2078_v38, %v7071_v59  ;;  %v2084_v23 = vsel %vm483_vm1, %v2083_v26, %v7688_v37 }
 0x247   :  { %v1729_v30 = vrot.slane %v1724_v21, 4  ;;  %v1736_v1 = vsel %vm483_vm1, %v1728_v62, %v1735_v19  ;;  %v2088_v0 = vperm.slane %v2084_v23, %v7071_v59  ;;  %v6302_v38 = vpack.i.bf16 %v6969_v27, %v6983_v36 }
 0x248   :  { %v1734_v6 = vsel %vm483_vm1, %v1733_v35, %v1716_v29  ;;  %v1732_v52 = vsel %vm483_vm1, %v1724_v21, %v1731_v53  ;;  %3466 = vmatpush.msra.mxu3 %v1736_v1  ;;  %v2091_v39 = vrot.slane %v2082_v11, 4 }
 0x249   :  { %v1730_v44 = vsel %vm483_vm1, %v1729_v30, %v1712_v57  ;;  %3437 = vmatpush.msra.mxu2 %v1734_v6  ;;  %3408 = vmatpush.msrb.mxu1 %v1732_v52  ;;  %v2089_v45 = vrot.slane %v2088_v0, 4 }
 0x24a   :  { %3379 = vmatpush.msrb.mxu0 %v1730_v44  ;;  %v2092_v54 = vsel %vm483_vm1, %v2088_v0, %v2091_v39 }
 0x24b   :  { %v2100_v41 = vperm.slane %v2092_v54, %v7104_v22  ;;  %v2090_v7 = vsel %vm483_vm1, %v2089_v45, %v2082_v11  ;;  %v6307_v11 = vpack.i.bf16 %v7037_v50, %v7039_v51 }
 0x24c   :  { %v2096_v31 = vperm.slane %v2090_v7, %v7104_v22 }
 0x24d   :  { %v2103_v60 = vrot.slane %v2100_v41, 4 }
 0x24e   :  { %v2101_v12 = vrot.slane %v2096_v31, 4 }
 0x24f   :  { %v2104_v32 = vsel %vm483_vm1, 0.0, %v2103_v60  ;;  %v2132_v58 = vsel %vm483_vm1, %v2103_v60, %v2096_v31  ;;  %v9617_v60 = vld [vmem:[#allocation25_spill] sm:$0xff] }
 0x250   :  { %v2137_v17 = vrot.slane %v2104_v32, 4  ;;  %v2102_v29 = vsel %vm483_vm1, 0.0, %v2101_v12  ;;  %v2136_v10 = vperm.slane %v2132_v58, %v7071_v59 }
 0x252   :  { %v2138_v46 = vsel %vm483_vm1, %v2137_v17, %v2102_v29  ;;  %v2145_v35 = vrot.slane %v2136_v10, 4 }
 0x253   :  { %v2142_v19 = vperm.slane %v2138_v46, %v7071_v59 }
 0x255   :  { %v2143_v53 = vrot.slane %v2142_v19, 4  ;;  %v2146_v30 = vsel %vm483_vm1, %v2142_v19, %v2145_v35 }
 0x256   :  { %v2154_v1 = vperm.slane %v2146_v30, %v7104_v22 }
 0x257   :  { %v2144_v6 = vsel %vm483_vm1, %v2143_v53, %v2136_v10 }
 0x258   :  { %v2157_v52 = vrot.slane %v2154_v1, 4  ;;  %6221 = vmatmul.msk.f32.vlgmr.msrb.gmra.mxu2 %vm2159_vm2, %v2154_v1  ;;  %v2150_v44 = vperm.slane %v2144_v6, %v7104_v22 }
 0x25a   :  { %6215 = vmatmul.msk.f32.vlgmr.msra.gmra.mxu0 %vm2159_vm2, %v2150_v44 }
 0x27b   :  { %v8000_v3 = vpop.f32.mrf.mxu2 }
 0x27c   :  { %v2809_v13 = vsel %vm2808_vm3, %v8000_v3, -inf }
 0x27d   :  { %2810 = vmax.xlane.f32.xlu0 %v2809_v13 }
 0x280   :  { %v8004_v42 = vpop.f32.mrf.mxu3 }
 0x281   :  { %v2815_v5 = vsel %vm2808_vm3, %v8004_v42, -inf }
 0x282   :  { %2816 = vmax.xlane.f32.xlu1 %v2815_v5  ;;  %v2158_v5 = vsel %vm483_vm1, 0.0, %v2157_v52 }
 0x283   :  { %v8008_v49 = vpop.f32.mrf.mxu2  ;;  %6224 = vmatmul.msk.f32.vlgmr.msrb.gmra.mxu3 %vm2159_vm2, %v2158_v5 }
 0x284   :  { %v2812_v25 = vsel %vm2808_vm3, %v8008_v49, -inf }
 0x285   :  { %2813 = vmax.xlane.f32.xlu0 %v2812_v25  ;;  %v2155_v25 = vrot.slane %v2150_v44, 4 }
 0x288   :  { %v8012_v63 = vpop.f32.mrf.mxu3 }
 0x289   :  { %v2818_v56 = vsel %vm2808_vm3, %v8012_v63, -inf }
 0x28a   :  { %2819 = vmax.xlane.f32.xlu2 %v2818_v56  ;;  %v2156_v56 = vsel %vm483_vm1, 0.0, %v2155_v25 }
 0x28b   :  { %v8030_v55 = vpop.f32.mrf.mxu2  ;;  %6218 = vmatmul.msk.f32.vlgmr.msra.gmra.mxu1 %vm2159_vm2, %v2156_v56 }
 0x28c   :  { %v2821_v28 = vsel %vm2808_vm3, %v8030_v55, -inf }
 0x290   :  { %v8022_v34 = vpop.f32.mrf.mxu3 }
 0x291   :  { %v2827_v24 = vsel %vm2808_vm3, %v8022_v34, -inf }
 0x292   :  { %2828 = vmax.xlane.f32.xlu2 %v2827_v24  ;;  %v9616_v24 = vld [vmem:[#allocation23_spill] sm:$0xff] }
 0x293   :  { %v8045_v14 = vpop.f32.mrf.mxu2  ;;  %v6312_v23 = vpack.i.bf16 %v9616_v24, %v7027_v47 }
 0x294   :  { %v2824_v21 = vsel %vm2808_vm3, %v8045_v14, -inf }
 0x298   :  { %v8043_v20 = vpop.f32.mrf.mxu3 }
 0x299   :  { %v8033_v61 = vpop.f32.mrf.mxu1  ;;  %v2830_v13 = vsel %vm2808_vm3, %v8043_v20, -inf }
 0x29a   :  { %v2839_v4 = vsel %vm2808_vm3, %v8033_v61, -inf }
 0x29b   :  { %v8035_v33 = vpop.f32.mrf.mxu0  ;;  %2840 = vmax.xlane.f32.xlu0 %v2839_v4 }
 0x29c   :  { %v2833_v37 = vsel %vm2808_vm3, %v8035_v33, -inf }
 0x29d   :  { %2834 = vmax.xlane.f32.xlu1 %v2833_v37  ;;  %v8063_v57 = vpop.f32.mrf.mxu2 }
 0x29e   :  { %v2845_v48 = vsel %vm2808_vm3, %v8063_v57, -inf }
 0x2a0   :  { %v8061_v15 = vpop.f32.mrf.mxu3 }
 0x2a1   :  { %v8048_v9 = vpop.f32.mrf.mxu1  ;;  %v2851_v62 = vsel %vm2808_vm3, %v8061_v15, -inf }
 0x2a2   :  { %v2842_v43 = vsel %vm2808_vm3, %v8048_v9, -inf }
 0x2a3   :  { %v8050_v40 = vpop.f32.mrf.mxu0  ;;  %2843 = vmax.xlane.f32.xlu0 %v2842_v43  ;;  %v9618_v43 = vld [vmem:[#allocation24_spill] sm:$0xff] }
 0x2a4   :  { %v2836_v2 = vsel %vm2808_vm3, %v8050_v40, -inf  ;;  %v6317_v12 = vpack.i.bf16 %v9618_v43, %v9617_v60 }
 0x2a5   :  { %2837 = vmax.xlane.f32.xlu2 %v2836_v2  ;;  %2822 = vmax.xlane.f32.xlu1 %v2821_v28  ;;  %v8086_v18 = vpop.f32.mrf.mxu2 }
 0x2a6   :  { %v2848_v26 = vsel %vm2808_vm3, %v8086_v18, -inf }
 0x2a8   :  { %v8099_v39 = vpop.f32.mrf.mxu3 }
 0x2a9   :  { %v2854_v27 = vsel %vm2808_vm3, %v8099_v39, -inf }
 0x2ab   :  { %2852 = vmax.xlane.f32.xlu0 %v2851_v62 }
 0x2ad   :  { %2825 = vmax.xlane.f32.xlu2 %v2824_v21  ;;  %2846 = vmax.xlane.f32.xlu1 %v2845_v48 }
 0x2b5   :  { %2831 = vmax.xlane.f32.xlu2 %v2830_v13 }
 0x2bd   :  { %2849 = vmax.xlane.f32.xlu2 %v2848_v26 }
 0x2bf   :  { %6303 = vrot.lane.b32.xlu0 %v6302_v38, %s6795_s25 }
 0x2c6   :  { %6308 = vrot.lane.b32.xlu1 %v6307_v11, %s6795_s25 }
 0x2ce   :  { %6313 = vrot.lane.b32.xlu1 %v6312_v23, %s6795_s25 }
 0x2f0   :  { %v2811_v54 = vpop.xlane.xlu0 %2810 }
 0x2f1   :  { %v2857_v52 = vsub.f32 %v8000_v3, %v2811_v54 }
 0x2f3   :  { %v2873_v5 = vmul.f32 1.442695, %v2857_v52 }
 0x2f5   :  { %v2817_v0 = vpop.xlane.xlu1 %2816 }
 0x2f6   :  { %v2859_v45 = vsub.f32 %v8004_v42, %v2817_v0 }
 0x2f8   :  { %2855 = vmax.xlane.f32.xlu1 %v2854_v27  ;;  %v2877_v36 = vmul.f32 1.442695, %v2859_v45  ;;  %v2814_v4 = vpop.xlane.xlu0 %2813 }
 0x2f9   :  { %v2858_v42 = vsub.f32 %v8008_v49, %v2814_v4 }
 0x2fa   :  { %6328 = vpow2.f32 %v2877_v36 }
 0x2fb   :  { %v2875_v31 = vmul.f32 1.442695, %v2858_v42 }
 0x2fd   :  { %v2820_v50 = vpop.xlane.xlu2 %2819 }
 0x2fe   :  { %v2860_v2 = vsub.f32 %v8012_v63, %v2820_v50 }
 0x300   :  { %v8104_v51 = vpop.eup %6328 }
 0x301   :  { %v2911_v47 = vsel %vm2808_vm3, %v8104_v51, 0.0 }
 0x302   :  { %2912 = vadd.xlane.f32.xlu0 %v2911_v47 }
 0x305   :  { %v2829_v41 = vpop.xlane.xlu2 %2828 }
 0x306   :  { %v2863_v37 = vsub.f32 %v8022_v34, %v2829_v41  ;;  %v2879_v34 = vmul.f32 1.442695, %v2860_v2  ;;  %v8173_v2 = vpop.f32.mrf.mxu2 }
 0x308   :  { %v2885_v7 = vmul.f32 1.442695, %v2863_v37 }
 0x30a   :  { %6330 = vpow2.f32 %v2885_v7 }
 0x30b   :  { %6332 = vpow2.f32 %v2875_v31 }
 0x30c   :  { %6334 = vpow2.f32 %v2879_v34 }
 0x30e   :  { %v2841_v10 = vpop.xlane.xlu0 %2840 }
 0x30f   :  { %v2867_v21 = vsub.f32 %v8033_v61, %v2841_v10  ;;  %v8185_v10 = vpop.f32.mrf.mxu2 }
 0x310   :  { %v8112_v32 = vpop.eup %6330  ;;  %v2835_v28 = vpop.xlane.xlu1 %2834 }
 0x311   :  { %6318 = vrot.lane.b32.xlu1 %v6317_v12, %s6795_s25  ;;  %v2923_v58 = vsel %vm2808_vm3, %v8112_v32, 0.0  ;;  %v8118_v49 = vpop.eup %6332  ;;  %v2893_v19 = vmul.f32 1.442695, %v2867_v21  ;;  %v2865_v38 = vsub.f32 %v8035_v33, %v2835_v28  ;;  %v8175_v28 = vpop.f32.mrf.mxu3 }
 0x312   :  { %2924 = vadd.xlane.f32.xlu0 %v2923_v58  ;;  %v2908_v62 = vsel %vm2808_vm3, %v8118_v49, 0.0  ;;  %v8124_v48 = vpop.eup %6334 }
 0x313   :  { %v2914_v53 = vsel %vm2808_vm3, %v8124_v48, 0.0  ;;  %v2889_v45 = vmul.f32 1.442695, %v2865_v38 }
 0x316   :  { %v2844_v56 = vpop.xlane.xlu0 %2843 }
 0x318   :  { %v2838_v17 = vpop.xlane.xlu2 %2837  ;;  %v2823_v29 = vpop.xlane.xlu1 %2822 }
 0x319   :  { %v2861_v46 = vsub.f32 %v8030_v55, %v2823_v29  ;;  %v2866_v23 = vsub.f32 %v8050_v40, %v2838_v17  ;;  %v8183_v29 = vpop.f32.mrf.mxu0 }
 0x31a   :  { %2909 = vadd.xlane.f32.xlu0 %v2908_v62 }
 0x31b   :  { %v2881_v63 = vmul.f32 1.442695, %v2861_v46  ;;  %v2891_v33 = vmul.f32 1.442695, %v2866_v23  ;;  %v8187_v46 = vpop.f32.mrf.mxu1 }
 0x31d   :  { %6336 = vpow2.f32 %v2881_v63  ;;  %v2989_v63 = vsel %vm2985_vm4, %v8187_v46, -inf }
 0x31e   :  { %6338 = vpow2.f32 %v2893_v19  ;;  %v8195_v19 = vpop.f32.mrf.mxu3 }
 0x320   :  { %v2826_v35 = vpop.xlane.xlu2 %2825  ;;  %v2847_v11 = vpop.xlane.xlu1 %2846 }
 0x321   :  { %v2862_v55 = vsub.f32 %v8045_v14, %v2826_v35  ;;  %v8197_v35 = vpop.f32.mrf.mxu0 }
 0x322   :  { %2915 = vadd.xlane.f32.xlu0 %v2914_v53 }
 0x323   :  { %v8128_v30 = vpop.eup %6336  ;;  %v2883_v6 = vmul.f32 1.442695, %v2862_v55  ;;  %v8201_v55 = vpop.f32.mrf.mxu2 }
 0x324   :  { %v2917_v1 = vsel %vm2808_vm3, %v8128_v30, 0.0  ;;  %v8134_v44 = vpop.eup %6338 }
 0x325   :  { %2918 = vadd.xlane.f32.xlu2 %v2917_v1  ;;  %6340 = vpow2.f32 %v2883_v6  ;;  %v2935_v25 = vsel %vm2808_vm3, %v8134_v44, 0.0  ;;  %v3178_v1 = vsel %vm2985_vm4, %v8201_v55, -inf  ;;  %v2986_v6 = vsel %vm2985_vm4, %v8183_v29, -inf }
 0x326   :  { %6342 = vpow2.f32 %v2873_v5 }
 0x328   :  { %v2832_v61 = vpop.xlane.xlu2 %2831 }
 0x329   :  { %v2864_v13 = vsub.f32 %v8043_v20, %v2832_v61  ;;  %v2869_v20 = vsub.f32 %v8063_v57, %v2847_v11  ;;  %v8207_v61 = vpop.f32.mrf.mxu3  ;;  %v8209_v52 = vpop.f32.mrf.mxu0 }
 0x32a   :  { %v3172_v5 = vsel %vm2985_vm4, %v8209_v52, -inf }
 0x32b   :  { %v2887_v14 = vmul.f32 1.442695, %v2864_v13  ;;  %v8141_v3 = vpop.eup %6340  ;;  %v2897_v54 = vmul.f32 1.442695, %v2869_v20  ;;  %v8226_v20 = vpop.f32.mrf.mxu2 }
 0x32c   :  { %v2920_v27 = vsel %vm2808_vm3, %v8141_v3, 0.0  ;;  %v8147_v36 = vpop.eup %6342 }
 0x32d   :  { %2936 = vadd.xlane.f32.xlu2 %v2935_v25  ;;  %6344 = vpow2.f32 %v2887_v14  ;;  %v2905_v40 = vsel %vm2808_vm3, %v8147_v36, 0.0  ;;  %v3007_v25 = vsel %vm2985_vm4, %v8195_v19, -inf  ;;  %v8219_v14 = vpop.f32.mrf.mxu1 }
 0x32e   :  { %v3001_v23 = vsel %vm2985_vm4, %v8219_v14, -inf }
 0x330   :  { %v2850_v26 = vpop.xlane.xlu2 %2849 }
 0x331   :  { %v2870_v24 = vsub.f32 %v8086_v18, %v2850_v26  ;;  %v2853_v18 = vpop.xlane.xlu0 %2852 }
 0x332   :  { %v2871_v57 = vsub.f32 %v8061_v15, %v2853_v18  ;;  %v2868_v15 = vsub.f32 %v8048_v9, %v2844_v56  ;;  %v2995_v9 = vsel %vm2985_vm4, %v8175_v28, -inf  ;;  %v8217_v56 = vpop.f32.mrf.mxu3 }
 0x333   :  { %v2899_v0 = vmul.f32 1.442695, %v2870_v24  ;;  %v8149_v50 = vpop.eup %6344  ;;  %v3193_v11 = vsel %vm2985_vm4, %v8217_v56, -inf }
 0x334   :  { %v2926_v41 = vsel %vm2808_vm3, %v8149_v50, 0.0  ;;  %v2901_v42 = vmul.f32 1.442695, %v2871_v57  ;;  %v2895_v58 = vmul.f32 1.442695, %v2868_v15 }
 0x335   :  { %6346 = vpow2.f32 %v2899_v0  ;;  %2921 = vadd.xlane.f32.xlu2 %v2920_v27 }
 0x336   :  { %6348 = vpow2.f32 %v2889_v45  ;;  %v3190_v45 = vsel %vm2985_vm4, %v8226_v20, -inf }
 0x337   :  { %6350 = vpow2.f32 %v2891_v33 }
 0x338   :  { %6352 = vpow2.f32 %v2897_v54  ;;  %v8199_v53 = vpop.permute.xlu1 %6308 }
 0x339   :  { %6354 = vpow2.f32 %v2901_v42  ;;  %v6304_v24 = vpop.permute.xlu0 %6303  ;;  %v6311_v54 = vunpack.i.h.bf16 %v8199_v53  ;;  %v8236_v42 = vpop.f32.mrf.mxu0 }
 0x33a   :  { %6356 = vpow2.f32 %v2895_v58 }
 0x33b   :  { %v8153_v47 = vpop.eup %6346  ;;  %2906 = vadd.xlane.f32.xlu1 %v2905_v40  ;;  %v6306_v40 = vunpack.i.h.bf16 %v6304_v24 }
 0x33c   :  { %v2944_v4 = vsel %vm2808_vm3, %v8153_v47, 0.0  ;;  %v8160_v37 = vpop.eup %6348 }
 0x33d   :  { %2945 = vadd.xlane.f32.xlu0 %v2944_v4  ;;  %2927 = vadd.xlane.f32.xlu2 %v2926_v41  ;;  %v8162_v7 = vpop.eup %6350  ;;  %v2929_v60 = vsel %vm2808_vm3, %v8160_v37, 0.0  ;;  %v1627_v41 = vrot.slane %v6311_v54, 4  ;;  %v1573_v15 = vrot.slane %v6306_v40, 4 }
 0x33e   :  { %v8164_v31 = vpop.eup %6352  ;;  %v2932_v43 = vsel %vm2808_vm3, %v8162_v7, 0.0 }
 0x33f   :  { %v2941_v12 = vsel %vm2808_vm3, %v8164_v31, 0.0  ;;  %v8177_v34 = vpop.eup %6354 }
 0x340   :  { %v2947_v17 = vsel %vm2808_vm3, %v8177_v34, 0.0  ;;  %v8189_v62 = vpop.eup %6356  ;;  %v8211_v13 = vpop.permute.xlu1 %6313 }
 0x341   :  { %v2938_v21 = vsel %vm2808_vm3, %v8189_v62, 0.0  ;;  %v6316_v57 = vunpack.i.h.bf16 %v8211_v13 }
 0x343   :  { %2930 = vadd.xlane.f32.xlu1 %v2929_v60 }
 0x345   :  { %2933 = vadd.xlane.f32.xlu0 %v2932_v43  ;;  %2942 = vadd.xlane.f32.xlu2 %v2941_v12  ;;  %v1571_v43 = vrot.slane %v6316_v57, 4  ;;  %v3184_v12 = vsel %vm2985_vm4, %v8236_v42, -inf }
 0x34d   :  { %2996 = vmax.xlane.f32.xlu0 %v2995_v9  ;;  %2948 = vadd.xlane.f32.xlu2 %v2947_v17 }
 0x355   :  { %2990 = vmax.xlane.f32.xlu0 %v2989_v63  ;;  %2939 = vadd.xlane.f32.xlu2 %v2938_v21  ;;  %v1574_v63 = vsel %vm483_vm1, %v6316_v57, %v1573_v15  ;;  %v6310_v21 = vunpack.i.l.bf16 %v8199_v53  ;;  %v3004_v15 = vsel %vm2985_vm4, %v8185_v10, -inf }
 0x35d   :  { %3179 = vmax.xlane.f32.xlu0 %v3178_v1  ;;  %2987 = vmax.xlane.f32.xlu2 %v2986_v6  ;;  %v2992_v1 = vsel %vm2985_vm4, %v8173_v2, -inf  ;;  %v6315_v6 = vunpack.i.l.bf16 %v8211_v13 }
 0x365   :  { %3173 = vmax.xlane.f32.xlu0 %v3172_v5  ;;  %3008 = vmax.xlane.f32.xlu2 %v3007_v25  ;;  %v1572_v25 = vsel %vm483_vm1, %v1571_v43, %v6306_v40  ;;  %v8256_v40 = vpop.f32.mrf.mxu1 }
 0x366   :  { %v1578_v53 = vperm.slane %v1572_v25, %v7071_v59 }
 0x368   :  { %v1597_v43 = vrot.slane %v1578_v53, 4 }
 0x36b   :  { %v2856_v26 = vpop.xlane.xlu1 %2855 }
 0x36c   :  { %v2872_v38 = vsub.f32 %v8099_v39, %v2856_v26  ;;  %v6305_v39 = vunpack.i.l.bf16 %v6304_v24  ;;  %v1582_v26 = vperm.slane %v1574_v63, %v7071_v59  ;;  %v1585_v24 = vrot.slane %v6315_v6, 4 }
 0x36d   :  { %3194 = vmax.xlane.f32.xlu0 %v3193_v11  ;;  %3002 = vmax.xlane.f32.xlu2 %v3001_v23 }
 0x36e   :  { %v2903_v0 = vmul.f32 1.442695, %v2872_v38  ;;  %v1629_v4 = vrot.slane %v6305_v39, 4  ;;  %v1628_v9 = vsel %vm483_vm1, %v1627_v41, %v6305_v39  ;;  %v1641_v38 = vrot.slane %v6310_v21, 4 }
 0x36f   :  { %v1634_v5 = vperm.slane %v1628_v9, %v7071_v59  ;;  %v1609_v39 = vrot.slane %v1582_v26, 4  ;;  %v2998_v9 = vsel %vm2985_vm4, %v8197_v35, -inf }
 0x370   :  { %6358 = vpow2.f32 %v2903_v0  ;;  %v1630_v17 = vsel %vm483_vm1, %v6311_v54, %v1629_v4 }
 0x375   :  { %v2913_v27 = vpop.xlane.xlu0 %2912  ;;  %3191 = vmax.xlane.f32.xlu2 %v3190_v45  ;;  %v1653_v45 = vrot.slane %v1634_v5, 4 }
 0x376   :  { %v8230_v33 = vpop.eup %6358  ;;  %6360 = vrcp.f32 %v2913_v27 }
 0x377   :  { %v2950_v18 = vsel %vm2808_vm3, %v8230_v33, 0.0 }
 0x378   :  { %2951 = vadd.xlane.f32.xlu1 %v2950_v18 }
 0x37c   :  { %v6361_v60 = vpop.eup %6360 }
 0x37d   :  { %v2971_v58 = vmul.f32 %v6361_v60, %v8104_v51  ;;  %3185 = vmax.xlane.f32.xlu2 %v3184_v12  ;;  %v1638_v51 = vperm.slane %v1630_v17, %v7071_v59 }
 0x37f   :  { %6227 = vmatmul.msk.f32.vlgmr.msrb.gmra.mxu1 %vm2808_vm3, %v2971_v58  ;;  %v1665_v27 = vrot.slane %v1638_v51, 4 }
 0x380   :  { %2993 = vmax.xlane.f32.xlu1 %v2992_v1 }
 0x383   :  { %v6319_v11 = vpop.permute.xlu1 %6318 }
 0x384   :  { %v6321_v23 = vunpack.i.h.bf16 %v6319_v11  ;;  %v6320_v0 = vunpack.i.l.bf16 %v6319_v11 }
 0x385   :  { %v2925_v13 = vpop.xlane.xlu0 %2924 }
 0x386   :  { %v1583_v54 = vrot.slane %v6321_v23, 4  ;;  %v1586_v18 = vsel %vm483_vm1, %v6321_v23, %v1585_v24  ;;  %v1639_v57 = vrot.slane %v6320_v0, 4  ;;  %v1642_v4 = vsel %vm483_vm1, %v6320_v0, %v1641_v38 }
 0x387   :  { %v1594_v41 = vperm.slane %v1586_v18, %v7071_v59  ;;  %v1650_v60 = vperm.slane %v1642_v4, %v7071_v59  ;;  %6362 = vrcp.f32 %v2925_v13 }
 0x388   :  { %v1584_v12 = vsel %vm483_vm1, %v1583_v54, %v6315_v6  ;;  %v1640_v58 = vsel %vm483_vm1, %v1639_v57, %v6310_v21  ;;  %3005 = vmax.xlane.f32.xlu1 %v3004_v15  ;;  %v8273_v6 = vsel %vm2985_vm4, %v8256_v40, -inf }
 0x389   :  { %v1590_v17 = vperm.slane %v1584_v12, %v7071_v59  ;;  %v1607_v63 = vrot.slane %v1594_v41, 4  ;;  %v1610_v1 = vsel %vm483_vm1, %v1594_v41, %v1609_v39  ;;  %v1646_v25 = vperm.slane %v1640_v58, %v7071_v59 }
 0x38a   :  { %v1618_v38 = vperm.slane %v1610_v1, %v7104_v22  ;;  %v1663_v11 = vrot.slane %v1650_v60, 4  ;;  %v1666_v24 = vsel %vm483_vm1, %v1650_v60, %v1665_v27 }
 0x38b   :  { %v1595_v21 = vrot.slane %v1590_v17, 4  ;;  %v1598_v23 = vsel %vm483_vm1, %v1590_v17, %v1597_v43  ;;  %v1608_v0 = vsel %vm483_vm1, %v1607_v63, %v1582_v26  ;;  %v1651_v13 = vrot.slane %v1646_v25, 4 }
 0x38c   :  { %v1606_v54 = vperm.slane %v1598_v23, %v7104_v22  ;;  %v1614_v39 = vperm.slane %v1608_v0, %v7104_v22  ;;  %v1625_v18 = vrot.slane %v1618_v38, 4  ;;  %v1654_v57 = vsel %vm483_vm1, %v1646_v25, %v1653_v45 }
 0x38d   :  { %v6363_v4 = vpop.eup %6362  ;;  %v1596_v27 = vsel %vm483_vm1, %v1595_v21, %v1578_v53  ;;  %v1652_v41 = vsel %vm483_vm1, %v1651_v13, %v1634_v5  ;;  %v1662_v60 = vperm.slane %v1654_v57, %v7104_v22  ;;  %v1664_v15 = vsel %vm483_vm1, %v1663_v11, %v1638_v51  ;;  %v8294_v13 = vpop.xlane.xlu0 %2909 }
 0x38e   :  { %v1602_v43 = vperm.slane %v1596_v27, %v7104_v22  ;;  %v1621_v26 = vrot.slane %v1606_v54, 4  ;;  %v1623_v12 = vrot.slane %v1614_v39, 4  ;;  %v1626_v58 = vsel %vm483_vm1, 0.0, %v1625_v18 }
 0x38f   :  { %v1658_v17 = vperm.slane %v1652_v41, %v7104_v22  ;;  %v1670_v63 = vperm.slane %v1664_v15, %v7104_v22  ;;  %v1674_v45 = vperm.slane %v1666_v24, %v7104_v22  ;;  %v1677_v1 = vrot.slane %v1662_v60, 4 }
 0x390   :  { %v1622_v53 = vsel %vm483_vm1, 0.0, %v1621_v26  ;;  %v1807_v5 = vrot.slane %v1626_v58, 4  ;;  %v2975_v25 = vmul.f32 %v6363_v4, %v8112_v32  ;;  %2999 = vmax.xlane.f32.xlu1 %v2998_v9  ;;  %v3181_v51 = vsel %vm2985_vm4, %v8207_v61, -inf }
 0x391   :  { %v1678_v38 = vsel %vm483_vm1, 0.0, %v1677_v1  ;;  %v1679_v11 = vrot.slane %v1670_v63, 4  ;;  %v1681_v21 = vrot.slane %v1674_v45, 4  ;;  %v1675_v23 = vrot.slane %v1658_v17, 4 }
 0x392   :  { %v1850_v0 = vrot.slane %v1678_v38, 4  ;;  %6231 = vmatmul.msk.f32.vlgmr.msra.gmra.mxu3 %vm2808_vm3, %v2975_v25  ;;  %v1845_v24 = vsel %vm483_vm1, %v1677_v1, %v1658_v17  ;;  %v1619_v54 = vrot.slane %v1602_v43, 4  ;;  %v1624_v57 = vsel %vm483_vm1, 0.0, %v1623_v12 }
 0x393   :  { %v1682_v32 = vsel %vm483_vm1, 0.0, %v1681_v21  ;;  %v1856_v9 = vsel %vm483_vm1, %v1681_v21, %v1670_v63  ;;  %v1676_v4 = vsel %vm483_vm1, 0.0, %v1675_v23  ;;  %v1680_v27 = vsel %vm483_vm1, 0.0, %v1679_v11 }
 0x394   :  { %v1861_v41 = vrot.slane %v1682_v32, 4  ;;  %v1849_v60 = vperm.slane %v1845_v24, %v7071_v59  ;;  %v1851_v15 = vsel %vm483_vm1, %v1850_v0, %v1676_v4  ;;  %v1860_v58 = vperm.slane %v1856_v9, %v7071_v59 }
 0x395   :  { %v1855_v17 = vperm.slane %v1851_v15, %v7071_v59  ;;  %v1620_v45 = vsel %vm483_vm1, 0.0, %v1619_v54  ;;  %v1791_v12 = vsel %vm483_vm1, %v1621_v26, %v1602_v43  ;;  %v1796_v1 = vrot.slane %v1622_v53, 4 }
 0x396   :  { %v1862_v63 = vsel %vm483_vm1, %v1861_v41, %v1680_v27  ;;  %v1869_v25 = vrot.slane %v1849_v60, 4  ;;  %v1881_v38 = vrot.slane %v1860_v58, 4  ;;  %v1795_v11 = vperm.slane %v1791_v12, %v7071_v59 }
 0x397   :  { %v1866_v21 = vperm.slane %v1862_v63, %v7071_v59  ;;  %v1867_v23 = vrot.slane %v1855_v17, 4  ;;  %v1797_v0 = vsel %vm483_vm1, %v1796_v1, %v1620_v45  ;;  %v1802_v24 = vsel %vm483_vm1, %v1625_v18, %v1614_v39 }
 0x398   :  { %3182 = vmax.xlane.f32.xlu1 %v3181_v51  ;;  %v1870_v32 = vsel %vm483_vm1, %v1855_v17, %v1869_v25  ;;  %v1801_v54 = vperm.slane %v1797_v0, %v7071_v59  ;;  %v1806_v43 = vperm.slane %v1802_v24, %v7071_v59  ;;  %v1808_v26 = vsel %vm483_vm1, %v1807_v5, %v1624_v57  ;;  %v2919_v53 = vpop.xlane.xlu2 %2918  ;;  %v2916_v25 = vpop.xlane.xlu0 %2915 }
 0x399   :  { %v1878_v9 = vperm.slane %v1870_v32, %v7104_v22  ;;  %v1882_v4 = vsel %vm483_vm1, %v1866_v21, %v1881_v38  ;;  %v1868_v27 = vsel %vm483_vm1, %v1867_v23, %v1849_v60  ;;  %v1879_v41 = vrot.slane %v1866_v21, 4 }
 0x39a   :  { %6364 = vrcp.f32 %v2919_v53  ;;  %v1890_v39 = vperm.slane %v1882_v4, %v7104_v22  ;;  %v1874_v18 = vperm.slane %v1868_v27, %v7104_v22  ;;  %v1812_v51 = vperm.slane %v1808_v26, %v7071_v59 }
 0x39b   :  { %v1880_v15 = vsel %vm483_vm1, %v1879_v41, %v1860_v58  ;;  %v1815_v17 = vrot.slane %v1795_v11, 4  ;;  %v1827_v45 = vrot.slane %v1806_v43, 4  ;;  %v1897_v5 = vrot.slane %v1878_v9, 4 }
 0x39c   :  { %v1895_v57 = vrot.slane %v1890_v39, 4  ;;  %v1886_v12 = vperm.slane %v1880_v15, %v7104_v22  ;;  %v1813_v1 = vrot.slane %v1801_v54, 4  ;;  %v1825_v63 = vrot.slane %v1812_v51, 4 }
 0x39d   :  { %v1816_v60 = vsel %vm483_vm1, %v1801_v54, %v1815_v17  ;;  %v1828_v38 = vsel %vm483_vm1, %v1812_v51, %v1827_v45  ;;  %v1898_v21 = vsel %vm483_vm1, %v1890_v39, %v1897_v5  ;;  %v1893_v23 = vrot.slane %v1874_v18, 4  ;;  %v8342_v5 = vpop.f32.mrf.mxu1 }
 0x39e   :  { %v1896_v0 = vsel %vm483_vm1, %v1895_v57, %v1878_v9  ;;  %v1891_v24 = vrot.slane %v1886_v12, 4  ;;  %v1824_v58 = vperm.slane %v1816_v60, %v7104_v22  ;;  %v1836_v32 = vperm.slane %v1828_v38, %v7104_v22  ;;  %3581 = vmatpush.msrb.mxu3 %v1898_v21 }
 0x39f   :  { %3552 = vmatpush.msrb.mxu2 %v1896_v0  ;;  %v1814_v26 = vsel %vm483_vm1, %v1813_v1, %v1795_v11  ;;  %v1826_v53 = vsel %vm483_vm1, %v1825_v63, %v1806_v43  ;;  %v1894_v54 = vsel %vm483_vm1, %v1886_v12, %v1893_v23  ;;  %6366 = vrcp.f32 %v2916_v25 }
 0x3a0   :  { %v6365_v4 = vpop.eup %6364  ;;  %v1892_v27 = vsel %vm483_vm1, %v1891_v24, %v1874_v18  ;;  %v1841_v41 = vrot.slane %v1836_v32, 4  ;;  %v1820_v9 = vperm.slane %v1814_v26, %v7104_v22  ;;  %v1832_v39 = vperm.slane %v1826_v53, %v7104_v22  ;;  %3523 = vmatpush.msra.mxu1 %v1894_v54  ;;  %3176 = vmax.xlane.f32.xlu1 %v8273_v6  ;;  %v2937_v15 = vpop.xlane.xlu2 %2936 }
 0x3a1   :  { %v2973_v51 = vmul.f32 %v6365_v4, %v8128_v30  ;;  %3494 = vmatpush.msra.mxu0 %v1892_v27  ;;  %v1843_v11 = vrot.slane %v1824_v58, 4  ;;  %6368 = vrcp.f32 %v2937_v15  ;;  %v3187_v1 = vsel %vm2985_vm4, %v8342_v5, -inf }
 0x3a2   :  { %v1842_v43 = vsel %vm483_vm1, %v1841_v41, %v1824_v58  ;;  %v1837_v17 = vrot.slane %v1832_v39, 4  ;;  %v1839_v45 = vrot.slane %v1820_v9, 4 }
 0x3a3   :  { %3553 = vmatpush.msrb.mxu2 %v1842_v43  ;;  %v1844_v18 = vsel %vm483_vm1, %v1836_v32, %v1843_v11 }
 0x3a4   :  { %v1838_v57 = vsel %vm483_vm1, %v1837_v17, %v1820_v9  ;;  %3582 = vmatpush.msrb.mxu3 %v1844_v18  ;;  %v1840_v12 = vsel %vm483_vm1, %v1832_v39, %v1839_v45  ;;  %6229 = vmatmul.msk.f32.vlgmr.msra.gmra.mxu2 %vm2808_vm3, %v2973_v51 }
 0x3a5   :  { %v6367_v30 = vpop.eup %6366  ;;  %3495 = vmatpush.msra.mxu0 %v1838_v57  ;;  %3524 = vmatpush.msra.mxu1 %v1840_v12 }
 0x3a6   :  { %v2972_v6 = vmul.f32 %v6367_v30, %v8124_v48 }
 0x3a7   :  { %v6369_v25 = vpop.eup %6368 }
 0x3a8   :  { %3188 = vmax.xlane.f32.xlu1 %v3187_v1  ;;  %6228 = vmatmul.msk.f32.gmra.mxu1 %vm2808_vm3, %v2972_v6  ;;  %v2922_v63 = vpop.xlane.xlu2 %2921  ;;  %v2979_v60 = vmul.f32 %v6369_v25, %v8134_v44 }
 0x3a9   :  { %6370 = vrcp.f32 %v2922_v63 }
 0x3ae   :  { %v2907_v38 = vpop.xlane.xlu1 %2906 }
 0x3af   :  { %6372 = vrcp.f32 %v2907_v38  ;;  %v6371_v21 = vpop.eup %6370 }
 0x3b0   :  { %v2946_v23 = vpop.xlane.xlu0 %2945  ;;  %6235 = vmatmul.msk.f32.vlgmr.msra.gmra.mxu1 %vm2808_vm3, %v2979_v60  ;;  %v2928_v0 = vpop.xlane.xlu2 %2927  ;;  %v2974_v48 = vmul.f32 %v6371_v21, %v8141_v3 }
 0x3b1   :  { %6374 = vrcp.f32 %v2928_v0 }
 0x3b2   :  { %6230 = vmatmul.msk.f32.gmra.mxu2 %vm2808_vm3, %v2974_v48  ;;  %6376 = vrcp.f32 %v8294_v13 }
 0x3b5   :  { %v6373_v24 = vpop.eup %6372 }
 0x3b6   :  { %v2969_v58 = vmul.f32 %v6373_v24, %v8147_v36  ;;  %v2931_v54 = vpop.xlane.xlu1 %2930 }
 0x3b7   :  { %v6375_v32 = vpop.eup %6374 }
 0x3b8   :  { %6225 = vmatmul.msk.f32.vlgmr.msrb.gmra.mxu0 %vm2808_vm3, %v2969_v58  ;;  %v2934_v44 = vpop.xlane.xlu0 %2933  ;;  %v2943_v26 = vpop.xlane.xlu2 %2942  ;;  %v2976_v53 = vmul.f32 %v6375_v32, %v8149_v50 }
 0x3b9   :  { %6378 = vrcp.f32 %v2943_v26  ;;  %v6377_v4 = vpop.eup %6376 }
 0x3ba   :  { %6232 = vmatmul.msk.f32.gmra.mxu3 %vm2808_vm3, %v2976_v53  ;;  %6380 = vrcp.f32 %v2931_v54  ;;  %v2970_v3 = vmul.f32 %v6377_v4, %v8118_v49 }
 0x3bb   :  { %6382 = vrcp.f32 %v2946_v23 }
 0x3bf   :  { %v6379_v27 = vpop.eup %6378 }
 0x3c0   :  { %6226 = vmatmul.msk.f32.gmra.mxu0 %vm2808_vm3, %v2970_v3  ;;  %v2997_v36 = vpop.xlane.xlu0 %2996  ;;  %v2981_v13 = vmul.f32 %v6379_v27, %v8164_v31  ;;  %v2949_v41 = vpop.xlane.xlu2 %2948 }
 0x3c1   :  { %6384 = vrcp.f32 %v2949_v41  ;;  %v6381_v9 = vpop.eup %6380  ;;  %v3013_v25 = vsub.f32 %v8175_v28, %v2997_v36 }
 0x3c2   :  { %6237 = vmatmul.msk.f32.vlgmr.msrb.gmra.mxu2 %vm2808_vm3, %v2981_v13  ;;  %6386 = vrcp.f32 %v2934_v44  ;;  %v6383_v50 = vpop.eup %6382  ;;  %v2977_v39 = vmul.f32 %v6381_v9, %v8160_v37 }
 0x3c3   :  { %v2982_v31 = vmul.f32 %v6383_v50, %v8153_v47  ;;  %v3024_v38 = vmul.f32 1.442695, %v3013_v25 }
 0x3c7   :  { %v6385_v51 = vpop.eup %6384 }
 0x3c8   :  { %6233 = vmatmul.msk.f32.vlgmr.msra.gmra.mxu0 %vm2808_vm3, %v2977_v39  ;;  %v2991_v49 = vpop.xlane.xlu0 %2990  ;;  %v2983_v11 = vmul.f32 %v6385_v51, %v8177_v34  ;;  %v2940_v43 = vpop.xlane.xlu2 %2939 }
 0x3c9   :  { %v3011_v15 = vsub.f32 %v8187_v46, %v2991_v49  ;;  %6388 = vrcp.f32 %v2940_v43  ;;  %v6387_v17 = vpop.eup %6386 }
 0x3ca   :  { %6238 = vmatmul.msk.f32.gmra.mxu2 %vm2808_vm3, %v2982_v31  ;;  %6239 = vmatmul.msk.f32.vlgmr.msrb.gmra.mxu3 %vm2808_vm3, %v2983_v11  ;;  %v2978_v37 = vmul.f32 %v6387_v17, %v8162_v7 }
 0x3cb   :  { %v3020_v45 = vmul.f32 1.442695, %v3011_v15 }
 0x3cd   :  { %6390 = vpow2.f32 %v3020_v45 }
 0x3cf   :  { %v6389_v18 = vpop.eup %6388 }
 0x3d0   :  { %6234 = vmatmul.msk.f32.gmra.mxu0 %vm2808_vm3, %v2978_v37  ;;  %v3180_v57 = vpop.xlane.xlu0 %3179  ;;  %v2988_v34 = vpop.xlane.xlu2 %2987  ;;  %v2980_v46 = vmul.f32 %v6389_v18, %v8189_v62 }
 0x3d1   :  { %v3010_v12 = vsub.f32 %v8183_v29, %v2988_v34  ;;  %v3198_v48 = vsub.f32 %v8201_v55, %v3180_v57 }
 0x3d2   :  { %6236 = vmatmul.msk.f32.gmra.mxu1 %vm2808_vm3, %v2980_v46 }
 0x3d3   :  { %v8375_v47 = vpop.eup %6390  ;;  %v3018_v30 = vmul.f32 1.442695, %v3010_v12  ;;  %v3208_v24 = vmul.f32 1.442695, %v3198_v48 }
 0x3d4   :  { %v3037_v6 = vsel %vm2985_vm4, %v8375_v47, 0.0 }
 0x3d5   :  { %3038 = vadd.xlane.f32.xlu2 %v3037_v6  ;;  %6392 = vpow2.f32 %v3018_v30 }
 0x3d8   :  { %v3174_v7 = vpop.xlane.xlu0 %3173  ;;  %v3009_v1 = vpop.xlane.xlu2 %3008 }
 0x3d9   :  { %v3196_v63 = vsub.f32 %v8209_v52, %v3174_v7  ;;  %v3017_v9 = vsub.f32 %v8195_v19, %v3009_v1 }
 0x3db   :  { %v3204_v60 = vmul.f32 1.442695, %v3196_v63  ;;  %v8382_v62 = vpop.eup %6392  ;;  %v3032_v51 = vmul.f32 1.442695, %v3017_v9 }
 0x3dc   :  { %v3034_v29 = vsel %vm2985_vm4, %v8382_v62, 0.0 }
 0x3dd   :  { %6394 = vpow2.f32 %v3204_v60  ;;  %3035 = vadd.xlane.f32.xlu1 %v3034_v29 }
 0x3de   :  { %6396 = vpow2.f32 %v3024_v38 }
 0x3e0   :  { %v3003_v21 = vpop.xlane.xlu2 %3002  ;;  %v3195_v58 = vpop.xlane.xlu0 %3194 }
 0x3e1   :  { %v3015_v23 = vsub.f32 %v8219_v14, %v3003_v21  ;;  %v3203_v26 = vsub.f32 %v8217_v56, %v3195_v58 }
 0x3e3   :  { %v8387_v0 = vpop.eup %6394  ;;  %v3028_v52 = vmul.f32 1.442695, %v3015_v23  ;;  %v3218_v4 = vmul.f32 1.442695, %v3203_v26 }
 0x3e4   :  { %v3220_v28 = vsel %vm2985_vm4, %v8387_v0, 0.0  ;;  %v8392_v32 = vpop.eup %6396 }
 0x3e5   :  { %3221 = vadd.xlane.f32.xlu2 %v3220_v28  ;;  %6398 = vpow2.f32 %v3028_v52  ;;  %v3043_v55 = vsel %vm2985_vm4, %v8392_v32, 0.0 }
 0x3e6   :  { %6400 = vpow2.f32 %v3208_v24 }
 0x3e8   :  { %v3192_v44 = vpop.xlane.xlu2 %3191 }
 0x3eb   :  { %v2952_v14 = vpop.xlane.xlu1 %2951  ;;  %v8395_v53 = vpop.eup %6398 }
 0x3ec   :  { %6402 = vrcp.f32 %v2952_v14  ;;  %v3049_v54 = vsel %vm2985_vm4, %v8395_v53, 0.0  ;;  %v8401_v3 = vpop.eup %6400 }
 0x3ed   :  { %3044 = vadd.xlane.f32.xlu2 %v3043_v55  ;;  %3050 = vadd.xlane.f32.xlu1 %v3049_v54  ;;  %6404 = vpow2.f32 %v3218_v4  ;;  %v3226_v39 = vsel %vm2985_vm4, %v8401_v3, 0.0 }
 0x3f0   :  { %v3186_v27 = vpop.xlane.xlu2 %3185 }
 0x3f1   :  { %v3200_v13 = vsub.f32 %v8236_v42, %v3186_v27  ;;  %v3202_v42 = vsub.f32 %v8226_v20, %v3192_v44 }
 0x3f2   :  { %v6403_v36 = vpop.eup %6402 }
 0x3f3   :  { %v2994_v56 = vpop.xlane.xlu1 %2993  ;;  %v2984_v41 = vmul.f32 %v6403_v36, %v8230_v33  ;;  %v3212_v50 = vmul.f32 1.442695, %v3200_v13  ;;  %v8409_v49 = vpop.eup %6404  ;;  %v3216_v43 = vmul.f32 1.442695, %v3202_v42 }
 0x3f4   :  { %v3241_v19 = vsel %vm2985_vm4, %v8409_v49, 0.0  ;;  %v3012_v6 = vsub.f32 %v8173_v2, %v2994_v56 }
 0x3f5   :  { %6240 = vmatmul.msk.f32.gmra.mxu3 %vm2808_vm3, %v2984_v41  ;;  %3227 = vadd.xlane.f32.xlu2 %v3226_v39  ;;  %6406 = vpow2.f32 %v3212_v50 }
 0x3f6   :  { %6408 = vpow2.f32 %v3032_v51  ;;  %v3022_v1 = vmul.f32 1.442695, %v3012_v6 }
 0x3f7   :  { %6410 = vpow2.f32 %v3216_v43 }
 0x3fb   :  { %v3006_v11 = vpop.xlane.xlu1 %3005  ;;  %v8411_v15 = vpop.eup %6406 }
 0x3fc   :  { %v3232_v33 = vsel %vm2985_vm4, %v8411_v15, 0.0  ;;  %v8418_v31 = vpop.eup %6408  ;;  %v8433_v25 = vpop.f32.mrf.mxu1  ;;  %v3016_v2 = vsub.f32 %v8185_v10, %v3006_v11 }
 0x3fd   :  { %3242 = vadd.xlane.f32.xlu2 %v3241_v19  ;;  %3233 = vadd.xlane.f32.xlu1 %v3232_v33  ;;  %v3055_v37 = vsel %vm2985_vm4, %v8418_v31, 0.0  ;;  %v8423_v20 = vpop.eup %6410  ;;  %v3972_v39 = vrot.slane %v8433_v25, 4 }
 0x3fe   :  { %v3238_v34 = vsel %vm2985_vm4, %v8423_v20, 0.0 }
 0x403   :  { %v3000_v17 = vpop.xlane.xlu1 %2999 }
 0x404   :  { %v3014_v45 = vsub.f32 %v8197_v35, %v3000_v17 }
 0x405   :  { %3056 = vadd.xlane.f32.xlu1 %v3055_v37 }
 0x406   :  { %v3026_v18 = vmul.f32 1.442695, %v3014_v45 }
 0x408   :  { %6412 = vpow2.f32 %v3026_v18 }
 0x40b   :  { %v3183_v57 = vpop.xlane.xlu1 %3182 }
 0x40c   :  { %v3199_v28 = vsub.f32 %v8207_v61, %v3183_v57 }
 0x40d   :  { %3239 = vadd.xlane.f32.xlu1 %v3238_v34 }
 0x40e   :  { %v8427_v46 = vpop.eup %6412  ;;  %v3210_v44 = vmul.f32 1.442695, %v3199_v28 }
 0x40f   :  { %v3046_v12 = vsel %vm2985_vm4, %v8427_v46, 0.0 }
 0x410   :  { %3047 = vadd.xlane.f32.xlu0 %v3046_v12 }
 0x413   :  { %v3177_v35 = vpop.xlane.xlu1 %3176 }
 0x414   :  { %v3197_v30 = vsub.f32 %v8256_v40, %v3177_v35 }
 0x415   :  { %v8456_v58 = vpop.f32.mrf.mxu3 }
 0x416   :  { %v3206_v7 = vmul.f32 1.442695, %v3197_v30  ;;  %v3970_v14 = vrot.slane %v8456_v58, 4  ;;  %v3973_v19 = vsel %vm483_vm1, %v8456_v58, %v3972_v39 }
 0x417   :  { %v3981_v30 = vperm.slane %v3973_v19, %v7071_v59 }
 0x418   :  { %6414 = vpow2.f32 %v3206_v7  ;;  %v3971_v13 = vsel %vm483_vm1, %v3970_v14, %v8433_v25 }
 0x419   :  { %6416 = vpow2.f32 %v3022_v1  ;;  %v3977_v9 = vperm.slane %v3971_v13, %v7071_v59 }
 0x41b   :  { %v3189_v63 = vpop.xlane.xlu1 %3188  ;;  %v3982_v17 = vrot.slane %v3977_v9, 4 }
 0x41c   :  { %v3201_v29 = vsub.f32 %v8342_v5, %v3189_v63  ;;  %v3030_v5 = vmul.f32 1.442695, %v3016_v2 }
 0x41e   :  { %v8435_v60 = vpop.eup %6414  ;;  %v3214_v21 = vmul.f32 1.442695, %v3201_v29 }
 0x41f   :  { %v3223_v38 = vsel %vm2985_vm4, %v8435_v60, 0.0  ;;  %v8440_v23 = vpop.eup %6416 }
 0x420   :  { %3224 = vadd.xlane.f32.xlu0 %v3223_v38  ;;  %6418 = vpow2.f32 %v3214_v21  ;;  %v3040_v48 = vsel %vm2985_vm4, %v8440_v23, 0.0 }
 0x421   :  { %6420 = vpow2.f32 %v3030_v5 }
 0x422   :  { %6422 = vpow2.f32 %v3210_v44 }
 0x425   :  { %v8442_v40 = vpop.f32.mrf.mxu1 }
 0x426   :  { %3630 = vmatpush.msrb.mxu1 %v8442_v40  ;;  %v8449_v52 = vpop.eup %6418  ;;  %v4028_v57 = vrot.slane %v8442_v40, 4 }
 0x427   :  { %v8452_v24 = vpop.f32.mrf.mxu2  ;;  %v3235_v10 = vsel %vm2985_vm4, %v8449_v52, 0.0  ;;  %v8458_v26 = vpop.eup %6420 }
 0x428   :  { %3041 = vadd.xlane.f32.xlu0 %v3040_v48  ;;  %3631 = vmatpush.msrb.mxu1 %v8433_v25  ;;  %9619 = vst [vmem:[#allocation23_spill] sm:$0xff] %v8452_v24  ;;  %v3958_v55 = vrot.slane %v8452_v24, 4  ;;  %v3052_v36 = vsel %vm2985_vm4, %v8458_v26, 0.0  ;;  %v8479_v50 = vpop.eup %6422  ;;  %v3994_v48 = vrot.slane %v3981_v30, 4 }
 0x429   :  { %v3229_v18 = vsel %vm2985_vm4, %v8479_v50, 0.0 }
 0x430   :  { %3236 = vadd.xlane.f32.xlu0 %v3235_v10 }
 0x435   :  { %v8462_v54 = vpop.f32.mrf.mxu0  ;;  %v8467_v27 = vpop.f32.mrf.mxu2 }
 0x436   :  { %9620 = vst [vmem:[#allocation25_spill] sm:$0xff] %v8462_v54  ;;  %v3959_v61 = vsel %vm483_vm1, %v3958_v55, %v8462_v54  ;;  %v3960_v4 = vrot.slane %v8462_v54, 4  ;;  %3653 = vmatpush.msra.mxu2 %v8467_v27  ;;  %v4014_v33 = vrot.slane %v8467_v27, 4 }
 0x437   :  { %v3965_v56 = vperm.slane %v3959_v61, %v7071_v59 }
 0x438   :  { %3053 = vadd.xlane.f32.xlu0 %v3052_v36  ;;  %v3961_v41 = vsel %vm483_vm1, %v8452_v24, %v3960_v4  ;;  %3654 = vmatpush.msra.mxu2 %v8452_v24 }
 0x439   :  { %v3969_v51 = vperm.slane %v3961_v41, %v7071_v59  ;;  %v3984_v11 = vrot.slane %v3965_v56, 4  ;;  %v3983_v7 = vsel %vm483_vm1, %v3982_v17, %v3965_v56  ;;  %v8524_v41 = vpop.f32.mrf.mxu1 }
 0x43a   :  { %v3989_v5 = vperm.slane %v3983_v7, %v7104_v22  ;;  %9624 = vst [vmem:[#allocation30_spill] sm:$0xff] %v8524_v41 }
 0x43b   :  { %v3985_v34 = vsel %vm483_vm1, %v3977_v9, %v3984_v11  ;;  %v3996_v12 = vrot.slane %v3969_v51, 4  ;;  %v3995_v4 = vsel %vm483_vm1, %v3994_v48, %v3969_v51 }
 0x43c   :  { %v3993_v29 = vperm.slane %v3985_v34, %v7104_v22  ;;  %v4006_v11 = vrot.slane %v3989_v5, 4  ;;  %v4001_v17 = vperm.slane %v3995_v4, %v7104_v22 }
 0x43d   :  { %v8483_v42 = vpop.f32.mrf.mxu0  ;;  %v8488_v43 = vpop.f32.mrf.mxu3  ;;  %v3997_v2 = vsel %vm483_vm1, %v3981_v30, %v3996_v12  ;;  %v4084_v12 = vrot.slane %v8524_v41, 4 }
 0x43e   :  { %9621 = vst [vmem:[#allocation24_spill] sm:$0xff] %v8483_v42  ;;  %3607 = vmatpush.msrb.mxu0 %v8483_v42  ;;  %v4016_v45 = vrot.slane %v8483_v42, 4  ;;  %v4026_v37 = vrot.slane %v8488_v43, 4  ;;  %3676 = vmatpush.msra.mxu3 %v8488_v43  ;;  %v4015_v35 = vsel %vm483_vm1, %v4014_v33, %v8483_v42  ;;  %v4029_v63 = vsel %vm483_vm1, %v8488_v43, %v4028_v57 }
 0x43f   :  { %v4021_v38 = vperm.slane %v4015_v35, %v7071_v59  ;;  %v4037_v10 = vperm.slane %v4029_v63, %v7071_v59  ;;  %v4005_v36 = vperm.slane %v3997_v2, %v7104_v22  ;;  %v4008_v13 = vrot.slane %v3993_v29, 4 }
 0x440   :  { %3608 = vmatpush.msrb.mxu0 %v8462_v54  ;;  %3230 = vadd.xlane.f32.xlu0 %v3229_v18  ;;  %v4017_v6 = vsel %vm483_vm1, %v8467_v27, %v4016_v45  ;;  %v4027_v21 = vsel %vm483_vm1, %v4026_v37, %v8442_v40  ;;  %v8531_v37 = vld [vmem:[#allocation8] sm:$0x3] }
 0x441   :  { %3677 = vmatpush.msra.mxu3 %v8456_v58  ;;  %v4025_v1 = vperm.slane %v4017_v6, %v7071_v59  ;;  %v4033_v14 = vperm.slane %v4027_v21, %v7071_v59  ;;  %v4040_v56 = vrot.slane %v4021_v38, 4  ;;  %v4050_v19 = vrot.slane %v4037_v10, 4 }
 0x442   :  { %v4009_v18 = vsel %vm483_vm1, 0.0, %v4008_v13  ;;  %v4012_v34 = vrot.slane %v4005_v36, 4  ;;  %v4007_v6 = vsel %vm483_vm1, 0.0, %v4006_v11  ;;  %v8545_v21 = vperm.slane %v8531_v37, 0 }
 0x443   :  { %v4052_v28 = vrot.slane %v4025_v1, 4  ;;  %v4038_v45 = vrot.slane %v4033_v14, 4  ;;  %v4041_v57 = vsel %vm483_vm1, %v4033_v14, %v4040_v56  ;;  %v4051_v7 = vsel %vm483_vm1, %v4050_v19, %v4025_v1 }
 0x444   :  { %v4187_v2 = vrot.slane %v4009_v18, 4 }
 0x445   :  { %v8516_v44 = vpop.f32.mrf.mxu0  ;;  %v8520_v61 = vpop.f32.mrf.mxu2  ;;  %v4053_v33 = vsel %vm483_vm1, %v4037_v10, %v4052_v28  ;;  %v4039_v48 = vsel %vm483_vm1, %v4038_v45, %v4021_v38  ;;  %v4049_v28 = vperm.slane %v4041_v57, %v7104_v22  ;;  %v4013_v38 = vsel %vm483_vm1, 0.0, %v4012_v34 }
 0x446   :  { %9622 = vst [vmem:[#allocation28_spill] sm:$0xff] %v8516_v44  ;;  %v4072_v55 = vrot.slane %v8516_v44, 4  ;;  %v4070_v9 = vrot.slane %v8520_v61, 4  ;;  %v4061_v35 = vperm.slane %v4053_v33, %v7104_v22  ;;  %v4045_v45 = vperm.slane %v4039_v48, %v7104_v22 }
 0x447   :  { %9623 = vst [vmem:[#allocation29_spill] sm:$0xff] %v8520_v61 }
 0x448   :  { %v3039_v39 = vpop.xlane.xlu2 %3038  ;;  %v4073_v51 = vsel %vm483_vm1, %v8520_v61, %v4072_v55  ;;  %v4071_v30 = vsel %vm483_vm1, %v4070_v9, %v8516_v44  ;;  %v4010_v55 = vrot.slane %v4001_v17, 4  ;;  %v4057_v9 = vperm.slane %v4051_v7, %v7104_v22 }
 0x449   :  { %6424 = vrcp.f32 %v3039_v39  ;;  %v4081_v63 = vperm.slane %v4073_v51, %v7071_v59  ;;  %v4077_v4 = vperm.slane %v4071_v30, %v7071_v59  ;;  %v4068_v39 = vrot.slane %v4061_v35, 4 }
 0x44a   :  { %v4064_v35 = vrot.slane %v4049_v28, 4  ;;  %v4011_v7 = vsel %vm483_vm1, 0.0, %v4010_v55 }
 0x44b   :  { %v4108_v51 = vrot.slane %v4081_v63, 4 }
 0x44d   :  { %v8542_v29 = vpop.f32.mrf.mxu0  ;;  %v8549_v10 = vpop.f32.mrf.mxu2 }
 0x44e   :  { %9625 = vst [vmem:[#allocation31_spill] sm:$0xff] %v8542_v29  ;;  %v8551_v14 = vpop.f32.mrf.mxu3  ;;  %3699 = vmatpush.msra.mxu0 %v8542_v29  ;;  %3745 = vmatpush.msrb.mxu2 %v8549_v10 }
 0x44f   :  { %9626 = vst [vmem:[#allocation32_spill] sm:$0xff] %v8549_v10  ;;  %v6425_v1 = vpop.eup %6424  ;;  %v4082_v36 = vrot.slane %v8551_v14, 4  ;;  %v4085_v56 = vsel %vm483_vm1, %v8551_v14, %v4084_v12  ;;  %v8562_v19 = vpop.f32.mrf.mxu1  ;;  %v4182_v12 = vsel %vm483_vm1, %v4008_v13, %v3989_v5  ;;  %v4193_v13 = vsel %vm483_vm1, %v4012_v34, %v4001_v17 }
 0x450   :  { %9627 = vst [vmem:[#allocation33_spill] sm:$0xff] %v8551_v14  ;;  %v4093_v11 = vperm.slane %v4085_v56, %v7071_v59  ;;  %3700 = vmatpush.msra.mxu0 %v8516_v44  ;;  %v3067_v33 = vmul.f32 %v6425_v1, %v8375_v47  ;;  %3722 = vmatpush.msra.mxu1 %v8562_v19  ;;  %v3036_v57 = vpop.xlane.xlu1 %3035  ;;  %v4198_v56 = vrot.slane %v4013_v38, 4  ;;  %v4096_v47 = vrot.slane %v4077_v4, 4 }
 0x451   :  { %9628 = vst [vmem:[#allocation34_spill] sm:$0xff] %v8562_v19  ;;  %v4083_v18 = vsel %vm483_vm1, %v4082_v36, %v8524_v41  ;;  %3746 = vmatpush.msrb.mxu2 %v8520_v61  ;;  %6426 = vrcp.f32 %v3036_v57  ;;  %v4069_v36 = vsel %vm483_vm1, 0.0, %v4068_v39  ;;  %v4186_v5 = vperm.slane %v4182_v12, %v7071_v59 }
 0x452   :  { %v4089_v30 = vperm.slane %v4083_v18, %v7071_v59  ;;  %v4109_v48 = vsel %vm483_vm1, %v4093_v11, %v4108_v51  ;;  %3723 = vmatpush.msra.mxu1 %v8524_v41  ;;  %v8577_v1 = vmul.f32 %v8545_v21, %v3067_v33  ;;  %v4106_v16 = vrot.slane %v4093_v11, 4 }
 0x453   :  { %v4188_v51 = vsel %vm483_vm1, %v4187_v2, %v4007_v6  ;;  %v4066_v18 = vrot.slane %v4057_v9, 4  ;;  %v4117_v57 = vperm.slane %v4109_v48, %v7104_v22  ;;  %v4199_v33 = vsel %vm483_vm1, %v4198_v56, %v4011_v7 }
 0x454   :  { %v4094_v28 = vrot.slane %v4089_v30, 4  ;;  %v4097_v55 = vsel %vm483_vm1, %v4089_v30, %v4096_v47  ;;  %v3087_v38 = vsel %vm2985_vm4, %v8577_v1, -inf  ;;  %v4252_v8 = vrot.slane %v4069_v36, 4 }
 0x455   :  { %3088 = vmax.xlane.f32.xlu2 %v3087_v38  ;;  %v4197_v11 = vperm.slane %v4193_v13, %v7071_v59  ;;  %v4105_v12 = vperm.slane %v4097_v55, %v7104_v22  ;;  %v4107_v17 = vsel %vm483_vm1, %v4106_v16, %v4081_v63  ;;  %v4192_v30 = vperm.slane %v4188_v51, %v7071_v59 }
 0x456   :  { %v4062_v47 = vrot.slane %v4045_v45, 4  ;;  %v4095_v6 = vsel %vm483_vm1, %v4094_v28, %v4077_v4  ;;  %v4203_v2 = vperm.slane %v4199_v33, %v7071_v59  ;;  %v4206_v48 = vrot.slane %v4186_v5, 4 }
 0x457   :  { %v6427_v41 = vpop.eup %6426  ;;  %v4065_v38 = vsel %vm483_vm1, 0.0, %v4064_v35  ;;  %v4124_v7 = vrot.slane %v4117_v57, 4  ;;  %v4067_v13 = vsel %vm483_vm1, 0.0, %v4066_v18  ;;  %v4113_v16 = vperm.slane %v4107_v17, %v7104_v22 }
 0x458   :  { %v3222_v34 = vpop.xlane.xlu2 %3221  ;;  %v3066_v56 = vmul.f32 %v6427_v41, %v8382_v62  ;;  %v4063_v36 = vsel %vm483_vm1, 0.0, %v4062_v47  ;;  %v4218_v63 = vrot.slane %v4197_v11, 4  ;;  %v4241_v55 = vrot.slane %v4065_v38, 4 }
 0x459   :  { %v4253_v51 = vsel %vm483_vm1, %v4252_v8, %v4067_v13  ;;  %v4101_v4 = vperm.slane %v4095_v6, %v7104_v22  ;;  %v4120_v28 = vrot.slane %v4105_v12, 4  ;;  %v4247_v57 = vsel %vm483_vm1, %v4068_v39, %v4057_v9 }
 0x45a   :  { %v8602_v33 = vmul.f32 %v8545_v21, %v3066_v56  ;;  %v4242_v62 = vsel %vm483_vm1, %v4241_v55, %v4063_v36  ;;  %v8607_v41 = vperm.slane %v4253_v51, %v7071_v59  ;;  %v4204_v18 = vrot.slane %v4192_v30, 4 }
 0x45b   :  { %v4216_v47 = vrot.slane %v4203_v2, 4  ;;  %v4125_v17 = vsel %vm483_vm1, 0.0, %v4124_v7  ;;  %v4236_v6 = vsel %vm483_vm1, %v4064_v35, %v4045_v45  ;;  %v8614_v12 = vperm.slane %v4242_v62, %v7071_v59 }
 0x45c   :  { %v3084_v8 = vsel %vm2985_vm4, %v8602_v33, -inf  ;;  %v8617_v9 = vperm.slane %v4247_v57, %v7071_v59  ;;  %v4270_v39 = vrot.slane %v8607_v41, 4  ;;  %v4205_v38 = vsel %vm483_vm1, %v4204_v18, %v4186_v5  ;;  %v8628_v57 = vld [vmem:[#allocation8 + $0x2] sm:$0x3] }
 0x45d   :  { %3085 = vmax.xlane.f32.xlu0 %v3084_v8  ;;  %v4217_v56 = vsel %vm483_vm1, %v4216_v47, %v4197_v11  ;;  %v4122_v36 = vrot.slane %v4113_v16, 4  ;;  %v4258_v55 = vrot.slane %v8614_v12, 4  ;;  %v4219_v45 = vsel %vm483_vm1, %v4203_v2, %v4218_v63 }
 0x45e   :  { %v4271_v35 = vsel %vm483_vm1, %v4270_v39, %v8617_v9  ;;  %v4306_v62 = vrot.slane %v4125_v17, 4  ;;  %v8631_v8 = vperm.slane %v4236_v6, %v7071_v59  ;;  %v4121_v5 = vsel %vm483_vm1, 0.0, %v4120_v28 }
 0x45f   :  { %v4207_v11 = vsel %vm483_vm1, %v4192_v30, %v4206_v48  ;;  %v4118_v18 = vrot.slane %v4101_v4, 4  ;;  %v8636_v47 = vperm.slane %v4219_v45, %v7104_v22  ;;  %v8641_v63 = vperm.slane %v4271_v35, %v7104_v22 }
 0x460   :  { %v8622_v13 = vpop.xlane.xlu2 %3044  ;;  %v3051_v51 = vpop.xlane.xlu1 %3050  ;;  %v4259_v2 = vsel %vm483_vm1, %v4258_v55, %v8631_v8  ;;  %v4123_v17 = vsel %vm483_vm1, 0.0, %v4122_v36  ;;  %v8645_v6 = vperm.slane %v8628_v57, 0  ;;  %v4295_v30 = vrot.slane %v4121_v5, 4 }
 0x461   :  { %6428 = vrcp.f32 %v3051_v51  ;;  %v4119_v39 = vsel %vm483_vm1, 0.0, %v4118_v18  ;;  %v4301_v48 = vsel %vm483_vm1, %v4124_v7, %v4113_v16  ;;  %v4307_v51 = vsel %vm483_vm1, %v4306_v62, %v4123_v17 }
 0x462   :  { %6430 = vrcp.f32 %v3222_v34  ;;  %v8649_v34 = vperm.slane %v4207_v11, %v7104_v22  ;;  %v8654_v55 = vperm.slane %v4259_v2, %v7104_v22  ;;  %v8657_v45 = vperm.slane %v4307_v51, %v7071_v59 }
 0x463   :  { %v4211_v36 = vperm.slane %v4205_v38, %v7104_v22  ;;  %v4223_v35 = vperm.slane %v4217_v56, %v7104_v22  ;;  %v4282_v11 = vrot.slane %v8641_v63, 4  ;;  %v4290_v5 = vsel %vm483_vm1, %v4120_v28, %v4101_v4 }
 0x464   :  { %v4296_v7 = vsel %vm483_vm1, %v4295_v30, %v4119_v39  ;;  %v4232_v16 = vrot.slane %v8636_v47, 4  ;;  %v8670_v38 = vperm.slane %v4301_v48, %v7071_v59  ;;  %v4324_v4 = vrot.slane %v8657_v45, 4 }
 0x465   :  { %v8667_v17 = vperm.slane %v4296_v7, %v7071_v59  ;;  %v4228_v56 = vrot.slane %v4223_v35, 4  ;;  %v4230_v51 = vrot.slane %v4211_v36, 4  ;;  %v8681_v39 = vperm.slane %v4290_v5, %v7071_v59 }
 0x466   :  { %v8674_v61 = vsel %vm483_vm1, %v4232_v16, %v8649_v34  ;;  %v4325_v48 = vsel %vm483_vm1, %v4324_v4, %v8670_v38 }
 0x467   :  { %v6429_v44 = vpop.eup %6428  ;;  %v8688_v30 = vsel %vm483_vm1, %v4223_v35, %v4230_v51  ;;  %v4128_v51 = vrot.slane %v8542_v29, 4 }
 0x468   :  { %v3228_v18 = vpop.xlane.xlu2 %3227  ;;  %v6431_v62 = vpop.eup %6430  ;;  %v3071_v2 = vmul.f32 %v6429_v44, %v8395_v53  ;;  %v4312_v53 = vrot.slane %v8667_v17, 4  ;;  %v8685_v44 = vperm.slane %v8531_v37, 1  ;;  %v8702_v37 = vperm.slane %v4325_v48, %v7104_v22 }
 0x469   :  { %6432 = vrcp.f32 %v3228_v18  ;;  %v8694_v18 = vsel %vm483_vm1, %v4282_v11, %v8654_v55  ;;  %v3252_v5 = vmul.f32 %v6431_v62, %v8387_v0  ;;  %v4126_v62 = vrot.slane %v8549_v10, 4 }
 0x46a   :  { %v8678_v28 = vmul.f32 %v8645_v6, %v3071_v2  ;;  %v4313_v16 = vsel %vm483_vm1, %v4312_v53, %v8681_v39  ;;  %v8708_v2 = vsel %vm483_vm1, %v4228_v56, %v4211_v36  ;;  %v4336_v4 = vrot.slane %v8702_v37, 4 }
 0x46b   :  { %v8705_v35 = vperm.slane %v4313_v16, %v7104_v22  ;;  %v8715_v53 = vmul.f32 %v8685_v44, %v3252_v5  ;;  %v4129_v36 = vsel %vm483_vm1, %v8549_v10, %v4128_v51 }
 0x46c   :  { %9629 = vst [vmem:[#allocation35_spill] sm:$0xff] %v8678_v28  ;;  %v3099_v7 = vsel %vm2985_vm4, %v8678_v28, -inf  ;;  %v4137_v16 = vperm.slane %v4129_v36, %v7071_v59 }
 0x46d   :  { %3100 = vmax.xlane.f32.xlu2 %v3099_v7  ;;  %v8719_v48 = vsel %vm483_vm1, %v4336_v4, %v8705_v35  ;;  %v3270_v5 = vsel %vm2985_vm4, %v8715_v53, -inf }
 0x46f   :  { %v6433_v11 = vpop.eup %6432 }
 0x470   :  { %v3254_v0 = vmul.f32 %v6433_v11, %v8401_v3  ;;  %v4127_v3 = vsel %vm483_vm1, %v4126_v62, %v8542_v29  ;;  %v4140_v11 = vrot.slane %v8562_v19, 4  ;;  %v3234_v4 = vpop.xlane.xlu1 %3233  ;;  %v4164_v62 = vrot.slane %v4137_v16, 4 }
 0x471   :  { %6434 = vrcp.f32 %v3234_v4 }
 0x472   :  { %v8722_v7 = vmul.f32 %v8685_v44, %v3254_v0  ;;  %v4133_v0 = vperm.slane %v4127_v3, %v7071_v59 }
 0x474   :  { %v3276_v56 = vsel %vm2985_vm4, %v8722_v7, -inf }
 0x475   :  { %3277 = vmax.xlane.f32.xlu0 %v3276_v56  ;;  %3271 = vmax.xlane.f32.xlu2 %v3270_v5  ;;  %v4152_v5 = vrot.slane %v4133_v0, 4 }
 0x478   :  { %v8735_v54 = vpop.f32.mrf.mxu3 }
 0x479   :  { %9630 = vst [vmem:[#allocation36_spill] sm:$0xff] %v8735_v54  ;;  %v4138_v51 = vrot.slane %v8735_v54, 4  ;;  %v4141_v10 = vsel %vm483_vm1, %v8735_v54, %v4140_v11  ;;  %3768 = vmatpush.msrb.mxu3 %v8735_v54  ;;  %v6435_v54 = vpop.eup %6434 }
 0x47a   :  { %v4149_v56 = vperm.slane %v4141_v10, %v7071_v59 }
 0x47b   :  { %v4139_v36 = vsel %vm483_vm1, %v4138_v51, %v8562_v19  ;;  %3769 = vmatpush.msrb.mxu3 %v8551_v14  ;;  %v4272_v51 = vrot.slane %v8617_v9, 4  ;;  %v8753_v14 = vperm.slane %v8628_v57, 1 }
 0x47c   :  { %v4145_v3 = vperm.slane %v4139_v36, %v7071_v59  ;;  %v4165_v29 = vsel %vm483_vm1, %v4149_v56, %v4164_v62  ;;  %v4162_v42 = vrot.slane %v4149_v56, 4  ;;  %v3256_v62 = vmul.f32 %v6435_v54, %v8411_v15 }
 0x47d   :  { %v4173_v11 = vperm.slane %v4165_v29, %v7104_v22  ;;  %v4234_v29 = vrot.slane %v8649_v34, 4  ;;  %v4260_v15 = vrot.slane %v8631_v8, 4 }
 0x47e   :  { %v4153_v24 = vsel %vm483_vm1, %v4145_v3, %v4152_v5  ;;  %v4150_v28 = vrot.slane %v4145_v3, 4  ;;  %v4163_v10 = vsel %vm483_vm1, %v4162_v42, %v4137_v16  ;;  %v8762_v42 = vmul.f32 %v8753_v14, %v3256_v62 }
 0x47f   :  { %v4161_v4 = vperm.slane %v4153_v24, %v7104_v22  ;;  %v4180_v19 = vrot.slane %v4173_v11, 4  ;;  %v4169_v56 = vperm.slane %v4163_v10, %v7104_v22  ;;  %v4273_v24 = vsel %vm483_vm1, %v8607_v41, %v4272_v51 }
 0x480   :  { %v4151_v5 = vsel %vm483_vm1, %v4150_v28, %v4133_v0  ;;  %v4235_v34 = vsel %vm483_vm1, %v8636_v47, %v4234_v29  ;;  %v4281_v28 = vperm.slane %v4273_v24, %v7104_v22  ;;  %v4261_v8 = vsel %vm483_vm1, %v8614_v12, %v4260_v15 }
 0x481   :  { %v4176_v3 = vrot.slane %v4161_v4, 4  ;;  %v4181_v9 = vsel %vm483_vm1, 0.0, %v4180_v19  ;;  %v4157_v54 = vperm.slane %v4151_v5, %v7104_v22  ;;  %v4178_v57 = vrot.slane %v4169_v56, 4 }
 0x482   :  { %v4360_v41 = vrot.slane %v4181_v9, 4  ;;  %v4286_v4 = vrot.slane %v4281_v28, 4  ;;  %v4355_v62 = vsel %vm483_vm1, %v4180_v19, %v4169_v56  ;;  %v4269_v5 = vperm.slane %v4261_v8, %v7104_v22 }
 0x483   :  { %v3048_v36 = vpop.xlane.xlu0 %3047  ;;  %v4177_v16 = vsel %vm483_vm1, 0.0, %v4176_v3  ;;  %v4174_v10 = vrot.slane %v4157_v54, 4  ;;  %v4179_v51 = vsel %vm483_vm1, 0.0, %v4178_v57  ;;  %v4344_v15 = vsel %vm483_vm1, %v4176_v3, %v4157_v54 }
 0x484   :  { %6436 = vrcp.f32 %v3048_v36  ;;  %v4349_v47 = vrot.slane %v4177_v16, 4  ;;  %v4361_v29 = vsel %vm483_vm1, %v4360_v41, %v4179_v51  ;;  %v4287_v19 = vsel %vm483_vm1, %v4286_v4, %v4269_v5 }
 0x485   :  { %6438 = vrcp.f32 %v8622_v13  ;;  %v4365_v24 = vperm.slane %v4361_v29, %v7071_v59  ;;  %v4348_v41 = vperm.slane %v4344_v15, %v7071_v59  ;;  %v4288_v8 = vrot.slane %v4269_v5, 4 }
 0x487   :  { %v4378_v16 = vrot.slane %v4365_v24, 4 }
 0x489   :  { %4434 = vrot.lane.b32.xlu0 %v4235_v34, %s6812_s15  ;;  %v4359_v34 = vperm.slane %v4355_v62, %v7071_v59  ;;  %v4289_v62 = vsel %vm483_vm1, %v4281_v28, %v4288_v8 }
 0x48a   :  { %v6437_v0 = vpop.eup %6436 }
 0x48b   :  { %v3070_v13 = vmul.f32 %v6437_v0, %v8427_v46  ;;  %v6439_v11 = vpop.eup %6438  ;;  %v4175_v46 = vsel %vm483_vm1, 0.0, %v4174_v10 }
 0x48c   :  { %v3069_v9 = vmul.f32 %v6439_v11, %v8392_v32  ;;  %v4350_v57 = vsel %vm483_vm1, %v4349_v47, %v4175_v46  ;;  %v4379_v32 = vsel %vm483_vm1, %v4378_v16, %v4359_v34  ;;  %v4314_v46 = vrot.slane %v8681_v39, 4 }
 0x48d   :  { %v8778_v36 = vmul.f32 %v8645_v6, %v3070_v13  ;;  %v4354_v56 = vperm.slane %v4350_v57, %v7071_v59  ;;  %v4385_v54 = vperm.slane %v4379_v32, %v7104_v22  ;;  %v4326_v57 = vrot.slane %v8670_v38, 4 }
 0x48e   :  { %v8799_v3 = vmul.f32 %v8545_v21, %v3069_v9  ;;  %v4284_v9 = vrot.slane %v8654_v55, 4  ;;  %v4315_v15 = vsel %vm483_vm1, %v8667_v17, %v4314_v46  ;;  %v4368_v39 = vrot.slane %v4348_v41, 4 }
 0x48f   :  { %v3096_v12 = vsel %vm2985_vm4, %v8778_v36, -inf  ;;  %v4366_v0 = vrot.slane %v4354_v56, 4  ;;  %v4390_v10 = vrot.slane %v4385_v54, 4  ;;  %v4327_v55 = vsel %vm483_vm1, %v8657_v45, %v4326_v57  ;;  %v3057_v45 = vpop.xlane.xlu1 %3056 }
 0x490   :  { %3097 = vmax.xlane.f32.xlu1 %v3096_v12  ;;  %v3093_v51 = vsel %vm2985_vm4, %v8799_v3, -inf  ;;  %v4285_v28 = vsel %vm483_vm1, %v8641_v63, %v4284_v9  ;;  %v4369_v63 = vsel %vm483_vm1, %v4354_v56, %v4368_v39 }
 0x491   :  { %4420 = vrot.lane.b32.xlu0 %v4287_v19, %s6813_s16  ;;  %v4367_v11 = vsel %vm483_vm1, %v4366_v0, %v4348_v41  ;;  %v8822_v19 = vperm.slane %v4315_v15, %v7104_v22  ;;  %v4380_v41 = vrot.slane %v4359_v34, 4 }
 0x492   :  { %v4373_v4 = vperm.slane %v4367_v11, %v7104_v22 }
 0x493   :  { %v8796_v13 = vpop.xlane.xlu0 %3224  ;;  %v4342_v17 = vrot.slane %v8822_v19, 4 }
 0x494   :  { %v4392_v47 = vrot.slane %v4373_v4, 4  ;;  %v8808_v29 = vsel %vm483_vm1, %v4390_v10, %v4373_v4 }
 0x496   :  { %v8813_v5 = vsel %vm483_vm1, %v4385_v54, %v4392_v47  ;;  %v4335_v54 = vperm.slane %v4327_v55, %v7104_v22  ;;  %v3243_v55 = vpop.xlane.xlu2 %3242 }
 0x498   :  { %3094 = vmax.xlane.f32.xlu1 %v3093_v51  ;;  %v4343_v11 = vsel %vm483_vm1, %v4335_v54, %v4342_v17 }
 0x499   :  { %4436 = vrot.lane.b32.xlu0 %v4289_v62, %s6812_s15 }
 0x49b   :  { %v3042_v12 = vpop.xlane.xlu0 %3041 }
 0x49c   :  { %6440 = vrcp.f32 %v3042_v12 }
 0x4a1   :  { %4404 = vrot.lane.b32.xlu0 %v4285_v28, %s6802_s19 }
 0x4a2   :  { %v6441_v16 = vpop.eup %6440 }
 0x4a3   :  { %v3237_v0 = vpop.xlane.xlu0 %3236  ;;  %v3068_v32 = vmul.f32 %v6441_v16, %v8440_v23  ;;  %v4377_v23 = vperm.slane %v4369_v63, %v7104_v22 }
 0x4a4   :  { %6442 = vrcp.f32 %v3237_v0 }
 0x4a5   :  { %v8830_v38 = vmul.f32 %v8545_v21, %v3068_v32  ;;  %v4381_v21 = vsel %vm483_vm1, %v4365_v24, %v4380_v41  ;;  %v4396_v56 = vrot.slane %v4377_v23, 4 }
 0x4a6   :  { %v4389_v10 = vperm.slane %v4381_v21, %v7104_v22 }
 0x4a7   :  { %v3090_v8 = vsel %vm2985_vm4, %v8830_v38, -inf }
 0x4a8   :  { %3091 = vmax.xlane.f32.xlu2 %v3090_v8  ;;  %v4397_v51 = vsel %vm483_vm1, %v4389_v10, %v4396_v56 }
 0x4a9   :  { %4438 = vrot.lane.b32.xlu0 %v4343_v11, %s6812_s15  ;;  %v4340_v11 = vrot.slane %v4335_v54, 4 }
 0x4aa   :  { %v6443_v34 = vpop.eup %6442 }
 0x4ab   :  { %v3054_v4 = vpop.xlane.xlu0 %3053  ;;  %v3257_v9 = vmul.f32 %v6443_v34, %v8449_v52 }
 0x4ac   :  { %6444 = vrcp.f32 %v3054_v4  ;;  %v4394_v4 = vrot.slane %v4389_v10, 4 }
 0x4ad   :  { %6446 = vrcp.f32 %v3057_v45  ;;  %v8849_v15 = vmul.f32 %v8753_v14, %v3257_v9 }
 0x4ae   :  { %v4395_v54 = vsel %vm483_vm1, %v4394_v4, %v4377_v23 }
 0x4b1   :  { %4440 = vrot.lane.b32.xlu0 %v4397_v51, %s6812_s15 }
 0x4b2   :  { %v6445_v47 = vpop.eup %6444 }
 0x4b3   :  { %v3231_v62 = vpop.xlane.xlu0 %3230  ;;  %v3072_v46 = vmul.f32 %v6445_v47, %v8458_v26  ;;  %v6447_v12 = vpop.eup %6446 }
 0x4b4   :  { %6448 = vrcp.f32 %v3231_v62  ;;  %v3073_v28 = vmul.f32 %v6447_v12, %v8418_v31 }
 0x4b5   :  { %v8846_v24 = vmul.f32 %v8645_v6, %v3072_v46  ;;  %6450 = vrcp.f32 %v3243_v55  ;;  %v3285_v55 = vsel %vm2985_vm4, %v8849_v15, -inf }
 0x4b6   :  { %v8855_v16 = vmul.f32 %v8645_v6, %v3073_v28 }
 0x4b7   :  { %v3102_v57 = vsel %vm2985_vm4, %v8846_v24, -inf }
 0x4b8   :  { %3103 = vmax.xlane.f32.xlu2 %v3102_v57  ;;  %v3105_v0 = vsel %vm2985_vm4, %v8855_v16, -inf }
 0x4ba   :  { %v6449_v39 = vpop.eup %6448 }
 0x4bb   :  { %v3255_v26 = vmul.f32 %v6449_v39, %v8479_v50  ;;  %v6451_v17 = vpop.eup %6450 }
 0x4bc   :  { %v3259_v63 = vmul.f32 %v6451_v17, %v8409_v49  ;;  %v4341_v49 = vsel %vm483_vm1, %v4340_v11, %v8822_v19  ;;  %v3240_v19 = vpop.xlane.xlu1 %3239 }
 0x4bd   :  { %v8859_v52 = vmul.f32 %v8685_v44, %v3255_v26 }
 0x4be   :  { %v8868_v8 = vmul.f32 %v8753_v14, %v3259_v63 }
 0x4bf   :  { %v3279_v32 = vsel %vm2985_vm4, %v8859_v52, -inf }
 0x4c0   :  { %3106 = vmax.xlane.f32.xlu2 %v3105_v0  ;;  %3280 = vmax.xlane.f32.xlu1 %v3279_v32  ;;  %v3291_v41 = vsel %vm2985_vm4, %v8868_v8, -inf }
 0x4c8   :  { %v3089_v31 = vpop.xlane.xlu2 %3088 }
 0x4c9   :  { %v3109_v6 = vsub.f32 %v8577_v1, %v3089_v31  ;;  %v4338_v1 = vrot.slane %v8705_v35, 4 }
 0x4cb   :  { %v3118_v50 = vmul.f32 1.442695, %v3109_v6 }
 0x4cd   :  { %6452 = vpow2.f32 %v3118_v50 }
 0x4ce   :  { %6454 = vrcp.f32 %v8796_v13 }
 0x4cf   :  { %6456 = vrcp.f32 %v3240_v19 }
 0x4d0   :  { %v3086_v35 = vpop.xlane.xlu0 %3085 }
 0x4d3   :  { %v8877_v45 = vpop.eup %6452 }
 0x4d8   :  { %4402 = vrot.lane.b32.xlu2 %v8688_v30, %s6802_s19  ;;  %v4339_v30 = vsel %vm483_vm1, %v8702_v37, %v4338_v1  ;;  %v6455_v37 = vpop.eup %6454 }
 0x4d9   :  { %4418 = vrot.lane.b32.xlu1 %v8674_v61, %s6813_s16  ;;  %v3135_v61 = vsel %vm2985_vm4, %v8877_v45, 0.0  ;;  %v3253_v51 = vmul.f32 %v6455_v37, %v8435_v60  ;;  %v6457_v23 = vpop.eup %6456 }
 0x4da   :  { %v3258_v13 = vmul.f32 %v6457_v23, %v8423_v20 }
 0x4db   :  { %3292 = vmax.xlane.f32.xlu0 %v3291_v41  ;;  %v8896_v10 = vmul.f32 %v8685_v44, %v3253_v51  ;;  %v3282_v44 = vsel %vm2985_vm4, %v8762_v42, -inf }
 0x4dc   :  { %v8905_v28 = vmul.f32 %v8753_v14, %v3258_v13 }
 0x4dd   :  { %v3273_v62 = vsel %vm2985_vm4, %v8896_v10, -inf }
 0x4de   :  { %v3288_v39 = vsel %vm2985_vm4, %v8905_v28, -inf }
 0x4e0   :  { %4422 = vrot.lane.b32.xlu2 %v4341_v49, %s6813_s16  ;;  %v8900_v46 = vpop.xlane.xlu2 %3100 }
 0x4e1   :  { %4406 = vrot.lane.b32.xlu1 %v4339_v30, %s6802_s19 }
 0x4e3   :  { %3136 = vadd.xlane.f32.xlu0 %v3135_v61 }
 0x4e8   :  { %v8889_v21 = vpop.xlane.xlu0 %3277  ;;  %v8911_v26 = vpop.xlane.xlu2 %3271 }
 0x4e9   :  { %4424 = vrot.lane.b32.xlu1 %v4395_v54, %s6813_s16 }
 0x4fb   :  { %v8892_v56 = vpop.permute.xlu0 %4434 }
 0x503   :  { %v3098_v34 = vpop.xlane.xlu1 %3097  ;;  %v4421_v47 = vpop.permute.xlu0 %4420 }
 0x504   :  { %v3112_v23 = vsub.f32 %v8778_v36, %v3098_v34 }
 0x506   :  { %v3124_v13 = vmul.f32 1.442695, %v3112_v23 }
 0x509   :  { %3274 = vmax.xlane.f32.xlu2 %v3273_v62 }
 0x50b   :  { %v3095_v12 = vpop.xlane.xlu1 %3094  ;;  %v4437_v9 = vpop.permute.xlu0 %4436 }
 0x50c   :  { %v3111_v57 = vsub.f32 %v8799_v3, %v3095_v12 }
 0x50e   :  { %v3122_v60 = vmul.f32 1.442695, %v3111_v57 }
 0x510   :  { %6458 = vpow2.f32 %v3122_v60 }
 0x511   :  { %3283 = vmax.xlane.f32.xlu2 %v3282_v44 }
 0x513   :  { %3289 = vmax.xlane.f32.xlu1 %v3288_v39  ;;  %v4405_v20 = vpop.permute.xlu0 %4404  ;;  %v6560_v39 = vld [vmem:[#allocation2 + $0x10] sm:$0xff] }
 0x514   :  { %v4447_v3 = vsel %vm2159_vm2, %v8694_v18, %v4405_v20  ;;  %v3108_v18 = vsub.f32 %v8602_v33, %v3086_v35 }
 0x515   :  { %v4451_v0 = vsel %vm2808_vm3, %v4447_v3, %v4421_v47 }
 0x516   :  { %v8917_v14 = vsel %vm4454_vm5, %v4451_v0, %v4437_v9  ;;  %v8919_v32 = vpop.eup %6458  ;;  %v3116_v50 = vmul.f32 1.442695, %v3108_v18 }
 0x517   :  { %v3141_v31 = vsel %vm2985_vm4, %v8919_v32, 0.0 }
 0x519   :  { %3286 = vmax.xlane.f32.xlu2 %v3285_v55 }
 0x51b   :  { %3142 = vadd.xlane.f32.xlu1 %v3141_v31  ;;  %v3092_v17 = vpop.xlane.xlu2 %3091  ;;  %v4439_v54 = vpop.permute.xlu0 %4438 }
 0x51c   :  { %v3110_v6 = vsub.f32 %v8830_v38, %v3092_v17 }
 0x51e   :  { %v3120_v63 = vmul.f32 1.442695, %v3110_v6 }
 0x520   :  { %6460 = vpow2.f32 %v3120_v63 }
 0x521   :  { %6462 = vpow2.f32 %v3116_v50  ;;  %v6562_v50 = vld [vmem:[#allocation2 + $0x8] sm:$0xff] }
 0x523   :  { %v8940_v37 = vpop.permute.xlu0 %4440 }
 0x526   :  { %v8927_v41 = vpop.eup %6460 }
 0x527   :  { %v3138_v11 = vsel %vm2985_vm4, %v8927_v41, 0.0  ;;  %v8931_v49 = vpop.eup %6462 }
 0x528   :  { %3139 = vadd.xlane.f32.xlu2 %v3138_v11  ;;  %v3132_v38 = vsel %vm2985_vm4, %v8931_v49, 0.0  ;;  %v8979_v11 = vadd.f32 %v6562_v50, %v8917_v14  ;;  %v3294_v14 = vsub.f32 %v8715_v53, %v8911_v26 }
 0x52b   :  { %v3104_v1 = vpop.xlane.xlu2 %3103 }
 0x52c   :  { %v3114_v30 = vsub.f32 %v8846_v24, %v3104_v1  ;;  %v4716_v1 = vsel %vm151_vm0, %v8979_v11, 0.0 }
 0x52e   :  { %v3128_v61 = vmul.f32 1.442695, %v3114_v30 }
 0x530   :  { %6464 = vpow2.f32 %v3128_v61  ;;  %3133 = vadd.xlane.f32.xlu2 %v3132_v38 }
 0x533   :  { %v3107_v35 = vpop.xlane.xlu2 %3106  ;;  %v3281_v19 = vpop.xlane.xlu1 %3280 }
 0x534   :  { %v3297_v20 = vsub.f32 %v8859_v52, %v3281_v19  ;;  %v3115_v63 = vsub.f32 %v8855_v16, %v3107_v35 }
 0x536   :  { %v8936_v33 = vpop.eup %6464  ;;  %v3308_v34 = vmul.f32 1.442695, %v3297_v20 }
 0x537   :  { %v3150_v4 = vsel %vm2985_vm4, %v8936_v33, 0.0 }
 0x538   :  { %3151 = vadd.xlane.f32.xlu1 %v3150_v4 }
 0x53b   :  { %v4403_v24 = vpop.permute.xlu2 %4402 }
 0x53c   :  { %v4446_v52 = vsel %vm2159_vm2, %v8708_v2, %v4403_v24  ;;  %v3130_v2 = vmul.f32 1.442695, %v3115_v63  ;;  %v6563_v63 = vld [vmem:[#allocation2 + $0x18] sm:$0xff] }
 0x543   :  { %v4423_v12 = vpop.permute.xlu2 %4422 }
 0x548   :  { %4408 = vrot.lane.b32.xlu2 %v8813_v5, %s6802_s19 }
 0x54b   :  { %v4419_v51 = vpop.permute.xlu1 %4418 }
 0x54c   :  { %v4450_v17 = vsel %vm2808_vm3, %v4446_v52, %v4419_v51 }
 0x54e   :  { %v8944_v47 = vpop.xlane.xlu0 %3292 }
 0x54f   :  { %v3301_v24 = vsub.f32 %v8868_v8, %v8944_v47 }
 0x551   :  { %v3316_v23 = vmul.f32 1.442695, %v3301_v24 }
 0x553   :  { %v4407_v62 = vpop.permute.xlu1 %4406 }
 0x554   :  { %v4448_v9 = vsel %vm2159_vm2, %v8719_v48, %v4407_v62 }
 0x555   :  { %v4452_v57 = vsel %vm2808_vm3, %v4448_v9, %v4423_v12 }
 0x556   :  { %v3137_v60 = vpop.xlane.xlu0 %3136  ;;  %v4457_v44 = vsel %vm4454_vm5, %v4452_v57, %v4439_v54 }
 0x557   :  { %6466 = vrcp.f32 %v3137_v60  ;;  %v8951_v5 = vadd.f32 %v6560_v39, %v4457_v44 }
 0x558   :  { %6468 = vpow2.f32 %v3124_v13 }
 0x559   :  { %v4719_v36 = vsel %vm151_vm0, %v8951_v5, 0.0  ;;  %6470 = vpow2.f32 %v3308_v34 }
 0x55a   :  { %4720 = vadd.xlane.f32.xlu0 %v4719_v36  ;;  %6472 = vpow2.f32 %v3130_v2  ;;  %v9634_v2 = vld [vmem:[#allocation25_spill] sm:$0xff] }
 0x55b   :  { %v4425_v4 = vpop.permute.xlu1 %4424 }
 0x55d   :  { %v6467_v3 = vpop.eup %6466 }
 0x55e   :  { %v8956_v0 = vpop.eup %6468  ;;  %v3165_v48 = vmul.f32 %v6467_v3, %v8877_v45  ;;  %v4455_v45 = vsel %vm4454_vm5, %v4450_v17, %v8892_v56  ;;  %v3296_v56 = vsub.f32 %v8722_v7, %v8889_v21  ;;  %v3302_v21 = vmul.f32 1.442695, %v3294_v14 }
 0x55f   :  { %v3144_v55 = vsel %vm2985_vm4, %v8956_v0, 0.0  ;;  %v8966_v31 = vpop.eup %6470 }
 0x560   :  { %6242 = vmatmul.msk.f32.vlgmr.msrb.gmra.mxu1 %vm2808_vm3, %v3165_v48  ;;  %v3327_v6 = vsel %vm2985_vm4, %v8966_v31, 0.0  ;;  %v3306_v30 = vmul.f32 1.442695, %v3296_v56  ;;  %v8985_v16 = vpop.eup %6472  ;;  %v9632_v48 = vld [vmem:[#allocation23_spill] sm:$0xff] }
 0x561   :  { %3814 = vmatpush.msrb.mxu1 %v8442_v40  ;;  %v6561_v40 = vld [vmem:[#allocation2] sm:$0xff]  ;;  %v3153_v7 = vsel %vm2985_vm4, %v8985_v16, 0.0 }
 0x562   :  { %3145 = vadd.xlane.f32.xlu0 %v3144_v55  ;;  %v8973_v18 = vadd.f32 %v6561_v40, %v4455_v45  ;;  %6474 = vpow2.f32 %v3306_v30 }
 0x563   :  { %3815 = vmatpush.msrb.mxu1 %v8433_v25 }
 0x564   :  { %v4713_v25 = vsel %vm151_vm0, %v8973_v18, 0.0 }
 0x568   :  { %v8994_v19 = vpop.eup %6474 }
 0x569   :  { %v3324_v53 = vsel %vm2985_vm4, %v8994_v19, 0.0 }
 0x56a   :  { %3328 = vadd.xlane.f32.xlu0 %v3327_v6 }
 0x571   :  { %4714 = vadd.xlane.f32.xlu2 %v4713_v25 }
 0x579   :  { %4717 = vadd.xlane.f32.xlu2 %v4716_v1 }
 0x57c   :  { %v3275_v61 = vpop.xlane.xlu2 %3274 }
 0x57d   :  { %v3295_v38 = vsub.f32 %v8896_v10, %v3275_v61 }
 0x57f   :  { %v3304_v54 = vmul.f32 1.442695, %v3295_v38 }
 0x581   :  { %6476 = vpow2.f32 %v3304_v54  ;;  %3154 = vadd.xlane.f32.xlu2 %v3153_v7  ;;  %v6814_v7 = vmov 32.0  }
 0x582   :  { %6478 = vpow2.f32 %v3302_v21 }
 0x583   :  { %6480 = vpow2.f32 %v3316_v23 }
 0x584   :  { %v8992_v35 = vpop.xlane.xlu2 %3283 }
 0x585   :  { %v3298_v61 = vsub.f32 %v8762_v42, %v8992_v35 }
 0x586   :  { %v3290_v10 = vpop.xlane.xlu1 %3289 }
 0x587   :  { %v8998_v51 = vpop.eup %6476 }
 0x588   :  { %v3321_v26 = vsel %vm2985_vm4, %v8998_v51, 0.0  ;;  %v9004_v13 = vpop.eup %6478 }
 0x589   :  { %3325 = vadd.xlane.f32.xlu2 %v3324_v53  ;;  %3322 = vadd.xlane.f32.xlu0 %v3321_v26  ;;  %v3318_v47 = vsel %vm2985_vm4, %v9004_v13, 0.0  ;;  %v9009_v57 = vpop.eup %6480 }
 0x58a   :  { %v3339_v39 = vsel %vm2985_vm4, %v9009_v57, 0.0 }
 0x58c   :  { %v3287_v62 = vpop.xlane.xlu2 %3286 }
 0x58d   :  { %v3299_v8 = vsub.f32 %v8849_v15, %v3287_v62 }
 0x58e   :  { %v3143_v12 = vpop.xlane.xlu1 %3142 }
 0x58f   :  { %6482 = vrcp.f32 %v3143_v12  ;;  %v3312_v9 = vmul.f32 1.442695, %v3299_v8  ;;  %v9637_v8 = vld [vmem:[#allocation31_spill] sm:$0xff] }
 0x591   :  { %3319 = vadd.xlane.f32.xlu2 %v3318_v47  ;;  %6484 = vpow2.f32 %v3312_v9  ;;  %v9638_v47 = vld [vmem:[#allocation28_spill] sm:$0xff] }
 0x595   :  { %v6483_v60 = vpop.eup %6482 }
 0x596   :  { %v3167_v44 = vmul.f32 %v6483_v60, %v8919_v32 }
 0x597   :  { %v9017_v20 = vpop.eup %6484 }
 0x598   :  { %6244 = vmatmul.msk.f32.vlgmr.msra.gmra.mxu3 %vm2808_vm3, %v3167_v44  ;;  %v3333_v36 = vsel %vm2985_vm4, %v9017_v20, 0.0 }
 0x599   :  { %3860 = vmatpush.msra.mxu3 %v8488_v43  ;;  %3340 = vadd.xlane.f32.xlu2 %v3339_v39  ;;  %v9631_v43 = vld [vmem:[#allocation35_spill] sm:$0xff] }
 0x59b   :  { %3861 = vmatpush.msra.mxu3 %v8456_v58  ;;  %v3140_v15 = vpop.xlane.xlu2 %3139  ;;  %v3113_v58 = vsub.f32 %v9631_v43, %v8900_v46 }
 0x59c   :  { %6486 = vrcp.f32 %v3140_v15 }
 0x59d   :  { %v3126_v6 = vmul.f32 1.442695, %v3113_v58 }
 0x5a1   :  { %3334 = vadd.xlane.f32.xlu2 %v3333_v36 }
 0x5a2   :  { %v6487_v32 = vpop.eup %6486 }
 0x5a3   :  { %v3166_v34 = vmul.f32 %v6487_v32, %v8927_v41  ;;  %v3134_v3 = vpop.xlane.xlu2 %3133 }
 0x5a4   :  { %6488 = vrcp.f32 %v3134_v3 }
 0x5a5   :  { %6243 = vmatmul.msk.f32.vlgmr.msra.gmra.mxu2 %vm2808_vm3, %v3166_v34 }
 0x5a6   :  { %3837 = vmatpush.msra.mxu2 %v8467_v27  ;;  %v9633_v27 = vld [vmem:[#allocation24_spill] sm:$0xff] }
 0x5a8   :  { %3838 = vmatpush.msra.mxu2 %v9632_v48 }
 0x5aa   :  { %v6489_v55 = vpop.eup %6488 }
 0x5ab   :  { %v3164_v52 = vmul.f32 %v6489_v55, %v8931_v49  ;;  %v3152_v17 = vpop.xlane.xlu1 %3151  ;;  %v4409_v45 = vpop.permute.xlu2 %4408  ;;  %v3300_v49 = vsub.f32 %v8905_v28, %v3290_v10  ;;  %v9636_v28 = vld [vmem:[#allocation29_spill] sm:$0xff] }
 0x5ac   :  { %6490 = vrcp.f32 %v3152_v17  ;;  %v4449_v41 = vsel %vm2159_vm2, %v8808_v29, %v4409_v45 }
 0x5ad   :  { %v4453_v40 = vsel %vm2808_vm3, %v4449_v41, %v4425_v4  ;;  %6241 = vmatmul.msk.f32.vlgmr.msrb.gmra.mxu0 %vm2808_vm3, %v3164_v52  ;;  %6492 = vpow2.f32 %v3126_v6  ;;  %v3314_v1 = vmul.f32 1.442695, %v3300_v49  ;;  %v3310_v4 = vmul.f32 1.442695, %v3298_v61 }
 0x5ae   :  { %3791 = vmatpush.msrb.mxu0 %v9633_v27  ;;  %v4458_v46 = vsel %vm4454_vm5, %v4453_v40, %v8940_v37  ;;  %v9635_v37 = vld [vmem:[#allocation32_spill] sm:$0xff] }
 0x5af   :  { %v9035_v25 = vadd.f32 %v6563_v63, %v4458_v46  ;;  %6494 = vpow2.f32 %v3314_v1  ;;  %v9639_v27 = vld [vmem:[#allocation36_spill] sm:$0xff]  ;;  %v9640_v63 = vld [vmem:[#allocation33_spill] sm:$0xff] }
 0x5b0   :  { %3792 = vmatpush.msrb.mxu0 %v9634_v2  ;;  %6496 = vpow2.f32 %v3310_v4 }
 0x5b1   :  { %v4722_v29 = vsel %vm151_vm0, %v9035_v25, 0.0  ;;  %6498 = vrcp.f32 %v6814_v7 }
 0x5b2   :  { %v6491_v50 = vpop.eup %6490  ;;  %4723 = vadd.xlane.f32.xlu1 %v4722_v29 }
 0x5b3   :  { %v3170_v56 = vmul.f32 %v6491_v50, %v8936_v33  ;;  %v9043_v30 = vpop.eup %6492 }
 0x5b4   :  { %v3147_v38 = vsel %vm2985_vm4, %v9043_v30, 0.0 }
 0x5b5   :  { %6247 = vmatmul.msk.f32.vlgmr.msrb.gmra.mxu2 %vm2808_vm3, %v3170_v56  ;;  %v9051_v14 = vpop.eup %6494 }
 0x5b6   :  { %3929 = vmatpush.msrb.mxu2 %v9635_v37  ;;  %v3336_v33 = vsel %vm2985_vm4, %v9051_v14, 0.0  ;;  %v9055_v54 = vpop.eup %6496 }
 0x5b7   :  { %v3330_v42 = vsel %vm2985_vm4, %v9055_v54, 0.0  ;;  %v6499_v35 = vpop.eup %6498 }
 0x5b8   :  { %3930 = vmatpush.msrb.mxu2 %v9636_v28  ;;  %v4726_v24 = vmul.f32 32.0, %v6499_v35  ;;  %vm4730_vm6 = vweird.f32 %v6499_v35 }
 0x5ba   :  { %3148 = vadd.xlane.f32.xlu1 %v3147_v38  ;;  %v4727_v53 = vsub.f32 1.0, %v4726_v24 }
 0x5bc   :  { %v4728_v23 = vmul.f32 %v6499_v35, %v4727_v53 }
 0x5be   :  { %v4729_v12 = vadd.f32 %v6499_v35, %v4728_v23 }
 0x5c0   :  { %v9063_v9 = vsel %vm4730_vm6, %v6499_v35, %v4729_v12 }
 0x5c2   :  { %3337 = vadd.xlane.f32.xlu1 %v3336_v33 }
 0x5ca   :  { %3331 = vadd.xlane.f32.xlu1 %v3330_v42 }
 0x5cd   :  { %v4721_v21 = vpop.xlane.xlu0 %4720 }
 0x5ce   :  { %v4734_v39 = vmul.f32 %v9063_v9, %v4721_v21  ;;  %v9641_v21 = vld [vmem:[#allocation34_spill] sm:$0xff] }
 0x5d0   :  { %v9073_v36 = vsub.f32 %v8951_v5, %v4734_v39  ;;  %v9122_v39 = vld [vmem:[#allocation11 + $0x8] sm:$0xff] }
 0x5d2   :  { %v4742_v58 = vmul.f32 %v9073_v36, %v9073_v36 }
 0x5d4   :  { %v4750_v55 = vsel %vm151_vm0, %v4742_v58, 0.0 }
 0x5d5   :  { %v3146_v10 = vpop.xlane.xlu0 %3145 }
 0x5d6   :  { %6500 = vrcp.f32 %v3146_v10  ;;  %v9642_v10 = vld [vmem:[#allocation30_spill] sm:$0xff] }
 0x5dc   :  { %v6501_v26 = vpop.eup %6500 }
 0x5dd   :  { %v3168_v62 = vmul.f32 %v6501_v26, %v8956_v0  ;;  %v3329_v45 = vpop.xlane.xlu0 %3328 }
 0x5df   :  { %6245 = vmatmul.msk.f32.vlgmr.msra.gmra.mxu0 %vm2808_vm3, %v3168_v62 }
 0x5e0   :  { %3883 = vmatpush.msra.mxu0 %v9637_v8 }
 0x5e2   :  { %3884 = vmatpush.msra.mxu0 %v9638_v47 }
 0x5e4   :  { %v4715_v60 = vpop.xlane.xlu2 %4714 }
 0x5e5   :  { %v4732_v44 = vmul.f32 %v9063_v9, %v4715_v60 }
 0x5e7   :  { %v9068_v15 = vsub.f32 %v8973_v18, %v4732_v44  ;;  %v9120_v44 = vld [vmem:[#allocation11 + $0x10] sm:$0xff] }
 0x5e9   :  { %v4740_v0 = vmul.f32 %v9068_v15, %v9068_v15 }
 0x5eb   :  { %v4744_v32 = vsel %vm151_vm0, %v4740_v0, 0.0 }
 0x5ec   :  { %4745 = vadd.xlane.f32.xlu0 %v4744_v32  ;;  %v4718_v34 = vpop.xlane.xlu2 %4717 }
 0x5ed   :  { %v4733_v3 = vmul.f32 %v9063_v9, %v4718_v34  ;;  %v9133_v34 = vld [vmem:[#allocation11] sm:$0xff] }
 0x5ef   :  { %v9078_v43 = vsub.f32 %v8979_v11, %v4733_v3  ;;  %v9136_v3 = vand.u32 4294901760, %v9133_v34 }
 0x5f1   :  { %v4741_v48 = vmul.f32 %v9078_v43, %v9078_v43 }
 0x5f3   :  { %v4747_v52 = vsel %vm151_vm0, %v4741_v48, 0.0 }
 0x5f4   :  { %4751 = vadd.xlane.f32.xlu0 %v4750_v55  ;;  %4748 = vadd.xlane.f32.xlu1 %v4747_v52  ;;  %v3155_v17 = vpop.xlane.xlu2 %3154  ;;  %v4922_v52 = vsub.f32 %v9133_v34, %v9136_v3 }
 0x5f5   :  { %6502 = vrcp.f32 %v3155_v17 }
 0x5f6   :  { %6504 = vrcp.f32 %v3329_v45 }
 0x5fb   :  { %v6503_v6 = vpop.eup %6502 }
 0x5fc   :  { %v3171_v41 = vmul.f32 %v6503_v6, %v8985_v16  ;;  %v3326_v40 = vpop.xlane.xlu2 %3325  ;;  %v6505_v46 = vpop.eup %6504 }
 0x5fd   :  { %6506 = vrcp.f32 %v3326_v40  ;;  %v3353_v2 = vmul.f32 %v6505_v46, %v8966_v31  ;;  %v3323_v33 = vpop.xlane.xlu0 %3322 }
 0x5fe   :  { %6248 = vmatmul.msk.f32.vlgmr.msrb.gmra.mxu3 %vm2808_vm3, %v3171_v41 }
 0x5ff   :  { %3952 = vmatpush.msrb.mxu3 %v9639_v27  ;;  %v4923_v27 = vand.u32 4294901760, %v4922_v52 }
 0x601   :  { %3953 = vmatpush.msrb.mxu3 %v9640_v63 }
 0x603   :  { %v6507_v49 = vpop.eup %6506 }
 0x604   :  { %v3320_v29 = vpop.xlane.xlu2 %3319  ;;  %v3352_v50 = vmul.f32 %v6507_v49, %v8994_v19 }
 0x605   :  { %6508 = vrcp.f32 %v3320_v29 }
 0x606   :  { %6252 = vmatmul.msk.f32.vlgmr.msra.gmra.mxu3 %vm2808_vm3, %v3353_v2  ;;  %6251 = vmatmul.msk.f32.vlgmr.msra.gmra.mxu2 %vm2808_vm3, %v3352_v50  ;;  %v4924_v50 = vsub.f32 %v4922_v52, %v4923_v27 }
 0x60b   :  { %v6509_v16 = vpop.eup %6508 }
 0x60c   :  { %v3350_v56 = vmul.f32 %v6509_v16, %v9004_v13  ;;  %v3341_v1 = vpop.xlane.xlu2 %3340 }
 0x60d   :  { %6510 = vrcp.f32 %v3341_v1 }
 0x60e   :  { %6249 = vmatmul.msk.f32.vlgmr.msrb.gmra.mxu0 %vm2808_vm3, %v3350_v56 }
 0x613   :  { %v6511_v37 = vpop.eup %6510 }
 0x614   :  { %v3357_v61 = vmul.f32 %v6511_v37, %v9009_v57  ;;  %v3335_v35 = vpop.xlane.xlu2 %3334 }
 0x616   :  { %6256 = vmatmul.msk.f32.vlgmr.msrb.gmra.mxu3 %vm2808_vm3, %v3357_v61 }
 0x625   :  { %v4724_v31 = vpop.xlane.xlu1 %4723 }
 0x626   :  { %v4735_v19 = vmul.f32 %v9063_v9, %v4724_v31 }
 0x628   :  { %v9100_v28 = vsub.f32 %v9035_v25, %v4735_v19 }
 0x62a   :  { %v4743_v38 = vmul.f32 %v9100_v28, %v9100_v28 }
 0x62c   :  { %v4753_v13 = vsel %vm151_vm0, %v4743_v38, 0.0 }
 0x62d   :  { %4754 = vadd.xlane.f32.xlu2 %v4753_v13  ;;  %v3149_v4 = vpop.xlane.xlu1 %3148  ;;  %v4925_v13 = vand.u32 4294901760, %v4924_v50 }
 0x62e   :  { %6512 = vrcp.f32 %v3149_v4 }
 0x62f   :  { %6514 = vrcp.f32 %v3323_v33 }
 0x634   :  { %v6513_v42 = vpop.eup %6512 }
 0x635   :  { %v3169_v57 = vmul.f32 %v6513_v42, %v9043_v30  ;;  %v3338_v7 = vpop.xlane.xlu1 %3337  ;;  %v6515_v24 = vpop.eup %6514 }
 0x636   :  { %6516 = vrcp.f32 %v3338_v7  ;;  %v3351_v26 = vmul.f32 %v6515_v24, %v8998_v51 }
 0x637   :  { %6246 = vmatmul.msk.f32.vlgmr.msra.gmra.mxu1 %vm2808_vm3, %v3169_v57  ;;  %6518 = vrcp.f32 %v3335_v35  ;;  %v9159_v35 = vld [vmem:[%s9586_s8] ss:$0 sm:$0xff] }
 0x638   :  { %3906 = vmatpush.msra.mxu1 %v9641_v21 }
 0x63a   :  { %3907 = vmatpush.msra.mxu1 %v9642_v10 }
 0x63c   :  { %v6517_v53 = vpop.eup %6516 }
 0x63d   :  { %v3356_v23 = vmul.f32 %v6517_v53, %v9051_v14  ;;  %v3332_v62 = vpop.xlane.xlu1 %3331  ;;  %v6519_v30 = vpop.eup %6518  ;;  %v9118_v14 = vld [vmem:[#allocation11 + $0x18] sm:$0xff] }
 0x63e   :  { %6520 = vrcp.f32 %v3332_v62  ;;  %v3355_v8 = vmul.f32 %v6519_v30, %v9017_v20  ;;  %v4850_v32 = vand.u32 4294901760, %v9118_v14  ;;  %v9128_v20 = vand.u32 4294901760, %v9120_v44  ;;  %v9166_v62 = vld [vmem:[%s9586_s8 + $0x1] ss:$0 sm:$0xff] }
 0x63f   :  { %6250 = vmatmul.msk.f32.vlgmr.msrb.gmra.mxu1 %vm2808_vm3, %v3351_v26  ;;  %6255 = vmatmul.msk.f32.vlgmr.msrb.gmra.mxu2 %vm2808_vm3, %v3356_v23 }
 0x640   :  { %v4904_v58 = vsub.f32 %v9118_v14, %v4850_v32  ;;  %v4910_v48 = vsub.f32 %v9120_v44, %v9128_v20  ;;  %5002 = vmatpush.msra.mxu3 %v4850_v32  ;;  %4851 = vmatpush.msrb.mxu0 %v4850_v32 }
 0x642   :  { %v4905_v17 = vand.u32 4294901760, %v4904_v58  ;;  %v4911_v45 = vand.u32 4294901760, %v4910_v48  ;;  %4958 = vmatpush.msra.mxu2 %v4904_v58  ;;  %5004 = vmatpush.msra.mxu3 %v9128_v20 }
 0x643   :  { %4853 = vmatpush.msrb.mxu0 %v9128_v20 }
 0x644   :  { %v6521_v12 = vpop.eup %6520  ;;  %v4906_v49 = vsub.f32 %v4904_v58, %v4905_v17  ;;  %v4912_v2 = vsub.f32 %v4910_v48, %v4911_v45  ;;  %4961 = vmatpush.msra.mxu2 %v4910_v48 }
 0x645   :  { %v3354_v47 = vmul.f32 %v6521_v12, %v9055_v54  ;;  %v9131_v54 = vand.u32 4294901760, %v9122_v39 }
 0x646   :  { %v4907_v37 = vand.u32 4294901760, %v4906_v49  ;;  %v4913_v61 = vand.u32 4294901760, %v4912_v2 }
 0x647   :  { %6253 = vmatmul.msk.f32.vlgmr.msra.gmra.mxu0 %vm2808_vm3, %v3354_v47  ;;  %6254 = vmatmul.msk.f32.vlgmr.msra.gmra.mxu1 %vm2808_vm3, %v3355_v8  ;;  %v4916_v55 = vsub.f32 %v9122_v39, %v9131_v54 }
 0x648   :  { %5006 = vmatpush.msra.mxu3 %v9131_v54  ;;  %4855 = vmatpush.msrb.mxu0 %v9131_v54 }
 0x649   :  { %v4917_v40 = vand.u32 4294901760, %v4916_v55  ;;  %4964 = vmatpush.msra.mxu2 %v4916_v55  ;;  %4908 = vmatpush.msrb.mxu1 %v4907_v37 }
 0x64a   :  { %5008 = vmatpush.msra.mxu3 %v9136_v3  ;;  %4857 = vmatpush.msrb.mxu0 %v9136_v3 }
 0x64b   :  { %v4918_v29 = vsub.f32 %v4916_v55, %v4917_v40  ;;  %4967 = vmatpush.msra.mxu2 %v4922_v52  ;;  %4914 = vmatpush.msrb.mxu1 %v4913_v61  ;;  %v3610_v61 = vpop.f32.mrf.mxu0 }
 0x64c   :  { %5049 = vmatpush.msra.mxu0 %v4905_v17 }
 0x64d   :  { %v4919_v19 = vand.u32 4294901760, %v4918_v29 }
 0x64e   :  { %5053 = vmatpush.msra.mxu0 %v4911_v45 }
 0x64f   :  { %4920 = vmatpush.msrb.mxu1 %v4919_v19  ;;  %v3679_v19 = vpop.f32.mrf.mxu3 }
 0x650   :  { %5057 = vmatpush.msra.mxu0 %v4917_v40 }
 0x651   :  { %4926 = vmatpush.msrb.mxu1 %v4925_v13 }
 0x652   :  { %5061 = vmatpush.msra.mxu0 %v4923_v27 }
 0x653   :  { %5092 = vmatpush.msra.mxu1 %v4850_v32 }
 0x655   :  { %5094 = vmatpush.msra.mxu1 %v9128_v20 }
 0x657   :  { %5096 = vmatpush.msra.mxu1 %v9131_v54 }
 0x659   :  { %5098 = vmatpush.msra.mxu1 %v9136_v3 }
 0x65f   :  { %v4746_v60 = vpop.xlane.xlu0 %4745 }
 0x660   :  { %v4756_v51 = vmul.f32 %v4746_v60, %v9063_v9 }
 0x662   :  { %v9124_v0 = vadd.f32 1e-06, %v4756_v51 }
 0x664   :  { %6522 = vrsqrt.f32 %v9124_v0  ;;  %vm4770_vm8 = vweird.f32 %v9124_v0 }
 0x667   :  { %v4752_v6 = vpop.xlane.xlu0 %4751  ;;  %v4749_v41 = vpop.xlane.xlu1 %4748 }
 0x668   :  { %v4758_v46 = vmul.f32 %v4752_v6, %v9063_v9  ;;  %v4757_v63 = vmul.f32 %v4749_v41, %v9063_v9 }
 0x66a   :  { %v6523_v16 = vpop.eup %6522  ;;  %v4762_v56 = vadd.f32 1e-06, %v4758_v46  ;;  %v4761_v1 = vadd.f32 1e-06, %v4757_v63 }
 0x66b   :  { %v4765_v31 = vmul.f32 %v6523_v16, %v9124_v0  ;;  %vm4771_vm7 = vweird.f32 %v6523_v16 }
 0x66c   :  { %6524 = vrsqrt.f32 %v4762_v56  ;;  %vm4772_vm9 = vmor %vm4770_vm8, %vm4771_vm7  ;;  %vm4790_vm12 = vweird.f32 %v4762_v56  ;;  %vm4780_vm14 = vweird.f32 %v4761_v1 }
 0x66d   :  { %v4766_v38 = vmul.f32 %v6523_v16, %v4765_v31  ;;  %6526 = vrsqrt.f32 %v4761_v1 }
 0x66f   :  { %v4767_v4 = vmul.f32 0.5, %v4766_v38 }
 0x671   :  { %v4768_v33 = vsub.f32 1.5, %v4767_v4  ;;  %v4465_v4 = vrot.slane %v3679_v19, 4 }
 0x672   :  { %v6525_v42 = vpop.eup %6524 }
 0x673   :  { %v6527_v57 = vpop.eup %6526  ;;  %v4769_v7 = vmul.f32 %v6523_v16, %v4768_v33  ;;  %v4785_v21 = vmul.f32 %v6525_v42, %v4762_v56  ;;  %vm4791_vm10 = vweird.f32 %v6525_v42 }
 0x674   :  { %v4775_v24 = vmul.f32 %v6527_v57, %v4761_v1  ;;  %vm4781_vm11 = vweird.f32 %v6527_v57  ;;  %vm4792_vm13 = vmor %vm4790_vm12, %vm4791_vm10 }
 0x675   :  { %v4773_v10 = vsel %vm4772_vm9, %v6523_v16, %v4769_v7  ;;  %v4786_v53 = vmul.f32 %v6525_v42, %v4785_v21  ;;  %vm4782_vm15 = vmor %vm4780_vm14, %vm4781_vm11  ;;  %v3656_v16 = vpop.f32.mrf.mxu2  ;;  %vm5810_vm14 = vcmask 257024  }
 0x676   :  { %v4804_v26 = vmul.f32 %v4773_v10, %v9068_v15  ;;  %v4776_v23 = vmul.f32 %v6527_v57, %v4775_v24  ;;  %v4459_v37 = vrot.slane %v3656_v16, 4 }
 0x677   :  { %v4787_v30 = vmul.f32 0.5, %v4786_v53 }
 0x678   :  { %v4809_v12 = vmul.f32 %v9159_v35, %v4804_v26  ;;  %v4777_v8 = vmul.f32 0.5, %v4776_v23  ;;  %v4460_v38 = vsel %vm483_vm1, %v4459_v37, %v3610_v61 }
 0x679   :  { %v4788_v47 = vsub.f32 1.5, %v4787_v30  ;;  %v4464_v33 = vperm.slane %v4460_v38, %v7071_v59 }
 0x67a   :  { %v4778_v60 = vsub.f32 1.5, %v4777_v8  ;;  %v4814_v15 = vadd.f32 %v9166_v62, %v4809_v12 }
 0x67b   :  { %v4789_v51 = vmul.f32 %v6525_v42, %v4788_v47  ;;  %v4473_v7 = vrot.slane %v4464_v33, 4 }
 0x67c   :  { %v4779_v0 = vmul.f32 %v6527_v57, %v4778_v60  ;;  %v4827_v32 = vsel %vm151_vm0, %v4814_v15, 0  ;;  %v3702_v15 = vpop.f32.mrf.mxu0 }
 0x67d   :  { %v4793_v20 = vsel %vm4792_vm13, %v6525_v42, %v4789_v51  ;;  %v9173_v54 = vand.u32 4294901760, %v4827_v32  ;;  %v3633_v42 = vpop.f32.mrf.mxu1  ;;  %v3748_v8 = vpop.f32.mrf.mxu2 }
 0x67e   :  { %v4806_v58 = vmul.f32 %v4793_v20, %v9073_v36  ;;  %v4783_v48 = vsel %vm4782_vm15, %v6527_v57, %v4779_v0  ;;  %v4466_v57 = vsel %vm483_vm1, %v4465_v4, %v3633_v42 }
 0x67f   :  { %v4805_v3 = vmul.f32 %v4783_v48, %v9078_v43  ;;  %4928 = vmatmul.f32.vlgmr.msrb.gmra.mxu1 %v9173_v54  ;;  %v4859_v55 = vsub.f32 %v4827_v32, %v9173_v54  ;;  %v4470_v21 = vperm.slane %v4466_v57, %v7071_v59 }
 0x680   :  { %v4811_v52 = vmul.f32 %v9159_v35, %v4806_v58  ;;  %v4487_v58 = vrot.slane %v3748_v8, 4 }
 0x681   :  { %v4810_v17 = vmul.f32 %v9159_v35, %v4805_v3  ;;  %4970 = vmatmul.f32.vlgmr.msra.gmra.mxu2 %v4859_v55  ;;  %v4860_v45 = vand.u32 4294901760, %v4859_v55  ;;  %v4474_v24 = vsel %vm483_vm1, %v4470_v21, %v4473_v7  ;;  %v4471_v30 = vrot.slane %v4470_v21, 4 }
 0x682   :  { %v4816_v6 = vadd.f32 %v9166_v62, %v4811_v52  ;;  %v4482_v26 = vperm.slane %v4474_v24, %v7104_v22 }
 0x683   :  { %5012 = vmatmul.f32.vlgmr.msra.gmra.mxu3 %v4860_v45  ;;  %v4861_v41 = vsub.f32 %v4859_v55, %v4860_v45  ;;  %v4815_v40 = vadd.f32 %v9166_v62, %v4810_v17  ;;  %v4472_v12 = vsel %vm483_vm1, %v4471_v30, %v4464_v33  ;;  %v3771_v55 = vpop.f32.mrf.mxu3  ;;  %v4488_v45 = vsel %vm483_vm1, %v4487_v58, %v3702_v15 }
 0x684   :  { %v4833_v36 = vsel %vm151_vm0, %v4816_v6, 0  ;;  %v4485_v47 = vrot.slane %v4482_v26, 4  ;;  %v4478_v60 = vperm.slane %v4472_v12, %v7104_v22 }
 0x685   :  { %v4862_v27 = vand.u32 4294901760, %v4861_v41  ;;  %v4830_v43 = vsel %vm151_vm0, %v4815_v40, 0  ;;  %v9187_v63 = vand.u32 4294901760, %v4833_v36 }
 0x686   :  { %v9185_v46 = vand.u32 4294901760, %v4830_v43  ;;  %v4486_v0 = vsel %vm483_vm1, 0.0, %v4485_v47  ;;  %v4483_v20 = vrot.slane %v4478_v60, 4  ;;  %v4515_v48 = vsel %vm483_vm1, %v4485_v47, %v4478_v60 }
 0x687   :  { %4863 = vmatmul.f32.vlgmr.msrb.gmra.mxu0 %v4862_v27  ;;  %v4875_v29 = vsub.f32 %v4833_v36, %v9187_v63  ;;  %v4520_v3 = vrot.slane %v4486_v0, 4  ;;  %v4519_v40 = vperm.slane %v4515_v48, %v7071_v59 }
 0x688   :  { %4932 = vmatmul.f32.gmra.mxu1 %v9185_v46  ;;  %v4867_v49 = vsub.f32 %v4830_v43, %v9185_v46  ;;  %v4484_v41 = vsel %vm483_vm1, 0.0, %v4483_v20  ;;  %v4492_v43 = vperm.slane %v4488_v45, %v7071_v59 }
 0x689   :  { %v4876_v1 = vand.u32 4294901760, %v4875_v29  ;;  %v3840_v52 = vpop.f32.mrf.mxu2  ;;  %v4521_v27 = vsel %vm483_vm1, %v4520_v3, %v4484_v41  ;;  %v4539_v61 = vrot.slane %v4519_v40, 4 }
 0x68a   :  { %4975 = vmatmul.f32.gmra.mxu2 %v4867_v49  ;;  %v4868_v2 = vand.u32 4294901760, %v4867_v49  ;;  %v4584_v36 = vrot.slane %v3840_v52, 4  ;;  %v4525_v37 = vperm.slane %v4521_v27, %v7071_v59 }
 0x68b   :  { %v4877_v31 = vsub.f32 %v4875_v29, %v4876_v1  ;;  %v3863_v4 = vpop.f32.mrf.mxu3 }
 0x68c   :  { %5018 = vmatmul.f32.gmra.mxu3 %v4868_v2  ;;  %v4869_v50 = vsub.f32 %v4867_v49, %v4868_v2  ;;  %v3794_v49 = vpop.f32.mrf.mxu0  ;;  %v4540_v24 = vsel %vm483_vm1, %v4525_v37, %v4539_v61  ;;  %v4537_v47 = vrot.slane %v4525_v37, 4 }
 0x68d   :  { %v4878_v13 = vand.u32 4294901760, %v4877_v31  ;;  %v4501_v31 = vrot.slane %v4492_v43, 4  ;;  %v9223_v8 = vperm.slane %v4540_v24, %v7104_v22 }
 0x68e   :  { %v4870_v56 = vand.u32 4294901760, %v4869_v50  ;;  %v4538_v27 = vsel %vm483_vm1, %v4537_v47, %v4519_v40 }
 0x690   :  { %4871 = vmatmul.f32.gmra.mxu0 %v4870_v56  ;;  %4936 = vmatmul.f32.gmra.mxu1 %v9187_v63  ;;  %v4585_v56 = vsel %vm483_vm1, %v4584_v36, %v3794_v49 }
 0x691   :  { %v4589_v33 = vperm.slane %v4585_v56, %v7071_v59 }
 0x692   :  { %4980 = vmatmul.f32.gmra.mxu2 %v4875_v29  ;;  %v4493_v29 = vrot.slane %v3771_v55, 4 }
 0x693   :  { %v4598_v30 = vrot.slane %v4589_v33, 4 }
 0x694   :  { %5024 = vmatmul.f32.gmra.mxu3 %v4876_v1 }
 0x698   :  { %4879 = vmatmul.f32.gmra.mxu0 %v4878_v13 }
 0x699   :  { %v3955_v45 = vpop.f32.mrf.mxu3 }
 0x6a0   :  { %v4755_v10 = vpop.xlane.xlu2 %4754 }
 0x6a1   :  { %v4759_v53 = vmul.f32 %v4755_v10, %v9063_v9 }
 0x6a3   :  { %v4763_v23 = vadd.f32 1e-06, %v4759_v53  ;;  %v4590_v53 = vrot.slane %v3863_v4, 4 }
 0x6a5   :  { %6528 = vrsqrt.f32 %v4763_v23  ;;  %vm4800_vm6 = vweird.f32 %v4763_v23 }
 0x6ab   :  { %v6529_v51 = vpop.eup %6528 }
 0x6ac   :  { %v4795_v32 = vmul.f32 %v6529_v51, %v4763_v23  ;;  %vm4801_vm4 = vweird.f32 %v6529_v51 }
 0x6ad   :  { %vm4802_vm7 = vmor %vm4800_vm6, %vm4801_vm4 }
 0x6ae   :  { %v4796_v17 = vmul.f32 %v6529_v51, %v4795_v32 }
 0x6b0   :  { %v4797_v6 = vmul.f32 0.5, %v4796_v17 }
 0x6b2   :  { %v4798_v2 = vsub.f32 1.5, %v4797_v6 }
 0x6b4   :  { %v4799_v50 = vmul.f32 %v6529_v51, %v4798_v2  ;;  %v3725_v16 = vpop.f32.mrf.mxu1  ;;  %v4567_v2 = vrot.slane %v9223_v8, 4 }
 0x6b5   :  { %v4494_v1 = vsel %vm483_vm1, %v4493_v29, %v3725_v16 }
 0x6b6   :  { %v4803_v19 = vsel %vm4802_vm7, %v6529_v51, %v4799_v50  ;;  %v4498_v38 = vperm.slane %v4494_v1, %v7071_v59  ;;  %v4618_v1 = vrot.slane %v3955_v45, 4 }
 0x6b7   :  { %v4807_v13 = vmul.f32 %v4803_v19, %v9100_v28  ;;  %v9246_v19 = vperm.slane %v4538_v27, %v7104_v22 }
 0x6b8   :  { %v4499_v42 = vrot.slane %v4498_v38, 4  ;;  %v4502_v57 = vsel %vm483_vm1, %v4498_v38, %v4501_v31 }
 0x6b9   :  { %v4812_v7 = vmul.f32 %v9159_v35, %v4807_v13  ;;  %v4510_v21 = vperm.slane %v4502_v57, %v7104_v22 }
 0x6ba   :  { %v4500_v10 = vsel %vm483_vm1, %v4499_v42, %v4492_v43 }
 0x6bb   :  { %v4506_v26 = vperm.slane %v4500_v10, %v7104_v22  ;;  %v4513_v23 = vrot.slane %v4510_v21, 4  ;;  %v4817_v28 = vadd.f32 %v9166_v62, %v4812_v7 }
 0x6bc   :  { %v3817_v12 = vpop.f32.mrf.mxu1 }
 0x6bd   :  { %v4511_v60 = vrot.slane %v4506_v26, 4  ;;  %v4514_v35 = vsel %vm483_vm1, 0.0, %v4513_v23  ;;  %v4526_v15 = vsel %vm483_vm1, %v4513_v23, %v4506_v26  ;;  %v4591_v51 = vsel %vm483_vm1, %v4590_v53, %v3817_v12 }
 0x6be   :  { %v4530_v0 = vperm.slane %v4526_v15, %v7071_v59  ;;  %v4531_v32 = vrot.slane %v4514_v35, 4  ;;  %v4595_v20 = vperm.slane %v4591_v51, %v7071_v59  ;;  %v4836_v62 = vsel %vm151_vm0, %v4817_v28, 0 }
 0x6bf   :  { %v4512_v58 = vsel %vm483_vm1, 0.0, %v4511_v60  ;;  %v9232_v48 = vand.u32 4294901760, %v4836_v62 }
 0x6c0   :  { %v4596_v3 = vrot.slane %v4595_v20, 4  ;;  %v4599_v55 = vsel %vm483_vm1, %v4595_v20, %v4598_v30  ;;  %v4532_v52 = vsel %vm483_vm1, %v4531_v32, %v4512_v58  ;;  %v4551_v17 = vrot.slane %v4530_v0, 4 }
 0x6c1   :  { %v4607_v6 = vperm.slane %v4599_v55, %v7104_v22  ;;  %4940 = vmatmul.f32.gmra.mxu1 %v9232_v48  ;;  %v4883_v41 = vsub.f32 %v4836_v62, %v9232_v48  ;;  %v4536_v36 = vperm.slane %v4532_v52, %v7071_v59  ;;  %v4563_v32 = vrot.slane %v9246_v19, 4 }
 0x6c2   :  { %v4597_v43 = vsel %vm483_vm1, %v4596_v3, %v4589_v33  ;;  %v3932_v49 = vpop.f32.mrf.mxu2 }
 0x6c3   :  { %v4603_v29 = vperm.slane %v4597_v43, %v7104_v22  ;;  %v4610_v50 = vrot.slane %v4607_v6, 4  ;;  %v4612_v16 = vrot.slane %v3932_v49, 4  ;;  %4985 = vmatmul.f32.gmra.mxu2 %v4883_v41  ;;  %v4884_v56 = vand.u32 4294901760, %v4883_v41 }
 0x6c4   :  { %v3886_v37 = vpop.f32.mrf.mxu0  ;;  %v3909_v61 = vpop.f32.mrf.mxu1  ;;  %v4552_v31 = vsel %vm483_vm1, %v4536_v36, %v4551_v17  ;;  %v4549_v40 = vrot.slane %v4536_v36, 4 }
 0x6c5   :  { %v4608_v38 = vrot.slane %v4603_v29, 4  ;;  %v4611_v13 = vsel %vm483_vm1, 0.0, %v4610_v50  ;;  %v4640_v4 = vsel %vm483_vm1, %v4610_v50, %v4603_v29  ;;  %v4613_v33 = vsel %vm483_vm1, %v4612_v16, %v3886_v37  ;;  %5030 = vmatmul.f32.gmra.mxu3 %v4884_v56 }
 0x6c6   :  { %v4644_v42 = vperm.slane %v4640_v4, %v7071_v59  ;;  %v4645_v57 = vrot.slane %v4611_v13, 4  ;;  %v4617_v7 = vperm.slane %v4613_v33, %v7071_v59  ;;  %v4619_v21 = vsel %vm483_vm1, %v4618_v1, %v3909_v61 }
 0x6c7   :  { %v4609_v24 = vsel %vm483_vm1, 0.0, %v4608_v38  ;;  %v4623_v10 = vperm.slane %v4619_v21, %v7071_v59  ;;  %v4560_v53 = vperm.slane %v4552_v31, %v7104_v22  ;;  %v4885_v26 = vsub.f32 %v4883_v41, %v4884_v56 }
 0x6c8   :  { %v4646_v23 = vsel %vm483_vm1, %v4645_v57, %v4609_v24  ;;  %v4626_v28 = vrot.slane %v4617_v7, 4  ;;  %v4550_v30 = vsel %vm483_vm1, %v4549_v40, %v4530_v0  ;;  %v4664_v3 = vrot.slane %v4644_v42, 4 }
 0x6c9   :  { %v4624_v12 = vrot.slane %v4623_v10, 4  ;;  %v4568_v47 = vsel %vm483_vm1, %v4560_v53, %v4567_v2  ;;  %v4886_v60 = vand.u32 4294901760, %v4885_v26  ;;  %5100 = vmatmul.f32.vlgmr.msra.gmra.mxu1 %v9173_v54  ;;  %v4565_v35 = vrot.slane %v4560_v53, 4 }
 0x6ca   :  { %v4627_v15 = vsel %vm483_vm1, %v4623_v10, %v4626_v28  ;;  %4578 = vrot.lane.b32.xlu2 %v4568_v47, %s6812_s15  ;;  %v9264_v51 = vperm.slane %v4550_v30, %v7104_v22  ;;  %v4650_v20 = vperm.slane %v4646_v23, %v7071_v59  ;;  %v9319_v23 = vld [vmem:[%s9585_s7] ss:$0 sm:$0xff] }
 0x6cb   :  { %v4625_v0 = vsel %vm483_vm1, %v4624_v12, %v4617_v7  ;;  %v4635_v62 = vperm.slane %v4627_v15, %v7104_v22  ;;  %4887 = vmatmul.f32.gmra.mxu0 %v4886_v60  ;;  %v4566_v58 = vsel %vm483_vm1, %v4565_v35, %v9223_v8  ;;  %v9643_v7 = vld [vmem:[#allocation26_spill] sm:$0xff] }
 0x6cc   :  { %v4631_v55 = vperm.slane %v4625_v0, %v7104_v22  ;;  %4574 = vrot.lane.b32.xlu0 %v4566_v58, %s6813_s16  ;;  %v4564_v52 = vsel %vm483_vm1, %v9264_v51, %v4563_v32  ;;  %v4662_v45 = vrot.slane %v4650_v20, 4  ;;  %v4665_v27 = vsel %vm483_vm1, %v4650_v20, %v4664_v3 }
 0x6cd   :  { %v4638_v17 = vrot.slane %v4635_v62, 4  ;;  %4570 = vrot.lane.b32.xlu1 %v4564_v52, %s6802_s19  ;;  %v4673_v50 = vperm.slane %v4665_v27, %v7104_v22 }
 0x6ce   :  { %v4636_v6 = vrot.slane %v4631_v55, 4  ;;  %v4663_v2 = vsel %vm483_vm1, %v4662_v45, %v4644_v42 }
 0x6cf   :  { %v4639_v41 = vsel %vm483_vm1, 0.0, %v4638_v17  ;;  %v4651_v36 = vsel %vm483_vm1, %v4638_v17, %v4631_v55  ;;  %v4669_v1 = vperm.slane %v4663_v2, %v7104_v22  ;;  %v4692_v40 = vrot.slane %v4673_v50, 4 }
 0x6d0   :  { %v4655_v8 = vperm.slane %v4651_v36, %v7071_v59  ;;  %v4656_v43 = vrot.slane %v4639_v41, 4  ;;  %v4637_v49 = vsel %vm483_vm1, 0.0, %v4636_v6 }
 0x6d1   :  { %5104 = vmatmul.f32.gmra.mxu1 %v9185_v46  ;;  %v4688_v42 = vrot.slane %v4669_v1, 4 }
 0x6d2   :  { %v4657_v29 = vsel %vm483_vm1, %v4656_v43, %v4637_v49  ;;  %v4676_v16 = vrot.slane %v4655_v8, 4 }
 0x6d3   :  { %5063 = vmatmul.f32.vlgmr.msra.gmra.mxu0 %v9173_v54  ;;  %v4661_v56 = vperm.slane %v4657_v29, %v7071_v59 }
 0x6d5   :  { %v4677_v37 = vsel %vm483_vm1, %v4661_v56, %v4676_v16  ;;  %v4674_v61 = vrot.slane %v4661_v56, 4 }
 0x6d6   :  { %v4685_v31 = vperm.slane %v4677_v37, %v7104_v22 }
 0x6d7   :  { %v4675_v38 = vsel %vm483_vm1, %v4674_v61, %v4655_v8 }
 0x6d8   :  { %v4693_v13 = vsel %vm483_vm1, %v4685_v31, %v4692_v40  ;;  %v4690_v4 = vrot.slane %v4685_v31, 4  ;;  %v4681_v33 = vperm.slane %v4675_v38, %v7104_v22 }
 0x6d9   :  { %5108 = vmatmul.f32.gmra.mxu1 %v9187_v63  ;;  %4703 = vrot.lane.b32.xlu2 %v4693_v13, %s6812_s15 }
 0x6da   :  { %v4691_v59 = vsel %vm483_vm1, %v4690_v4, %v4673_v50  ;;  %v4689_v54 = vsel %vm483_vm1, %v4681_v33, %v4688_v42  ;;  %v4686_v57 = vrot.slane %v4681_v33, 4 }
 0x6db   :  { %5067 = vmatmul.f32.gmra.mxu0 %v9185_v46  ;;  %4699 = vrot.lane.b32.xlu1 %v4691_v59, %s6813_s16  ;;  %v5540_v46 = vld.sshfl [vmem:[#allocation1] sm:$0xff pattern:$0x75316420] }
 0x6dc   :  { %4695 = vrot.lane.b32.xlu0 %v4689_v54, %s6802_s19  ;;  %v4687_v22 = vsel %vm483_vm1, %v4686_v57, %v4669_v1  ;;  %5813 = vst [vmem:[#allocation1] ss:$2 sm:$0xff] %v9643_v7 }
 0x6e1   :  { %5112 = vmatmul.f32.gmra.mxu1 %v9232_v48 }
 0x6e3   :  { %5071 = vmatmul.f32.gmra.mxu0 %v9187_v63  ;;  %5230 = vrot.lane.b32.xlu1 %v9118_v14, %s6809_s14  ;;  %v9644_v63 = vld [vmem:[#allocation27_spill] sm:$0xff] }
 0x6e4   :  { %5815 = vst [vmem:[#allocation1 + $0x1] ss:$2 sm:$0xff] %v9644_v63 }
 0x6eb   :  { %5075 = vmatmul.f32.gmra.mxu0 %v9232_v48  ;;  %5228 = vrot.lane.b32.xlu1 %v9120_v44, %s6809_s14  ;;  %v4561_v48 = vrot.slane %v9264_v51, 4  ;;  %v5816_v38 = vld.sshfl [vmem:[#allocation1] sm:$0xff pattern:$0x75316420] }
 0x6ed   :  { %v4562_v30 = vsel %vm483_vm1, %v4561_v48, %v9246_v19 }
 0x6f3   :  { %5226 = vrot.lane.b32.xlu1 %v9122_v39, %s6809_s14 }
 0x6fb   :  { %5224 = vrot.lane.b32.xlu1 %v9133_v34, %s6809_s14 }
 0x6fc   :  { %v4929_v21 = vpop.f32.mrf.mxu1 }
 0x704   :  { %v4864_v24 = vpop.f32.mrf.mxu0  ;;  %v4971_v3 = vpop.f32.mrf.mxu2 }
 0x705   :  { %v4933_v10 = vpop.f32.mrf.mxu1  ;;  %v4865_v51 = vadd.f32 %v9319_v23, %v4864_v24 }
 0x706   :  { %v5013_v52 = vpop.f32.mrf.mxu3 }
 0x707   :  { %v4930_v62 = vadd.f32 %v4929_v21, %v4865_v51 }
 0x709   :  { %v4972_v55 = vadd.f32 %v4971_v3, %v4930_v62 }
 0x70b   :  { %v5014_v17 = vadd.f32 %v5013_v52, %v4972_v55 }
 0x70d   :  { %v4872_v53 = vpop.f32.mrf.mxu0  ;;  %v4937_v12 = vpop.f32.mrf.mxu1 }
 0x70e   :  { %v4873_v41 = vadd.f32 %v9319_v23, %v4872_v53  ;;  %v4976_v50 = vpop.f32.mrf.mxu2 }
 0x70f   :  { %v5019_v13 = vpop.f32.mrf.mxu3 }
 0x710   :  { %v4934_v2 = vadd.f32 %v4933_v10, %v4873_v41 }
 0x712   :  { %v4977_v37 = vadd.f32 %v4976_v50, %v4934_v2 }
 0x714   :  { %v5020_v54 = vadd.f32 %v5019_v13, %v4977_v37 }
 0x715   :  { %v4880_v47 = vpop.f32.mrf.mxu0 }
 0x716   :  { %v4881_v61 = vadd.f32 %v9319_v23, %v4880_v47  ;;  %v4981_v7 = vpop.f32.mrf.mxu2 }
 0x718   :  { %v4938_v57 = vadd.f32 %v4937_v12, %v4881_v61 }
 0x71a   :  { %v4982_v63 = vadd.f32 %v4981_v7, %v4938_v57 }
 0x724   :  { %v4579_v35 = vpop.permute.xlu2 %4578 }
 0x733   :  { %v4704_v1 = vpop.permute.xlu2 %4703 }
 0x73e   :  { %v4575_v26 = vpop.permute.xlu0 %4574  ;;  %v4941_v58 = vpop.f32.mrf.mxu1 }
 0x73f   :  { %v4571_v28 = vpop.permute.xlu1 %4570 }
 0x740   :  { %v4581_v60 = vsel %vm2159_vm2, %v4562_v30, %v4571_v28 }
 0x741   :  { %v4582_v15 = vsel %vm2808_vm3, %v4581_v60, %v4575_v26  ;;  %v5025_v26 = vpop.f32.mrf.mxu3 }
 0x742   :  { %v4583_v32 = vsel %vm4454_vm5, %v4582_v15, %v4579_v35  ;;  %v5026_v30 = vadd.f32 %v5025_v26, %v4982_v63 }
 0x743   :  { %v9327_v20 = vadd.f32 %v5540_v46, %v4583_v32 }
 0x745   :  { %v5543_v0 = vsel %vm151_vm0, %v9327_v20, 0.0 }
 0x746   :  { %5544 = vadd.xlane.f32.xlu0 %v5543_v0  ;;  %v5101_v27 = vpop.f32.mrf.mxu1 }
 0x748   :  { %v4888_v19 = vpop.f32.mrf.mxu0 }
 0x749   :  { %v4889_v21 = vadd.f32 %v9319_v23, %v4888_v19  ;;  %v4986_v19 = vpop.f32.mrf.mxu2  ;;  %v5031_v41 = vpop.f32.mrf.mxu3 }
 0x74b   :  { %v4942_v12 = vadd.f32 %v4941_v58, %v4889_v21 }
 0x74d   :  { %v4700_v8 = vpop.permute.xlu1 %4699  ;;  %v4987_v55 = vadd.f32 %v4986_v19, %v4942_v12 }
 0x74e   :  { %v4696_v45 = vpop.permute.xlu0 %4695  ;;  %v5105_v42 = vpop.f32.mrf.mxu1 }
 0x74f   :  { %v4706_v43 = vsel %vm2159_vm2, %v4687_v22, %v4696_v45 }
 0x750   :  { %v5064_v6 = vpop.f32.mrf.mxu0  ;;  %v4707_v16 = vsel %vm2808_vm3, %v4706_v43, %v4700_v8  ;;  %v5032_v8 = vadd.f32 %v5031_v41, %v4987_v55 }
 0x751   :  { %v5065_v36 = vadd.f32 %v5064_v6, %v5014_v17  ;;  %v4708_v40 = vsel %vm4454_vm5, %v4707_v16, %v4704_v1 }
 0x752   :  { %v9342_v4 = vadd.f32 %v5816_v38, %v4708_v40 }
 0x753   :  { %v9333_v49 = vadd.f32 %v5101_v27, %v5065_v36 }
 0x754   :  { %v5819_v59 = vsel %vm151_vm0, %v9342_v4, 0.0 }
 0x755   :  { %v9336_v29 = vmul.f32 0.70710677, %v9333_v49  ;;  %5820 = vadd.xlane.f32.xlu2 %v5819_v59  ;;  %v5231_v60 = vpop.permute.xlu1 %5230 }
 0x756   :  { %v5109_v15 = vpop.f32.mrf.mxu1  ;;  %v9364_v27 = vand.u32 4294901760, %v5231_v60 }
 0x757   :  { %v5132_v56 = vand.u32 2147483647, %v9336_v29  ;;  %vm5124_vm1 = vcmp.ge.f32.partialorder %v9336_v29, 0.0  ;;  %v6815_v29 = vmov -1.0  }
 0x758   :  { %v5068_v22 = vpop.f32.mrf.mxu0  ;;  %v9368_v16 = vsub.f32 %v5231_v60, %v9364_v27  ;;  %5415 = vmatpush.msrb.mxu1 %v9364_v27  ;;  %5264 = vmatpush.msrb.mxu2 %v9364_v27 }
 0x759   :  { %v5136_v31 = vmul.f32 0.3275911, %v5132_v56  ;;  %v5069_v46 = vadd.f32 %v5068_v22, %v5020_v54  ;;  %v5184_v53 = vsub.f32 0.0, %v5132_v56 }
 0x75a   :  { %5582 = vrot.lane.b32.xlu0 %v9120_v44, %s6795_s25  ;;  %v5318_v61 = vand.u32 4294901760, %v9368_v16  ;;  %5371 = vmatpush.msrb.mxu0 %v9368_v16 }
 0x75b   :  { %v5140_v33 = vadd.f32 1.0, %v5136_v31  ;;  %v9349_v24 = vadd.f32 %v5105_v42, %v5069_v46  ;;  %v5188_v51 = vmul.f32 %v5184_v53, %v5132_v56 }
 0x75c   :  { %v5319_v54 = vsub.f32 %v9368_v16, %v5318_v61 }
 0x75d   :  { %6530 = vrcp.f32 %v5140_v33  ;;  %v9354_v48 = vmul.f32 0.70710677, %v9349_v24  ;;  %v5192_v58 = vmul.f32 1.442695, %v5188_v51  ;;  %v5229_v2 = vpop.permute.xlu1 %5228 }
 0x75e   :  { %v5113_v31 = vpop.f32.mrf.mxu1  ;;  %v5320_v7 = vand.u32 4294901760, %v5319_v54  ;;  %v9385_v63 = vand.u32 4294901760, %v5229_v2 }
 0x75f   :  { %v5133_v47 = vand.u32 2147483647, %v9354_v48  ;;  %vm5125_vm2 = vcmp.ge.f32.partialorder %v9354_v48, 0.0 }
 0x760   :  { %v5072_v32 = vpop.f32.mrf.mxu0  ;;  %5321 = vmatpush.msrb.mxu3 %v5320_v7  ;;  %5417 = vmatpush.msrb.mxu1 %v9385_v63  ;;  %v5129_v16 = vsel %vm5125_vm2, 1.0, %v6815_v29 }
 0x761   :  { %v5137_v0 = vmul.f32 0.3275911, %v5133_v47  ;;  %v5073_v62 = vadd.f32 %v5072_v32, %v5026_v30  ;;  %v5185_v38 = vsub.f32 0.0, %v5133_v47  ;;  %5266 = vmatpush.msrb.mxu2 %v9385_v63 }
 0x762   :  { %5580 = vrot.lane.b32.xlu0 %v9122_v39, %s6795_s25 }
 0x763   :  { %v6531_v10 = vpop.eup %6530  ;;  %v5141_v52 = vadd.f32 1.0, %v5137_v0  ;;  %v9357_v17 = vadd.f32 %v5109_v15, %v5073_v62  ;;  %v5189_v53 = vmul.f32 %v5185_v38, %v5133_v47  ;;  %v5128_v47 = vsel %vm5124_vm1, 1.0, %v6815_v29 }
 0x764   :  { %v5148_v28 = vmul.f32 1.0614054, %v6531_v10 }
 0x765   :  { %6532 = vrcp.f32 %v5141_v52  ;;  %v9362_v6 = vmul.f32 0.70710677, %v9357_v17  ;;  %v5194_v32 = vmul.f32 1.442695, %v5189_v53  ;;  %v5116_v52 = vmul.f32 0.5, %v9333_v49 }
 0x766   :  { %v5152_v35 = vadd.f32 -1.4531521, %v5148_v28  ;;  %6534 = vpow2.f32 %v5192_v58  ;;  %v5227_v28 = vpop.permute.xlu1 %5226 }
 0x767   :  { %v5134_v43 = vand.u32 2147483647, %v9362_v6  ;;  %vm5126_vm3 = vcmp.ge.f32.partialorder %v9362_v6, 0.0  ;;  %v5118_v6 = vmul.f32 0.5, %v9357_v17 }
 0x768   :  { %v5156_v3 = vmul.f32 %v6531_v10, %v5152_v35  ;;  %v5076_v56 = vpop.f32.mrf.mxu0 }
 0x769   :  { %v5077_v1 = vadd.f32 %v5076_v56, %v5032_v8  ;;  %v5186_v51 = vsub.f32 0.0, %v5134_v43 }
 0x76a   :  { %v5160_v45 = vadd.f32 1.4214138, %v5156_v3  ;;  %5858 = vrot.lane.b32.xlu0 %v9120_v44, %s6798_s1  ;;  %v5138_v44 = vmul.f32 0.3275911, %v5134_v43 }
 0x76b   :  { %v9374_v40 = vpop.eup %6532  ;;  %v9376_v33 = vadd.f32 %v5113_v31, %v5077_v1  ;;  %v5190_v8 = vmul.f32 %v5186_v51, %v5134_v43 }
 0x76c   :  { %v5164_v36 = vmul.f32 %v6531_v10, %v5160_v45  ;;  %v5142_v13 = vadd.f32 1.0, %v5138_v44  ;;  %v5149_v59 = vmul.f32 1.0614054, %v9374_v40  ;;  %v6535_v21 = vpop.eup %6534 }
 0x76d   :  { %v9383_v57 = vmul.f32 0.70710677, %v9376_v33  ;;  %5584 = vrot.lane.b32.xlu2 %v9118_v14, %s6795_s25  ;;  %v5196_v54 = vmul.f32 1.442695, %v5190_v8 }
 0x76e   :  { %v5168_v50 = vadd.f32 -0.28449672, %v5164_v36  ;;  %6536 = vrcp.f32 %v5142_v13  ;;  %v5153_v46 = vadd.f32 -1.4531521, %v5149_v59  ;;  %v9408_v36 = vand.u32 4294901760, %v5227_v28 }
 0x76f   :  { %v9389_v26 = vand.u32 2147483647, %v9383_v57  ;;  %vm5127_vm5 = vcmp.ge.f32.partialorder %v9383_v57, 0.0 }
 0x770   :  { %v5172_v37 = vmul.f32 %v6531_v10, %v5168_v50  ;;  %v5157_v12 = vmul.f32 %v9374_v40, %v5153_v46  ;;  %v5329_v49 = vsub.f32 %v5227_v28, %v9408_v36  ;;  %5419 = vmatpush.msrb.mxu1 %v9408_v36  ;;  %5268 = vmatpush.msrb.mxu2 %v9408_v36 }
 0x771   :  { %v5139_v60 = vmul.f32 0.3275911, %v9389_v26 }
 0x772   :  { %v5176_v42 = vadd.f32 0.2548296, %v5172_v37  ;;  %v5161_v15 = vadd.f32 1.4214138, %v5157_v12 }
 0x773   :  { %v5143_v62 = vadd.f32 1.0, %v5139_v60 }
 0x774   :  { %v5180_v22 = vmul.f32 %v6531_v10, %v5176_v42  ;;  %v9395_v10 = vsub.f32 %v5229_v2, %v9385_v63  ;;  %v9402_v14 = vpop.eup %6536  ;;  %v5165_v3 = vmul.f32 %v9374_v40, %v5161_v15  ;;  %v5225_v2 = vpop.permute.xlu1 %5224  ;;  %v5330_v42 = vand.u32 4294901760, %v5329_v49 }
 0x775   :  { %v5150_v55 = vmul.f32 1.0614054, %v9402_v14  ;;  %6538 = vrcp.f32 %v5143_v62  ;;  %5578 = vrot.lane.b32.xlu2 %v9133_v34, %s6795_s25  ;;  %v9417_v37 = vand.u32 4294901760, %v5225_v2 }
 0x776   :  { %v5200_v30 = vmul.f32 %v6535_v21, %v5180_v22  ;;  %5374 = vmatpush.msrb.mxu0 %v9395_v10  ;;  %v5324_v0 = vand.u32 4294901760, %v9395_v10  ;;  %v5169_v58 = vadd.f32 -0.28449672, %v5165_v3  ;;  %6540 = vpow2.f32 %v5194_v32 }
 0x777   :  { %v5154_v41 = vadd.f32 -1.4531521, %v5150_v55  ;;  %v5187_v22 = vsub.f32 0.0, %v9389_v26  ;;  %v5335_v46 = vsub.f32 %v5225_v2, %v9417_v37  ;;  %5421 = vmatpush.msrb.mxu1 %v9417_v37  ;;  %v5331_v28 = vsub.f32 %v5329_v49, %v5330_v42  ;;  %5270 = vmatpush.msrb.mxu2 %v9417_v37 }
 0x778   :  { %v5204_v35 = vsub.f32 1.0, %v5200_v30  ;;  %v5325_v50 = vsub.f32 %v9395_v10, %v5324_v0  ;;  %v5173_v44 = vmul.f32 %v9374_v40, %v5169_v58  ;;  %5377 = vmatpush.msrb.mxu0 %v5329_v49  ;;  %6542 = vpow2.f32 %v5196_v54 }
 0x779   :  { %v5158_v1 = vmul.f32 %v9402_v14, %v5154_v41  ;;  %v5336_v10 = vand.u32 4294901760, %v5335_v46  ;;  %5462 = vmatpush.msra.mxu2 %v5318_v61  ;;  %v5191_v15 = vmul.f32 %v5187_v22, %v9389_v26  ;;  %v5117_v41 = vmul.f32 0.5, %v9349_v24 }
 0x77a   :  { %v5208_v19 = vmul.f32 %v5204_v35, %v5128_v47  ;;  %v5326_v31 = vand.u32 4294901760, %v5325_v50  ;;  %v5177_v38 = vadd.f32 0.2548296, %v5173_v44  ;;  %5380 = vmatpush.msrb.mxu0 %v5335_v46  ;;  %v5332_v35 = vand.u32 4294901760, %v5331_v28 }
 0x77b   :  { %v5162_v13 = vadd.f32 1.4214138, %v5158_v1  ;;  %v9421_v34 = vpop.eup %6538  ;;  %v5337_v32 = vsub.f32 %v5335_v46, %v5336_v10  ;;  %5466 = vmatpush.msra.mxu2 %v5324_v0  ;;  %v5198_v58 = vmul.f32 1.442695, %v5191_v15  ;;  %v5130_v49 = vsel %vm5126_vm3, 1.0, %v6815_v29 }
 0x77c   :  { %v5212_v45 = vadd.f32 1.0, %v5208_v19  ;;  %5327 = vmatpush.msrb.mxu3 %v5326_v31  ;;  %v5181_v7 = vmul.f32 %v9374_v40, %v5177_v38  ;;  %v5151_v53 = vmul.f32 1.0614054, %v9421_v34  ;;  %v6541_v30 = vpop.eup %6540 }
 0x77d   :  { %v5166_v21 = vmul.f32 %v9402_v14, %v5162_v13  ;;  %5856 = vrot.lane.b32.xlu2 %v9122_v39, %s6798_s1  ;;  %v5338_v61 = vand.u32 4294901760, %v5337_v32  ;;  %5470 = vmatpush.msra.mxu2 %v5330_v42  ;;  %6544 = vpow2.f32 %v5198_v58  ;;  %v6326_v42 = vld [vmem:[%s9585_s7] ss:$0 sm:$0xff] }
 0x77e   :  { %v5216_v56 = vmul.f32 %v5212_v45, %v5116_v52  ;;  %v5201_v60 = vmul.f32 %v6541_v30, %v5181_v7  ;;  %v5155_v40 = vadd.f32 -1.4531521, %v5151_v53  ;;  %5333 = vmatpush.msrb.mxu3 %v5332_v35  ;;  %v6543_v48 = vpop.eup %6542 }
 0x77f   :  { %v5170_v47 = vadd.f32 -0.28449672, %v5166_v21  ;;  %5474 = vmatpush.msra.mxu2 %v5336_v10 }
 0x780   :  { %v5240_v43 = vsel %vm151_vm0, %v5216_v56, 0  ;;  %v5205_v62 = vsub.f32 1.0, %v5201_v60  ;;  %v5159_v3 = vmul.f32 %v9421_v34, %v5155_v40  ;;  %5339 = vmatpush.msrb.mxu3 %v5338_v61 }
 0x781   :  { %v9423_v59 = vand.u32 4294901760, %v5240_v43  ;;  %v5174_v19 = vmul.f32 %v9402_v14, %v5170_v47 }
 0x782   :  { %v5209_v55 = vmul.f32 %v5205_v62, %v5129_v16  ;;  %v5163_v45 = vadd.f32 1.4214138, %v5159_v3  ;;  %5505 = vmatpush.msra.mxu3 %v9364_v27 }
 0x783   :  { %v5272_v12 = vsub.f32 %v5240_v43, %v9423_v59  ;;  %v5178_v52 = vadd.f32 0.2548296, %v5174_v19  ;;  %5341 = vmatmul.f32.vlgmr.msrb.gmra.mxu3 %v9423_v59  ;;  %v6545_v54 = vpop.eup %6544 }
 0x784   :  { %v5213_v8 = vadd.f32 1.0, %v5209_v55  ;;  %v5167_v0 = vmul.f32 %v9421_v34, %v5163_v45  ;;  %5507 = vmatpush.msra.mxu3 %v9385_v63  ;;  %v5846_v45 = vld [vmem:[#allocation11 + $0x18] sm:$0xff] }
 0x785   :  { %5383 = vmatmul.f32.vlgmr.msrb.gmra.mxu0 %v5272_v12  ;;  %v5273_v51 = vand.u32 4294901760, %v5272_v12  ;;  %v5182_v2 = vmul.f32 %v9402_v14, %v5178_v52  ;;  %5590 = vrot.lane.b32.xlu2 %v6326_v42, %s6795_s25 }
 0x786   :  { %v5217_v50 = vmul.f32 %v5213_v8, %v5117_v41  ;;  %v5171_v44 = vadd.f32 -0.28449672, %v5167_v0  ;;  %5509 = vmatpush.msra.mxu3 %v9408_v36 }
 0x787   :  { %5425 = vmatmul.f32.vlgmr.msrb.gmra.mxu1 %v5273_v51  ;;  %v5274_v26 = vsub.f32 %v5272_v12, %v5273_v51  ;;  %v5202_v56 = vmul.f32 %v6543_v48, %v5182_v2  ;;  %v5119_v12 = vmul.f32 0.5, %v9376_v33 }
 0x788   :  { %v5175_v14 = vmul.f32 %v9421_v34, %v5171_v44  ;;  %v5243_v1 = vsel %vm151_vm0, %v5217_v50, 0  ;;  %5511 = vmatpush.msra.mxu3 %v9417_v37 }
 0x789   :  { %v5275_v39 = vand.u32 4294901760, %v5274_v26  ;;  %v5206_v24 = vsub.f32 1.0, %v5202_v56  ;;  %v5279_v31 = vand.u32 4294901760, %v5243_v1 }
 0x78a   :  { %v5179_v27 = vadd.f32 0.2548296, %v5175_v14 }
 0x78b   :  { %5276 = vmatmul.f32.vlgmr.msrb.gmra.mxu2 %v5275_v39  ;;  %v5210_v43 = vmul.f32 %v5206_v24, %v5130_v49  ;;  %v5280_v38 = vsub.f32 %v5243_v1, %v5279_v31  ;;  %5345 = vmatmul.f32.gmra.mxu3 %v5279_v31 }
 0x78c   :  { %v5183_v63 = vmul.f32 %v9421_v34, %v5179_v27  ;;  %v5131_v34 = vsel %vm5127_vm5, 1.0, %v6815_v29 }
 0x78d   :  { %v5214_v13 = vadd.f32 1.0, %v5210_v43  ;;  %5388 = vmatmul.f32.gmra.mxu0 %v5280_v38  ;;  %v5281_v22 = vand.u32 4294901760, %v5280_v38  ;;  %5236 = vrot.lane.b32.xlu2 %v9319_v23, %s6809_s14  ;;  %s6118_s14 = sshll.u32 %s6818_s10, 4  ;;  %s6119_s14 = int_to_ptr.vmem [resolvable:$true] %s6118_s14 }
 0x78e   :  { %v5203_v36 = vmul.f32 %v6545_v54, %v5183_v63 }
 0x78f   :  { %v5218_v46 = vmul.f32 %v5214_v13, %v5118_v6  ;;  %5431 = vmatmul.f32.gmra.mxu1 %v5281_v22  ;;  %v5282_v37 = vsub.f32 %v5280_v38, %v5281_v22 }
 0x790   :  { %v5207_v17 = vsub.f32 1.0, %v5203_v36 }
 0x791   :  { %v5246_v7 = vsel %vm151_vm0, %v5218_v46, 0  ;;  %v5283_v21 = vand.u32 4294901760, %v5282_v37 }
 0x792   :  { %v5287_v53 = vand.u32 4294901760, %v5246_v7  ;;  %v5211_v28 = vmul.f32 %v5207_v17, %v5131_v34 }
 0x793   :  { %5284 = vmatmul.f32.gmra.mxu2 %v5283_v21 }
 0x794   :  { %v5288_v30 = vsub.f32 %v5246_v7, %v5287_v53  ;;  %v5215_v10 = vadd.f32 1.0, %v5211_v28  ;;  %5349 = vmatmul.f32.gmra.mxu3 %v5287_v53 }
 0x796   :  { %5393 = vmatmul.f32.gmra.mxu0 %v5288_v30  ;;  %v5289_v57 = vand.u32 4294901760, %v5288_v30  ;;  %v5219_v60 = vmul.f32 %v5215_v10, %v5119_v12 }
 0x798   :  { %5437 = vmatmul.f32.gmra.mxu1 %v5289_v57  ;;  %v5290_v47 = vsub.f32 %v5288_v30, %v5289_v57  ;;  %v5249_v40 = vsel %vm151_vm0, %v5219_v60, 0 }
 0x799   :  { %v5295_v15 = vand.u32 4294901760, %v5249_v40 }
 0x79a   :  { %v5291_v35 = vand.u32 4294901760, %v5290_v47 }
 0x79b   :  { %v5296_v32 = vsub.f32 %v5249_v40, %v5295_v15 }
 0x79c   :  { %5292 = vmatmul.f32.gmra.mxu2 %v5291_v35  ;;  %5353 = vmatmul.f32.gmra.mxu3 %v5295_v15 }
 0x79d   :  { %v5297_v51 = vand.u32 4294901760, %v5296_v32 }
 0x79e   :  { %5398 = vmatmul.f32.gmra.mxu0 %v5296_v32 }
 0x79f   :  { %v5298_v33 = vsub.f32 %v5296_v32, %v5297_v51 }
 0x7a0   :  { %5443 = vmatmul.f32.gmra.mxu1 %v5297_v51 }
 0x7a1   :  { %v5299_v62 = vand.u32 4294901760, %v5298_v33 }
 0x7a4   :  { %5300 = vmatmul.f32.gmra.mxu2 %v5299_v62  ;;  %5513 = vmatmul.f32.vlgmr.msra.gmra.mxu3 %v9423_v59 }
 0x7ac   :  { %5476 = vmatmul.f32.vlgmr.msra.gmra.mxu2 %v9423_v59  ;;  %5517 = vmatmul.f32.gmra.mxu3 %v5279_v31 }
 0x7b4   :  { %5480 = vmatmul.f32.gmra.mxu2 %v5279_v31  ;;  %5521 = vmatmul.f32.gmra.mxu3 %v5287_v53 }
 0x7b9   :  { %v5545_v23 = vpop.xlane.xlu0 %5544 }
 0x7ba   :  { %v5546_v19 = vmul.f32 %v5545_v23, %v9063_v9 }
 0x7bc   :  { %v9473_v3 = vsub.f32 %v9327_v20, %v5546_v19  ;;  %5484 = vmatmul.f32.gmra.mxu2 %v5287_v53  ;;  %5525 = vmatmul.f32.gmra.mxu3 %v5295_v15 }
 0x7be   :  { %v5548_v16 = vmul.f32 %v9473_v3, %v9473_v3 }
 0x7c0   :  { %v5549_v61 = vsel %vm151_vm0, %v5548_v16, 0.0 }
 0x7c1   :  { %5550 = vadd.xlane.f32.xlu1 %v5549_v61 }
 0x7c4   :  { %5488 = vmatmul.f32.gmra.mxu2 %v5295_v15 }
 0x7c8   :  { %v5821_v26 = vpop.xlane.xlu2 %5820 }
 0x7c9   :  { %v5822_v59 = vmul.f32 %v5821_v26, %v9063_v9 }
 0x7cb   :  { %v9480_v55 = vsub.f32 %v9342_v4, %v5822_v59  ;;  %v5843_v4 = vld [vmem:[#allocation11] sm:$0xff] }
 0x7cc   :  { %v5583_v48 = vpop.permute.xlu0 %5582 }
 0x7cd   :  { %v5824_v52 = vmul.f32 %v9480_v55, %v9480_v55  ;;  %v5610_v50 = vand.u32 4294901760, %v5583_v48 }
 0x7cf   :  { %v5825_v20 = vsel %vm151_vm0, %v5824_v52, 0.0  ;;  %v5644_v56 = vsub.f32 %v5583_v48, %v5610_v50 }
 0x7d0   :  { %5826 = vadd.xlane.f32.xlu0 %v5825_v20  ;;  %v5585_v58 = vpop.permute.xlu2 %5584 }
 0x7d1   :  { %v5608_v39 = vand.u32 4294901760, %v5585_v58  ;;  %v5645_v43 = vand.u32 4294901760, %v5644_v56 }
 0x7d3   :  { %v5638_v41 = vsub.f32 %v5585_v58, %v5608_v39  ;;  %5609 = vmatpush.msra.mxu0 %v5608_v39  ;;  %5709 = vmatpush.msrb.mxu3 %v5608_v39  ;;  %v5646_v6 = vsub.f32 %v5644_v56, %v5645_v43 }
 0x7d4   :  { %v5581_v24 = vpop.permute.xlu0 %5580 }
 0x7d5   :  { %v5639_v8 = vand.u32 4294901760, %v5638_v41  ;;  %5680 = vmatpush.msrb.mxu2 %v5638_v41  ;;  %5611 = vmatpush.msra.mxu0 %v5610_v50  ;;  %v5612_v1 = vand.u32 4294901760, %v5581_v24  ;;  %v5647_v13 = vand.u32 4294901760, %v5646_v6 }
 0x7d6   :  { %5711 = vmatpush.msrb.mxu3 %v5610_v50 }
 0x7d7   :  { %v5640_v2 = vsub.f32 %v5638_v41, %v5639_v8  ;;  %5683 = vmatpush.msrb.mxu2 %v5644_v56  ;;  %v5650_v49 = vsub.f32 %v5581_v24, %v5612_v1  ;;  %5613 = vmatpush.msra.mxu0 %v5612_v1 }
 0x7d8   :  { %v5579_v44 = vpop.permute.xlu2 %5578  ;;  %5713 = vmatpush.msrb.mxu3 %v5612_v1 }
 0x7d9   :  { %v5641_v0 = vand.u32 4294901760, %v5640_v2  ;;  %v5614_v14 = vand.u32 4294901760, %v5579_v44  ;;  %5686 = vmatpush.msrb.mxu2 %v5650_v49  ;;  %v5651_v27 = vand.u32 4294901760, %v5650_v49 }
 0x7da   :  { %5860 = vrot.lane.b32.xlu1 %v5846_v45, %s6798_s1 }
 0x7db   :  { %5642 = vmatpush.msra.mxu1 %v5641_v0  ;;  %v5656_v31 = vsub.f32 %v5579_v44, %v5614_v14  ;;  %5615 = vmatpush.msra.mxu0 %v5614_v14  ;;  %v5652_v63 = vsub.f32 %v5650_v49, %v5651_v27 }
 0x7dc   :  { %5715 = vmatpush.msrb.mxu3 %v5614_v14 }
 0x7dd   :  { %5738 = vmatpush.msrb.mxu0 %v5639_v8  ;;  %5689 = vmatpush.msrb.mxu2 %v5656_v31  ;;  %v5657_v38 = vand.u32 4294901760, %v5656_v31  ;;  %v5653_v42 = vand.u32 4294901760, %v5652_v63 }
 0x7de   :  { %5648 = vmatpush.msra.mxu1 %v5647_v13 }
 0x7df   :  { %5742 = vmatpush.msrb.mxu0 %v5645_v43  ;;  %v5658_v54 = vsub.f32 %v5656_v31, %v5657_v38 }
 0x7e0   :  { %5654 = vmatpush.msra.mxu1 %v5653_v42  ;;  %v9487_v36 = vpop.permute.xlu2 %5856 }
 0x7e1   :  { %5746 = vmatpush.msrb.mxu0 %v5651_v27  ;;  %v5659_v22 = vand.u32 4294901760, %v5658_v54  ;;  %v9497_v13 = vand.u32 4294901760, %v9487_v36 }
 0x7e3   :  { %5750 = vmatpush.msrb.mxu0 %v5657_v38  ;;  %5660 = vmatpush.msra.mxu1 %v5659_v22 }
 0x7e4   :  { %5854 = vrot.lane.b32.xlu0 %v5843_v4, %s6798_s1 }
 0x7e5   :  { %5769 = vmatpush.msrb.mxu1 %v5608_v39 }
 0x7e7   :  { %5771 = vmatpush.msrb.mxu1 %v5610_v50 }
 0x7e8   :  { %v9489_v7 = vpop.permute.xlu2 %5590 }
 0x7e9   :  { %5773 = vmatpush.msrb.mxu1 %v5612_v1 }
 0x7eb   :  { %5775 = vmatpush.msrb.mxu1 %v5614_v14 }
 0x7f0   :  { %v5237_v53 = vpop.permute.xlu2 %5236 }
 0x802   :  { %v5384_v10 = vpop.f32.mrf.mxu0 }
 0x804   :  { %v5426_v60 = vpop.f32.mrf.mxu1 }
 0x806   :  { %v5342_v46 = vpop.f32.mrf.mxu3 }
 0x80a   :  { %v5389_v32 = vpop.f32.mrf.mxu0 }
 0x80c   :  { %v5432_v61 = vpop.f32.mrf.mxu1 }
 0x80e   :  { %v5277_v37 = vpop.f32.mrf.mxu2  ;;  %v5346_v17 = vpop.f32.mrf.mxu3 }
 0x80f   :  { %v5278_v12 = vadd.f32 %v5277_v37, %v5237_v53 }
 0x811   :  { %v5343_v57 = vadd.f32 %v5342_v46, %v5278_v12 }
 0x813   :  { %v5385_v35 = vadd.f32 %v5384_v10, %v5343_v57  ;;  %v5394_v8 = vpop.f32.mrf.mxu0 }
 0x815   :  { %v5427_v33 = vadd.f32 %v5426_v60, %v5385_v35  ;;  %v5438_v44 = vpop.f32.mrf.mxu1 }
 0x816   :  { %v5285_v34 = vpop.f32.mrf.mxu2 }
 0x817   :  { %v5350_v21 = vpop.f32.mrf.mxu3  ;;  %v5286_v40 = vadd.f32 %v5285_v34, %v5237_v53 }
 0x819   :  { %v5347_v51 = vadd.f32 %v5346_v17, %v5286_v40  ;;  %v9504_v17 = vsub.f32 %v9487_v36, %v9497_v13 }
 0x81b   :  { %v5390_v20 = vadd.f32 %v5389_v32, %v5347_v51  ;;  %v5399_v63 = vpop.f32.mrf.mxu0 }
 0x81d   :  { %v5433_v41 = vadd.f32 %v5432_v61, %v5390_v20  ;;  %v5444_v34 = vpop.f32.mrf.mxu1 }
 0x81f   :  { %v5293_v28 = vpop.f32.mrf.mxu2  ;;  %v5354_v30 = vpop.f32.mrf.mxu3 }
 0x820   :  { %v5294_v26 = vadd.f32 %v5293_v28, %v5237_v53 }
 0x822   :  { %v5351_v39 = vadd.f32 %v5350_v21, %v5294_v26 }
 0x824   :  { %v5395_v56 = vadd.f32 %v5394_v8, %v5351_v39 }
 0x826   :  { %v5439_v31 = vadd.f32 %v5438_v44, %v5395_v56 }
 0x827   :  { %v5301_v47 = vpop.f32.mrf.mxu2  ;;  %v5514_v15 = vpop.f32.mrf.mxu3 }
 0x828   :  { %v5302_v48 = vadd.f32 %v5301_v47, %v5237_v53 }
 0x82a   :  { %v5355_v49 = vadd.f32 %v5354_v30, %v5302_v48 }
 0x82f   :  { %v5477_v62 = vpop.f32.mrf.mxu2  ;;  %v5518_v58 = vpop.f32.mrf.mxu3 }
 0x830   :  { %v5478_v19 = vadd.f32 %v5477_v62, %v5427_v33 }
 0x832   :  { %v5515_v59 = vadd.f32 %v5514_v15, %v5478_v19 }
 0x834   :  { %v5551_v23 = vpop.xlane.xlu1 %5550  ;;  %v5529_v45 = vadd.f32 %v5515_v59, %v8973_v18  ;;  %v5859_v18 = vpop.permute.xlu0 %5858 }
 0x835   :  { %v5552_v16 = vmul.f32 %v5551_v23, %v9063_v9  ;;  %v9499_v54 = vand.u32 4294901760, %v5859_v18 }
 0x836   :  { %5533 = vst.msk [vmem:[#allocation13] sm:$0xff] %vm151_vm0, %v5529_v45 }
 0x837   :  { %v5553_v52 = vadd.f32 1e-06, %v5552_v16  ;;  %v5481_v2 = vpop.f32.mrf.mxu2  ;;  %v5522_v27 = vpop.f32.mrf.mxu3  ;;  %v9507_v53 = vsub.f32 %v5859_v18, %v9499_v54 }
 0x838   :  { %v5482_v0 = vadd.f32 %v5481_v2, %v5433_v41 }
 0x839   :  { %6546 = vrsqrt.f32 %v5553_v52  ;;  %vm5560_vm9 = vweird.f32 %v5553_v52  ;;  %v5921_v32 = vand.u32 4294901760, %v9507_v53 }
 0x83a   :  { %v5519_v50 = vadd.f32 %v5518_v58, %v5482_v0 }
 0x83b   :  { %v5922_v59 = vsub.f32 %v9507_v53, %v5921_v32 }
 0x83c   :  { %v5530_v14 = vadd.f32 %v5519_v50, %v8979_v11  ;;  %v5400_v11 = vadd.f32 %v5399_v63, %v5355_v49  ;;  %v6327_v50 = vld [vmem:[%s9585_s7] ss:$0 sm:$0xff]  ;;  %s6816_s7 = smov [#allocation13]  }
 0x83d   :  { %v5923_v41 = vand.u32 4294901760, %v5922_v59  ;;  %5866 = vrot.lane.b32.xlu0 %v6327_v50, %s6798_s1  ;;  %s6092_s1 = sshll.u32 %s6816_s7, 4  ;;  %s6093_s1 = int_to_ptr.vmem [resolvable:$true] %s6092_s1 }
 0x83e   :  { %5534 = vst.msk [vmem:[#allocation13 + $0x8] sm:$0xff] %vm151_vm0, %v5530_v14  ;;  %v5445_v12 = vadd.f32 %v5444_v34, %v5400_v11 }
 0x83f   :  { %v6547_v4 = vpop.eup %6546  ;;  %v5485_v38 = vpop.f32.mrf.mxu2 }
 0x840   :  { %v5555_v24 = vmul.f32 %v6547_v4, %v5553_v52  ;;  %v5486_v6 = vadd.f32 %v5485_v38, %v5439_v31  ;;  %vm5561_vm8 = vweird.f32 %v6547_v4  ;;  %v5526_v35 = vpop.f32.mrf.mxu3 }
 0x841   :  { %vm5562_vm10 = vmor %vm5560_vm9, %vm5561_vm8 }
 0x842   :  { %v5556_v1 = vmul.f32 %v6547_v4, %v5555_v24  ;;  %v5523_v22 = vadd.f32 %v5522_v27, %v5486_v6 }
 0x843   :  { %v5827_v30 = vpop.xlane.xlu0 %5826 }
 0x844   :  { %v5557_v43 = vmul.f32 0.5, %v5556_v1  ;;  %v5531_v37 = vadd.f32 %v5523_v22, %v8951_v5  ;;  %v5828_v10 = vmul.f32 %v5827_v30, %v9063_v9  ;;  %v9515_v5 = vld [vmem:[%s9586_s8] ss:$0 sm:$0xff]  ;;  %v6565_v9 = vld [vmem:[%s9586_s8 + $0x1] ss:$0 sm:$0xff] }
 0x846   :  { %v5558_v42 = vsub.f32 1.5, %v5557_v43  ;;  %5535 = vst.msk [vmem:[#allocation13 + $0x10] sm:$0xff] %vm151_vm0, %v5531_v37  ;;  %v5829_v15 = vadd.f32 1e-06, %v5828_v10 }
 0x847   :  { %v5489_v57 = vpop.f32.mrf.mxu2 }
 0x848   :  { %v5559_v46 = vmul.f32 %v6547_v4, %v5558_v42  ;;  %v5490_v47 = vadd.f32 %v5489_v57, %v5445_v12  ;;  %6548 = vrsqrt.f32 %v5829_v15  ;;  %vm5836_vm12 = vweird.f32 %v5829_v15 }
 0x84a   :  { %v5563_v21 = vsel %vm5562_vm10, %v6547_v4, %v5559_v46  ;;  %v5527_v33 = vadd.f32 %v5526_v35, %v5490_v47 }
 0x84b   :  { %v5564_v28 = vmul.f32 %v5563_v21, %v9473_v3  ;;  %v5927_v3 = vand.u32 4294901760, %v9504_v17 }
 0x84c   :  { %v5861_v60 = vpop.permute.xlu1 %5860  ;;  %v5532_v23 = vadd.f32 %v5527_v33, %v9035_v25 }
 0x84d   :  { %v5565_v36 = vmul.f32 %v9515_v5, %v5564_v28  ;;  %v9518_v40 = vand.u32 4294901760, %v5861_v60  ;;  %v5928_v52 = vsub.f32 %v9504_v17, %v5927_v3 }
 0x84e   :  { %5536 = vst.msk [vmem:[#allocation13 + $0x18] sm:$0xff] %vm151_vm0, %v5532_v23  ;;  %v6549_v45 = vpop.eup %6548 }
 0x84f   :  { %v5566_v51 = vadd.f32 %v6565_v9, %v5565_v36  ;;  %v5914_v62 = vsub.f32 %v5861_v60, %v9518_v40  ;;  %5885 = vmatpush.msra.mxu2 %v9518_v40  ;;  %v5831_v39 = vmul.f32 %v6549_v45, %v5829_v15  ;;  %v5929_v8 = vand.u32 4294901760, %v5928_v52  ;;  %6100 = dma.vmem_to_hbm [thread:$0]  %s6093_s1, 512, %s6095_s5, [#allocation4], %s6801_s18, %s6801_s18, %s6802_s19  }
 0x850   :  { %vm5837_vm11 = vweird.f32 %v6549_v45  ;;  %s6105_s18 = sshll.u32 %s6817_s9, 4  ;;  %s6106_s18 = int_to_ptr.vmem [resolvable:$true] %s6105_s18 }
 0x851   :  { %v5915_v19 = vand.u32 4294901760, %v5914_v62  ;;  %5887 = vmatpush.msra.mxu2 %v9499_v54  ;;  %v5594_v16 = vsel %vm151_vm0, %v5566_v51, 0  ;;  %v5832_v0 = vmul.f32 %v6549_v45, %v5831_v39  ;;  %vm5838_vm13 = vmor %vm5836_vm12, %vm5837_vm11 }
 0x852   :  { %v5616_v61 = vand.u32 4294901760, %v5594_v16 }
 0x853   :  { %v5916_v26 = vsub.f32 %v5914_v62, %v5915_v19  ;;  %5889 = vmatpush.msra.mxu2 %v9497_v13  ;;  %v5833_v48 = vmul.f32 0.5, %v5832_v0 }
 0x854   :  { %5662 = vmatmul.f32.vlgmr.msra.gmra.mxu1 %v5616_v61  ;;  %v5617_v20 = vsub.f32 %v5594_v16, %v5616_v61 }
 0x855   :  { %v5917_v25 = vand.u32 4294901760, %v5916_v26  ;;  %5985 = vmatpush.msra.mxu1 %v9518_v40  ;;  %v5834_v56 = vsub.f32 1.5, %v5833_v48 }
 0x856   :  { %5692 = vmatmul.f32.vlgmr.msrb.gmra.mxu2 %v5617_v20  ;;  %v5618_v58 = vand.u32 4294901760, %v5617_v20  ;;  %v5855_v44 = vpop.permute.xlu0 %5854 }
 0x857   :  { %5987 = vmatpush.msra.mxu1 %v9499_v54  ;;  %5918 = vmatpush.msra.mxu3 %v5917_v25  ;;  %v5835_v24 = vmul.f32 %v6549_v45, %v5834_v56  ;;  %v5890_v14 = vand.u32 4294901760, %v5855_v44 }
 0x858   :  { %5719 = vmatmul.f32.vlgmr.msrb.gmra.mxu3 %v5618_v58  ;;  %v5619_v2 = vsub.f32 %v5617_v20, %v5618_v58 }
 0x859   :  { %5924 = vmatpush.msra.mxu3 %v5923_v41  ;;  %5989 = vmatpush.msra.mxu1 %v9497_v13  ;;  %v5839_v1 = vsel %vm5838_vm13, %v6549_v45, %v5835_v24  ;;  %v5932_v49 = vsub.f32 %v5855_v44, %v5890_v14 }
 0x85a   :  { %v5620_v4 = vand.u32 4294901760, %v5619_v2  ;;  %5891 = vmatpush.msra.mxu2 %v5890_v14  ;;  %v5840_v18 = vmul.f32 %v5839_v1, %v9480_v55 }
 0x85b   :  { %5930 = vmatpush.msra.mxu3 %v5929_v8  ;;  %5991 = vmatpush.msra.mxu1 %v5890_v14  ;;  %v5933_v31 = vand.u32 4294901760, %v5932_v49 }
 0x85c   :  { %5621 = vmatmul.f32.vlgmr.msra.gmra.mxu0 %v5620_v4  ;;  %5777 = vmatmul.f32.vlgmr.msrb.gmra.mxu1 %v5616_v61  ;;  %v5841_v43 = vmul.f32 %v9515_v5, %v5840_v18 }
 0x85d   :  { %5956 = vmatpush.msra.mxu0 %v5914_v62  ;;  %6014 = vmatpush.msrb.mxu2 %v5915_v19  ;;  %v5934_v27 = vsub.f32 %v5932_v49, %v5933_v31 }
 0x85e   :  { %v5842_v38 = vadd.f32 %v6565_v9, %v5841_v43 }
 0x85f   :  { %5959 = vmatpush.msra.mxu0 %v9507_v53  ;;  %6018 = vmatpush.msrb.mxu2 %v5921_v32  ;;  %v5935_v6 = vand.u32 4294901760, %v5934_v27 }
 0x860   :  { %v5870_v63 = vsel %vm151_vm0, %v5842_v38, 0 }
 0x861   :  { %5962 = vmatpush.msra.mxu0 %v9504_v17  ;;  %6022 = vmatpush.msrb.mxu2 %v5927_v3  ;;  %v5892_v42 = vand.u32 4294901760, %v5870_v63 }
 0x862   :  { %5936 = vmatpush.msra.mxu3 %v5935_v6 }
 0x863   :  { %5965 = vmatpush.msra.mxu0 %v5932_v49  ;;  %6026 = vmatpush.msrb.mxu2 %v5933_v31  ;;  %v5893_v55 = vsub.f32 %v5870_v63, %v5892_v42 }
 0x864   :  { %5752 = vmatmul.f32.vlgmr.msrb.gmra.mxu0 %v5616_v61  ;;  %6045 = vmatpush.msrb.mxu3 %v9518_v40 }
 0x865   :  { %5938 = vmatmul.f32.vlgmr.msra.gmra.mxu3 %v5892_v42  ;;  %v5894_v22 = vand.u32 4294901760, %v5893_v55 }
 0x866   :  { %6047 = vmatpush.msrb.mxu3 %v9499_v54 }
 0x867   :  { %5995 = vmatmul.f32.vlgmr.msra.gmra.mxu1 %v5894_v22  ;;  %v5895_v11 = vsub.f32 %v5893_v55, %v5894_v22 }
 0x868   :  { %6049 = vmatpush.msrb.mxu3 %v9497_v13 }
 0x869   :  { %v5896_v46 = vand.u32 4294901760, %v5895_v11 }
 0x86a   :  { %6051 = vmatpush.msrb.mxu3 %v5890_v14 }
 0x86b   :  { %5897 = vmatmul.f32.vlgmr.msra.gmra.mxu2 %v5896_v46 }
 0x86c   :  { %5968 = vmatmul.f32.vlgmr.msra.gmra.mxu0 %v5893_v55 }
 0x86d   :  { %6053 = vmatmul.f32.vlgmr.msrb.gmra.mxu3 %v5892_v42 }
 0x873   :  { %6028 = vmatmul.f32.vlgmr.msrb.gmra.mxu2 %v5892_v42 }
 0x8af   :  { %v5867_v35 = vpop.permute.xlu0 %5866 }
 0x8d1   :  { %v5663_v13 = vpop.f32.mrf.mxu1 }
 0x8d9   :  { %v5622_v54 = vpop.f32.mrf.mxu0  ;;  %v5693_v34 = vpop.f32.mrf.mxu2 }
 0x8da   :  { %v5623_v37 = vadd.f32 %v5622_v54, %v9489_v7  ;;  %v5778_v10 = vpop.f32.mrf.mxu1 }
 0x8db   :  { %v5720_v53 = vpop.f32.mrf.mxu3 }
 0x8dc   :  { %v5664_v17 = vadd.f32 %v5663_v13, %v5623_v37 }
 0x8de   :  { %v5694_v21 = vadd.f32 %v5693_v34, %v5664_v17 }
 0x8e0   :  { %v5721_v28 = vadd.f32 %v5720_v53, %v5694_v21 }
 0x8e1   :  { %v5753_v30 = vpop.f32.mrf.mxu0 }
 0x8e2   :  { %v5754_v12 = vadd.f32 %v5753_v30, %v5721_v28 }
 0x8e4   :  { %v5779_v57 = vadd.f32 %v5778_v10, %v5754_v12  ;;  %v5996_v59 = vpop.f32.mrf.mxu1 }
 0x8e6   :  { %v5782_v60 = vmul.f32 0.70710677, %v5779_v57  ;;  %v5781_v18 = vmul.f32 0.5, %v5779_v57 }
 0x8e8   :  { %v5785_v5 = vand.u32 2147483647, %v5782_v60  ;;  %v5939_v32 = vpop.f32.mrf.mxu3  ;;  %vm5783_vm0 = vcmp.ge.f32.partialorder %v5782_v60, 0.0 }
 0x8e9   :  { %v5969_v19 = vpop.f32.mrf.mxu0  ;;  %v5784_v1 = vsel %vm5783_vm0, 1.0, %v6815_v29 }
 0x8ea   :  { %v5786_v36 = vmul.f32 0.3275911, %v5785_v5  ;;  %v5798_v3 = vsub.f32 0.0, %v5785_v5 }
 0x8ec   :  { %v5787_v47 = vadd.f32 1.0, %v5786_v36  ;;  %v5799_v33 = vmul.f32 %v5798_v3, %v5785_v5 }
 0x8ee   :  { %6550 = vrcp.f32 %v5787_v47  ;;  %v5898_v7 = vpop.f32.mrf.mxu2  ;;  %v5800_v26 = vmul.f32 1.442695, %v5799_v33 }
 0x8ef   :  { %v5899_v51 = vadd.f32 %v5898_v7, %v5867_v35 }
 0x8f0   :  { %6552 = vpow2.f32 %v5800_v26  ;;  %v6054_v39 = vpop.f32.mrf.mxu3 }
 0x8f1   :  { %v5940_v23 = vadd.f32 %v5939_v32, %v5899_v51 }
 0x8f3   :  { %v5970_v61 = vadd.f32 %v5969_v19, %v5940_v23 }
 0x8f4   :  { %v6551_v40 = vpop.eup %6550 }
 0x8f5   :  { %v5789_v15 = vmul.f32 1.0614054, %v6551_v40  ;;  %v5997_v20 = vadd.f32 %v5996_v59, %v5970_v61 }
 0x8f6   :  { %v6029_v25 = vpop.f32.mrf.mxu2  ;;  %v6553_v50 = vpop.eup %6552 }
 0x8f7   :  { %v5790_v9 = vadd.f32 -1.4531521, %v5789_v15  ;;  %v6030_v58 = vadd.f32 %v6029_v25, %v5997_v20 }
 0x8f9   :  { %v5791_v62 = vmul.f32 %v6551_v40, %v5790_v9  ;;  %v6055_v8 = vadd.f32 %v6054_v39, %v6030_v58 }
 0x8fb   :  { %v5792_v16 = vadd.f32 1.4214138, %v5791_v62  ;;  %v6058_v0 = vmul.f32 0.70710677, %v6055_v8  ;;  %v6057_v10 = vmul.f32 0.5, %v6055_v8 }
 0x8fd   :  { %v5793_v52 = vmul.f32 %v6551_v40, %v5792_v16  ;;  %v6061_v48 = vand.u32 2147483647, %v6058_v0  ;;  %vm6059_vm15 = vcmp.ge.f32.partialorder %v6058_v0, 0.0 }
 0x8fe   :  { %v6060_v30 = vsel %vm6059_vm15, 1.0, %v6815_v29 }
 0x8ff   :  { %v5794_v45 = vadd.f32 -0.28449672, %v5793_v52  ;;  %v6062_v44 = vmul.f32 0.3275911, %v6061_v48  ;;  %v6074_v6 = vsub.f32 0.0, %v6061_v48 }
 0x901   :  { %v5795_v41 = vmul.f32 %v6551_v40, %v5794_v45  ;;  %v6063_v14 = vadd.f32 1.0, %v6062_v44  ;;  %v6075_v55 = vmul.f32 %v6074_v6, %v6061_v48 }
 0x903   :  { %v5796_v2 = vadd.f32 0.2548296, %v5795_v41  ;;  %6554 = vrcp.f32 %v6063_v14  ;;  %v6076_v46 = vmul.f32 1.442695, %v6075_v55 }
 0x905   :  { %v5797_v4 = vmul.f32 %v6551_v40, %v5796_v2  ;;  %6556 = vpow2.f32 %v6076_v46 }
 0x907   :  { %v5802_v56 = vmul.f32 %v6553_v50, %v5797_v4 }
 0x909   :  { %v5803_v24 = vsub.f32 1.0, %v5802_v56  ;;  %v6555_v27 = vpop.eup %6554 }
 0x90a   :  { %v6065_v63 = vmul.f32 1.0614054, %v6555_v27 }
 0x90b   :  { %v5804_v49 = vmul.f32 %v5803_v24, %v5784_v1  ;;  %v6557_v21 = vpop.eup %6556 }
 0x90c   :  { %v6066_v42 = vadd.f32 -1.4531521, %v6065_v63 }
 0x90d   :  { %v5805_v31 = vadd.f32 1.0, %v5804_v49 }
 0x90e   :  { %v6067_v22 = vmul.f32 %v6555_v27, %v6066_v42 }
 0x90f   :  { %v5806_v43 = vmul.f32 %v5805_v31, %v5781_v18 }
 0x910   :  { %v6068_v11 = vadd.f32 1.4214138, %v6067_v22 }
 0x911   :  { %v5808_v38 = vrot.slane %v5806_v43, 4  ;;  %5811 = vst.msk [vmem:[#allocation14] sm:$0xf] %vm5810_vm14, %v5806_v43 }
 0x912   :  { %v6069_v13 = vmul.f32 %v6555_v27, %v6068_v11 }
 0x913   :  { %5812 = vst.msk [vmem:[#allocation14 + $0x4] sm:$0xf] %vm5810_vm14, %v5808_v38 }
 0x914   :  { %6113 = dma.vmem_to_hbm [thread:$0]  %s6106_s18, 128, %s6108_s3, [#allocation15], %s6795_s25, %s6795_s25, %s6796_s26   ;;  %v6070_v54 = vadd.f32 -0.28449672, %v6069_v13 }
 0x916   :  { %v6071_v37 = vmul.f32 %v6555_v27, %v6070_v54 }
 0x918   :  { %v6072_v17 = vadd.f32 0.2548296, %v6071_v37 }
 0x91a   :  { %v6073_v34 = vmul.f32 %v6555_v27, %v6072_v17 }
 0x91c   :  { %v6078_v53 = vmul.f32 %v6557_v21, %v6073_v34 }
 0x91e   :  { %v6079_v28 = vsub.f32 1.0, %v6078_v53 }
 0x920   :  { %v6080_v12 = vmul.f32 %v6079_v28, %v6060_v30 }
 0x922   :  { %v6081_v57 = vadd.f32 1.0, %v6080_v12 }
 0x924   :  { %v6082_v60 = vmul.f32 %v6081_v57, %v6057_v10 }
 0x926   :  { %v6084_v5 = vrot.slane %v6082_v60, 4  ;;  %6086 = vst.msk [vmem:[#allocation16] sm:$0xf] %vm5810_vm14, %v6082_v60 }
 0x928   :  { %6087 = vst.msk [vmem:[#allocation16 + $0x4] sm:$0xf] %vm5810_vm14, %v6084_v5 }
 0x929   :  { %6126 = dma.vmem_to_hbm [thread:$0]  %s6119_s14, 128, %s6121_s17, [#allocation15], %s6795_s25, %s6795_s25, %s6796_s26  }
 0x92a   :  { %6790 = dma.done.wait [#allocation4], 512  }
 0x92b   :  { %6791 = vsyncadd [#allocation4], 4294966784 }
 0x92c   :  { %6792 = dma.done.wait [#allocation15], 256  }
 0x92d   :  { %6793 = vsyncadd [#allocation15], 4294967040 }
 0x92e   :  { %6139 = vsyncpa [#allocation3], 1 }
 0x92f   :  { %6140 = vsyncpa [#allocation6], 1 }
 0x930   :  { %6141 = vsyncpa [#allocation9], 1 }
 0x931   :  { %6142 = vsyncpa [#allocation12], 1 }
 0x932   :  { %6143 = vsyncpa [#allocation4], 1 }
 0x933   :  { %6144 = vsyncpa [#allocation15], 1 }

</bundles_post_ra>
